<compile_context>
chip_gen: v7x
topology: tpu7x:2x2x1
jax: 0.10.0
libtpu: 0.0.40
codegen_flags: <defaults>
</compile_context>

<pallas_src>
import numpy as np
import jax
import jax.numpy as jnp
from jax import lax
from jax.experimental import pallas as pl
from jax.experimental.pallas import tpu as pltpu


def _pick_row_tile(oh, ow, D, elem_bytes, budget_bytes=4 * 1024 * 1024):
    """Number of patch rows per grid step (output block <= ~budget_bytes)."""
    t = budget_bytes // max(1, ow * D * elem_bytes)
    t = max(8, (t // 8) * 8)          # keep the block's second-minor dim 8-aligned
    if t >= oh:
        return int(oh)                # full extent is always a legal block dim
    return int(t)


def _make_im2col_kernel(C, p, s, D, TI, ow, center):
    """Kernel writing one (1, D, TI, ow) tile of the Unfold output per grid step."""
    pp = p * p
    inv_D = 1.0 / float(D)
    unroll_c = (C * pp <= 128)        # small problems: fully static indices

    def kernel(x_ref, o_ref, msum_ref):
        # x_ref:    (1, C*s*s, Hg_pad, Wg)  stride-phase-grouped input (VMEM resident)
        # o_ref:    (1, D, TI, ow)          one tile of the Unfold output
        # msum_ref: (TI, ow) f32            per-patch sum (used when centering)
        i0 = pl.program_id(1) * TI

        def slab(c, ki, kj):
            qi, ri = ki // s, ki % s          # static (ki, kj are Python ints)
            qj, rj = kj // s, kj % s
            g = (c * s + ri) * s + rj         # static if c is, traced otherwise
            return x_ref[0, g, pl.ds(i0 + qi, TI), pl.ds(qj, ow)]

        def for_each_c(body):
            if unroll_c:
                for c in range(C):
                    body(c)
            else:
                def wrapped(c, carry):
                    body(c)
                    return carry
                lax.fori_loop(0, C, wrapped, 0)

        if center:
            msum_ref[...] = jnp.zeros_like(msum_ref)

            def acc_c(c):
                total = jnp.zeros((TI, ow), jnp.float32)
                for ki in range(p):
                    for kj in range(p):
                        total = total + slab(c, ki, kj).astype(jnp.float32)
                msum_ref[...] += total

            for_each_c(acc_c)
            mean = msum_ref[...] * inv_D

        def write_c(c):
            base = c * pp
            for ki in range(p):
                for kj in range(p):
                    v = slab(c, ki, kj)
                    if center:
                        v = (v.astype(jnp.float32) - mean).astype(o_ref.dtype)
                    o_ref[0, base + ki * p + kj] = v

        for_each_c(write_c)

    return kernel


def _extract_patches_nchw(xs, patch_size, stride, center):
    """xs: (N, C, H, W) -> (N, L, D) Unfold patches (L row-major over windows)."""
    N, C, H, W = xs.shape
    p, s = int(patch_size), int(stride)
    oh = (H - p) // s + 1
    ow = (W - p) // s + 1
    assert oh > 0 and ow > 0, "patch_size larger than (padded) image"
    D = C * p * p
    L = oh * ow
    elem = jnp.dtype(xs.dtype).itemsize

    TI = _pick_row_tile(oh, ow, D, elem)
    n_tiles = -(-oh // TI)
    q_max = (p - 1) // s

    # ---- host-side prep (input-sized, cheap): stride-phase grouping + grid padding.
    Hg = -(-H // s)
    Wg = -(-W // s)
    Hg_pad = max(Hg, n_tiles * TI + q_max)          # keeps all in-kernel reads in bounds
    xs_p = jnp.pad(xs, ((0, 0), (0, 0), (0, Hg_pad * s - H), (0, Wg * s - W)))
    xg = xs_p.reshape(N, C, Hg_pad, s, Wg, s)
    xg = xg.transpose(0, 1, 3, 5, 2, 4).reshape(N, C * s * s, Hg_pad, Wg)

    kernel = _make_im2col_kernel(C, p, s, D, TI, ow, center)

    in_block = (1, C * s * s, Hg_pad, Wg)
    out_block = (1, D, TI, ow)
    in_bytes = int(np.prod(in_block)) * elem
    out_block_bytes = int(np.prod(out_block)) * elem
    vmem_limit = int(min(64 * 1024 * 1024,
                         max(32 * 1024 * 1024,
                             2 * (in_bytes + out_block_bytes) + TI * ow * 4 + (2 << 20))))

    cost = pl.CostEstimate(
        flops=int(2 * N * L * D),
        transcendentals=0,
        bytes_accessed=int(N * in_bytes + N * D * L * elem),
    )

    unfolded = pl.pallas_call(
        kernel,
        out_shape=jax.ShapeDtypeStruct((N, D, oh, ow), xs.dtype),
        grid_spec=pltpu.PrefetchScalarGridSpec(
            num_scalar_prefetch=0,
            grid=(N, n_tiles),
            in_specs=[pl.BlockSpec(in_block, lambda n, it: (n, 0, 0, 0))],
            out_specs=pl.BlockSpec(out_block, lambda n, it: (n, 0, it, 0)),
            scratch_shapes=[pltpu.VMEM((TI, ow), jnp.float32)],
        ),
        compiler_params=pltpu.CompilerParams(
            dimension_semantics=("parallel", "parallel"),
            vmem_limit_bytes=vmem_limit,
        ),
        cost_estimate=cost,
    )(xg)

    # (N, D, oh, ow) -> (N, L, D); the reshape is free, the transpose is one XLA pass.
    # TODO(synk): fold this transpose into the kernel (needs in-kernel lane<->sublane
    #             relayout per block); consumers that accept the (D, L) Unfold layout
    #             can use `unfolded` directly and skip it.
    return unfolded.reshape(N, D, L).transpose(0, 2, 1)


def patch_extractor_2_forward(
    input_1,
    input_2,
    *,
    patch_size,
    stride_wanted=1,
    pad=False,
    center=False,
    batch_size=0,
    high_frequency_selection=False,
    rng_key=None,
):
    """JAX/Pallas equivalent of patch_extractor_2.forward (NCHW inputs, N == 1)."""
    assert input_1.shape[0] == 1 and input_2.shape[0] == 1, \
        "reference module squeezes dim 0, so the batch dim must be 1"
    padsize = patch_size - 1

    def prep(x):
        x = x[0]                                        # (C, H, W)
        if pad:                                         # wrap-pad, same as torch cats
            x = jnp.concatenate([x, x[:, :padsize, :]], axis=1)
            x = jnp.concatenate([x, x[:, :, :padsize]], axis=2)
        return x

    x1, x2 = prep(input_1), prep(input_2)

    # Centering is fused in-kernel; per-row mean subtraction commutes with the
    # row selection done below, so the result matches the torch ordering.
    if x1.shape == x2.shape:
        patches = _extract_patches_nchw(jnp.stack([x1, x2]), patch_size,
                                        stride_wanted, center)
        patches_1, patches_2 = patches[0], patches[1]
    else:
        patches_1 = _extract_patches_nchw(x1[None], patch_size, stride_wanted, center)[0]
        patches_2 = _extract_patches_nchw(x2[None], patch_size, stride_wanted, center)[0]

    if high_frequency_selection:
        # TODO(synk): boolean-mask filtering yields data-dependent shapes (and the
        # torch code also plots with matplotlib); no static-shape Pallas equivalent.
        raise NotImplementedError("high_frequency_selection is not supported")

    if batch_size > 0:
        if rng_key is None:
            rng_key = jax.random.PRNGKey(0)
        idx = jax.random.permutation(rng_key, patches_1.shape[0])[:batch_size]
        patches_1 = patches_1[idx, :]
        patches_2 = patches_2[idx, :]

    return patches_1, patches_2


def _reference_unfold(x_nchw, patch_size, stride, pad, center):
    """Pure-numpy reference reproducing pad + nn.Unfold + squeeze + transpose (+ center)."""
    x = np.asarray(x_nchw)[0]
    padsize = patch_size - 1
    if pad:
        x = np.concatenate([x, x[:, :padsize, :]], axis=1)
        x = np.concatenate([x, x[:, :, :padsize]], axis=2)
    C, H, W = x.shape
    oh = (H - patch_size) // stride + 1
    ow = (W - patch_size) // stride + 1
    rows = []
    for i in range(oh):
        for j in range(ow):
            rows.append(
                x[:, i * stride:i * stride + patch_size,
                  j * stride:j * stride + patch_size].reshape(-1))
    out = np.stack(rows, axis=0).astype(np.float32)   # (L, C*p*p)
    if center:
        out = out - out.mean(axis=-1, keepdims=True)
    return out


if __name__ == "__main__":
    key = jax.random.PRNGKey(0)
    k1, k2 = jax.random.split(key)

    # N must be 1 (the reference module squeezes dim 0).
    x1 = jax.random.normal(k1, (1, 4, 16, 16), dtype=jnp.float32)
    x2 = jax.random.normal(k2, (1, 4, 16, 16), dtype=jnp.float32)

    # Case A: stride 1, centered (common configuration).
    p1, p2 = patch_extractor_2_forward(
        x1, x2, patch_size=4, stride_wanted=1, pad=False, center=True)
    p1 = jax.block_until_ready(p1)
    p2 = jax.block_until_ready(p2)
    r1 = _reference_unfold(x1, 4, 1, False, True)
    r2 = _reference_unfold(x2, 4, 1, False, True)
    assert p1.shape == r1.shape == (13 * 13, 4 * 4 * 4)
    np.testing.assert_allclose(np.asarray(p1), r1, rtol=1e-5, atol=1e-5)
    np.testing.assert_allclose(np.asarray(p2), r2, rtol=1e-5, atol=1e-5)

    # Case B: wrap padding + stride 2, uncentered (exercises the stride regrouping).
    q1, q2 = patch_extractor_2_forward(
        x1, x2, patch_size=4, stride_wanted=2, pad=True, center=False)
    q1 = jax.block_until_ready(q1)
    q2 = jax.block_until_ready(q2)
    s1 = _reference_unfold(x1, 4, 2, True, False)
    s2 = _reference_unfold(x2, 4, 2, True, False)
    assert q1.shape == s1.shape
    np.testing.assert_allclose(np.asarray(q1), s1, rtol=1e-5, atol=1e-5)
    np.testing.assert_allclose(np.asarray(q2), s2, rtol=1e-5, atol=1e-5)

    print("KERNEL_OK")
</pallas_src>

<mosaic_0001>
module attributes {stable_mosaic.version = 11 : i64} {
  func.func @kernel(%arg0: i32, %arg1: i32, %arg2: memref<1x4x16x16xf32, #tpu.memory_space<vmem>>, %arg3: memref<1x64x13x13xf32, #tpu.memory_space<vmem>>, %arg4: memref<13x13xf32, #tpu.memory_space<vmem>>) attributes {dimension_semantics = [#tpu.dimension_semantics<parallel>, #tpu.dimension_semantics<parallel>], iteration_bounds = array<i64: 2, 1>, scalar_prefetch = 0 : i64, scratch_operands = 1 : i64, tpu.core_type = #tpu.core_type<tc>, window_params = [{transform_indices = @transform_0, window_bounds = array<i64: 1, 4, 16, 16>}, {transform_indices = @transform_1, window_bounds = array<i64: 1, 64, 13, 13>}]} {
    %c13_i32 = arith.constant 13 : i32
    %0 = arith.muli %arg1, %c13_i32 : i32
    %cst = arith.constant 0.000000e+00 : f32
    %1 = vector.broadcast %cst : f32 to vector<13x13xf32>
    %c0 = arith.constant 0 : index
    %c0_0 = arith.constant 0 : index
    %2 = vector.load %arg4[%c0, %c0_0] : memref<13x13xf32, #tpu.memory_space<vmem>>, vector<13x13xf32>
    tpu.vector_store %arg4[%c0, %c0_0], %1 {strides = array<i32>} : memref<13x13xf32, #tpu.memory_space<vmem>>, vector<13x13xf32>,
    %cst_1 = arith.constant 0.000000e+00 : f32
    %3 = vector.broadcast %cst_1 : f32 to vector<13x13xf32>
    %c0_i32 = arith.constant 0 : i32
    %4 = arith.addi %0, %c0_i32 : i32
    %c0_2 = arith.constant 0 : index
    %c0_3 = arith.constant 0 : index
    %5 = arith.index_cast %4 : i32 to index
    %c0_4 = arith.constant 0 : index
    %6 = vector.load %arg2[%c0_2, %c0_3, %5, %c0_4] : memref<1x4x16x16xf32, #tpu.memory_space<vmem>>, vector<1x1x13x13xf32>
    %7 = vector.shape_cast %6 : vector<1x1x13x13xf32> to vector<13x13xf32>
    %8 = arith.addf %3, %7 : vector<13x13xf32>
    %c0_i32_5 = arith.constant 0 : i32
    %9 = arith.addi %0, %c0_i32_5 : i32
    %c0_6 = arith.constant 0 : index
    %c0_7 = arith.constant 0 : index
    %10 = arith.index_cast %9 : i32 to index
    %c1 = arith.constant 1 : index
    %11 = vector.load %arg2[%c0_6, %c0_7, %10, %c1] : memref<1x4x16x16xf32, #tpu.memory_space<vmem>>, vector<1x1x13x13xf32>
    %12 = vector.shape_cast %11 : vector<1x1x13x13xf32> to vector<13x13xf32>
    %13 = arith.addf %8, %12 : vector<13x13xf32>
    %c0_i32_8 = arith.constant 0 : i32
    %14 = arith.addi %0, %c0_i32_8 : i32
    %c0_9 = arith.constant 0 : index
    %c0_10 = arith.constant 0 : index
    %15 = arith.index_cast %14 : i32 to index
    %c2 = arith.constant 2 : index
    %16 = vector.load %arg2[%c0_9, %c0_10, %15, %c2] : memref<1x4x16x16xf32, #tpu.memory_space<vmem>>, vector<1x1x13x13xf32>
    %17 = vector.shape_cast %16 : vector<1x1x13x13xf32> to vector<13x13xf32>
    %18 = arith.addf %13, %17 : vector<13x13xf32>
    %c0_i32_11 = arith.constant 0 : i32
    %19 = arith.addi %0, %c0_i32_11 : i32
    %c0_12 = arith.constant 0 : index
    %c0_13 = arith.constant 0 : index
    %20 = arith.index_cast %19 : i32 to index
    %c3 = arith.constant 3 : index
    %21 = vector.load %arg2[%c0_12, %c0_13, %20, %c3] : memref<1x4x16x16xf32, #tpu.memory_space<vmem>>, vector<1x1x13x13xf32>
    %22 = vector.shape_cast %21 : vector<1x1x13x13xf32> to vector<13x13xf32>
    %23 = arith.addf %18, %22 : vector<13x13xf32>
    %c1_i32 = arith.constant 1 : i32
    %24 = arith.addi %0, %c1_i32 : i32
    %c0_14 = arith.constant 0 : index
    %c0_15 = arith.constant 0 : index
    %25 = arith.index_cast %24 : i32 to index
    %c0_16 = arith.constant 0 : index
    %26 = vector.load %arg2[%c0_14, %c0_15, %25, %c0_16] : memref<1x4x16x16xf32, #tpu.memory_space<vmem>>, vector<1x1x13x13xf32>
    %27 = vector.shape_cast %26 : vector<1x1x13x13xf32> to vector<13x13xf32>
    %28 = arith.addf %23, %27 : vector<13x13xf32>
    %c1_i32_17 = arith.constant 1 : i32
    %29 = arith.addi %0, %c1_i32_17 : i32
    %c0_18 = arith.constant 0 : index
    %c0_19 = arith.constant 0 : index
    %30 = arith.index_cast %29 : i32 to index
    %c1_20 = arith.constant 1 : index
    %31 = vector.load %arg2[%c0_18, %c0_19, %30, %c1_20] : memref<1x4x16x16xf32, #tpu.memory_space<vmem>>, vector<1x1x13x13xf32>
    %32 = vector.shape_cast %31 : vector<1x1x13x13xf32> to vector<13x13xf32>
    %33 = arith.addf %28, %32 : vector<13x13xf32>
    %c1_i32_21 = arith.constant 1 : i32
    %34 = arith.addi %0, %c1_i32_21 : i32
    %c0_22 = arith.constant 0 : index
    %c0_23 = arith.constant 0 : index
    %35 = arith.index_cast %34 : i32 to index
    %c2_24 = arith.constant 2 : index
    %36 = vector.load %arg2[%c0_22, %c0_23, %35, %c2_24] : memref<1x4x16x16xf32, #tpu.memory_space<vmem>>, vector<1x1x13x13xf32>
    %37 = vector.shape_cast %36 : vector<1x1x13x13xf32> to vector<13x13xf32>
    %38 = arith.addf %33, %37 : vector<13x13xf32>
    %c1_i32_25 = arith.constant 1 : i32
    %39 = arith.addi %0, %c1_i32_25 : i32
    %c0_26 = arith.constant 0 : index
    %c0_27 = arith.constant 0 : index
    %40 = arith.index_cast %39 : i32 to index
    %c3_28 = arith.constant 3 : index
    %41 = vector.load %arg2[%c0_26, %c0_27, %40, %c3_28] : memref<1x4x16x16xf32, #tpu.memory_space<vmem>>, vector<1x1x13x13xf32>
    %42 = vector.shape_cast %41 : vector<1x1x13x13xf32> to vector<13x13xf32>
    %43 = arith.addf %38, %42 : vector<13x13xf32>
    %c2_i32 = arith.constant 2 : i32
    %44 = arith.addi %0, %c2_i32 : i32
    %c0_29 = arith.constant 0 : index
    %c0_30 = arith.constant 0 : index
    %45 = arith.index_cast %44 : i32 to index
    %c0_31 = arith.constant 0 : index
    %46 = vector.load %arg2[%c0_29, %c0_30, %45, %c0_31] : memref<1x4x16x16xf32, #tpu.memory_space<vmem>>, vector<1x1x13x13xf32>
    %47 = vector.shape_cast %46 : vector<1x1x13x13xf32> to vector<13x13xf32>
    %48 = arith.addf %43, %47 : vector<13x13xf32>
    %c2_i32_32 = arith.constant 2 : i32
    %49 = arith.addi %0, %c2_i32_32 : i32
    %c0_33 = arith.constant 0 : index
    %c0_34 = arith.constant 0 : index
    %50 = arith.index_cast %49 : i32 to index
    %c1_35 = arith.constant 1 : index
    %51 = vector.load %arg2[%c0_33, %c0_34, %50, %c1_35] : memref<1x4x16x16xf32, #tpu.memory_space<vmem>>, vector<1x1x13x13xf32>
    %52 = vector.shape_cast %51 : vector<1x1x13x13xf32> to vector<13x13xf32>
    %53 = arith.addf %48, %52 : vector<13x13xf32>
    %c2_i32_36 = arith.constant 2 : i32
    %54 = arith.addi %0, %c2_i32_36 : i32
    %c0_37 = arith.constant 0 : index
    %c0_38 = arith.constant 0 : index
    %55 = arith.index_cast %54 : i32 to index
    %c2_39 = arith.constant 2 : index
    %56 = vector.load %arg2[%c0_37, %c0_38, %55, %c2_39] : memref<1x4x16x16xf32, #tpu.memory_space<vmem>>, vector<1x1x13x13xf32>
    %57 = vector.shape_cast %56 : vector<1x1x13x13xf32> to vector<13x13xf32>
    %58 = arith.addf %53, %57 : vector<13x13xf32>
    %c2_i32_40 = arith.constant 2 : i32
    %59 = arith.addi %0, %c2_i32_40 : i32
    %c0_41 = arith.constant 0 : index
    %c0_42 = arith.constant 0 : index
    %60 = arith.index_cast %59 : i32 to index
    %c3_43 = arith.constant 3 : index
    %61 = vector.load %arg2[%c0_41, %c0_42, %60, %c3_43] : memref<1x4x16x16xf32, #tpu.memory_space<vmem>>, vector<1x1x13x13xf32>
    %62 = vector.shape_cast %61 : vector<1x1x13x13xf32> to vector<13x13xf32>
    %63 = arith.addf %58, %62 : vector<13x13xf32>
    %c3_i32 = arith.constant 3 : i32
    %64 = arith.addi %0, %c3_i32 : i32
    %c0_44 = arith.constant 0 : index
    %c0_45 = arith.constant 0 : index
    %65 = arith.index_cast %64 : i32 to index
    %c0_46 = arith.constant 0 : index
    %66 = vector.load %arg2[%c0_44, %c0_45, %65, %c0_46] : memref<1x4x16x16xf32, #tpu.memory_space<vmem>>, vector<1x1x13x13xf32>
    %67 = vector.shape_cast %66 : vector<1x1x13x13xf32> to vector<13x13xf32>
    %68 = arith.addf %63, %67 : vector<13x13xf32>
    %c3_i32_47 = arith.constant 3 : i32
    %69 = arith.addi %0, %c3_i32_47 : i32
    %c0_48 = arith.constant 0 : index
    %c0_49 = arith.constant 0 : index
    %70 = arith.index_cast %69 : i32 to index
    %c1_50 = arith.constant 1 : index
    %71 = vector.load %arg2[%c0_48, %c0_49, %70, %c1_50] : memref<1x4x16x16xf32, #tpu.memory_space<vmem>>, vector<1x1x13x13xf32>
    %72 = vector.shape_cast %71 : vector<1x1x13x13xf32> to vector<13x13xf32>
    %73 = arith.addf %68, %72 : vector<13x13xf32>
    %c3_i32_51 = arith.constant 3 : i32
    %74 = arith.addi %0, %c3_i32_51 : i32
    %c0_52 = arith.constant 0 : index
    %c0_53 = arith.constant 0 : index
    %75 = arith.index_cast %74 : i32 to index
    %c2_54 = arith.constant 2 : index
    %76 = vector.load %arg2[%c0_52, %c0_53, %75, %c2_54] : memref<1x4x16x16xf32, #tpu.memory_space<vmem>>, vector<1x1x13x13xf32>
    %77 = vector.shape_cast %76 : vector<1x1x13x13xf32> to vector<13x13xf32>
    %78 = arith.addf %73, %77 : vector<13x13xf32>
    %c3_i32_55 = arith.constant 3 : i32
    %79 = arith.addi %0, %c3_i32_55 : i32
    %c0_56 = arith.constant 0 : index
    %c0_57 = arith.constant 0 : index
    %80 = arith.index_cast %79 : i32 to index
    %c3_58 = arith.constant 3 : index
    %81 = vector.load %arg2[%c0_56, %c0_57, %80, %c3_58] : memref<1x4x16x16xf32, #tpu.memory_space<vmem>>, vector<1x1x13x13xf32>
    %82 = vector.shape_cast %81 : vector<1x1x13x13xf32> to vector<13x13xf32>
    %83 = arith.addf %78, %82 : vector<13x13xf32>
    %c0_59 = arith.constant 0 : index
    %c0_60 = arith.constant 0 : index
    %84 = vector.load %arg4[%c0_59, %c0_60] : memref<13x13xf32, #tpu.memory_space<vmem>>, vector<13x13xf32>
    %85 = arith.addf %84, %83 : vector<13x13xf32>
    %c0_61 = arith.constant 0 : index
    %c0_62 = arith.constant 0 : index
    %86 = vector.load %arg4[%c0_61, %c0_62] : memref<13x13xf32, #tpu.memory_space<vmem>>, vector<13x13xf32>
    tpu.vector_store %arg4[%c0_61, %c0_62], %85 {strides = array<i32>} : memref<13x13xf32, #tpu.memory_space<vmem>>, vector<13x13xf32>,
    %cst_63 = arith.constant 0.000000e+00 : f32
    %87 = vector.broadcast %cst_63 : f32 to vector<13x13xf32>
    %c0_i32_64 = arith.constant 0 : i32
    %88 = arith.addi %0, %c0_i32_64 : i32
    %c0_65 = arith.constant 0 : index
    %c1_66 = arith.constant 1 : index
    %89 = arith.index_cast %88 : i32 to index
    %c0_67 = arith.constant 0 : index
    %90 = vector.load %arg2[%c0_65, %c1_66, %89, %c0_67] : memref<1x4x16x16xf32, #tpu.memory_space<vmem>>, vector<1x1x13x13xf32>
    %91 = vector.shape_cast %90 : vector<1x1x13x13xf32> to vector<13x13xf32>
    %92 = arith.addf %87, %91 : vector<13x13xf32>
    %c0_i32_68 = arith.constant 0 : i32
    %93 = arith.addi %0, %c0_i32_68 : i32
    %c0_69 = arith.constant 0 : index
    %c1_70 = arith.constant 1 : index
    %94 = arith.index_cast %93 : i32 to index
    %c1_71 = arith.constant 1 : index
    %95 = vector.load %arg2[%c0_69, %c1_70, %94, %c1_71] : memref<1x4x16x16xf32, #tpu.memory_space<vmem>>, vector<1x1x13x13xf32>
    %96 = vector.shape_cast %95 : vector<1x1x13x13xf32> to vector<13x13xf32>
    %97 = arith.addf %92, %96 : vector<13x13xf32>
    %c0_i32_72 = arith.constant 0 : i32
    %98 = arith.addi %0, %c0_i32_72 : i32
    %c0_73 = arith.constant 0 : index
    %c1_74 = arith.constant 1 : index
    %99 = arith.index_cast %98 : i32 to index
    %c2_75 = arith.constant 2 : index
    %100 = vector.load %arg2[%c0_73, %c1_74, %99, %c2_75] : memref<1x4x16x16xf32, #tpu.memory_space<vmem>>, vector<1x1x13x13xf32>
    %101 = vector.shape_cast %100 : vector<1x1x13x13xf32> to vector<13x13xf32>
    %102 = arith.addf %97, %101 : vector<13x13xf32>
    %c0_i32_76 = arith.constant 0 : i32
    %103 = arith.addi %0, %c0_i32_76 : i32
    %c0_77 = arith.constant 0 : index
    %c1_78 = arith.constant 1 : index
    %104 = arith.index_cast %103 : i32 to index
    %c3_79 = arith.constant 3 : index
    %105 = vector.load %arg2[%c0_77, %c1_78, %104, %c3_79] : memref<1x4x16x16xf32, #tpu.memory_space<vmem>>, vector<1x1x13x13xf32>
    %106 = vector.shape_cast %105 : vector<1x1x13x13xf32> to vector<13x13xf32>
    %107 = arith.addf %102, %106 : vector<13x13xf32>
    %c1_i32_80 = arith.constant 1 : i32
    %108 = arith.addi %0, %c1_i32_80 : i32
    %c0_81 = arith.constant 0 : index
    %c1_82 = arith.constant 1 : index
    %109 = arith.index_cast %108 : i32 to index
    %c0_83 = arith.constant 0 : index
    %110 = vector.load %arg2[%c0_81, %c1_82, %109, %c0_83] : memref<1x4x16x16xf32, #tpu.memory_space<vmem>>, vector<1x1x13x13xf32>
    %111 = vector.shape_cast %110 : vector<1x1x13x13xf32> to vector<13x13xf32>
    %112 = arith.addf %107, %111 : vector<13x13xf32>
    %c1_i32_84 = arith.constant 1 : i32
    %113 = arith.addi %0, %c1_i32_84 : i32
    %c0_85 = arith.constant 0 : index
    %c1_86 = arith.constant 1 : index
    %114 = arith.index_cast %113 : i32 to index
    %c1_87 = arith.constant 1 : index
    %115 = vector.load %arg2[%c0_85, %c1_86, %114, %c1_87] : memref<1x4x16x16xf32, #tpu.memory_space<vmem>>, vector<1x1x13x13xf32>
    %116 = vector.shape_cast %115 : vector<1x1x13x13xf32> to vector<13x13xf32>
    %117 = arith.addf %112, %116 : vector<13x13xf32>
    %c1_i32_88 = arith.constant 1 : i32
    %118 = arith.addi %0, %c1_i32_88 : i32
    %c0_89 = arith.constant 0 : index
    %c1_90 = arith.constant 1 : index
    %119 = arith.index_cast %118 : i32 to index
    %c2_91 = arith.constant 2 : index
    %120 = vector.load %arg2[%c0_89, %c1_90, %119, %c2_91] : memref<1x4x16x16xf32, #tpu.memory_space<vmem>>, vector<1x1x13x13xf32>
    %121 = vector.shape_cast %120 : vector<1x1x13x13xf32> to vector<13x13xf32>
    %122 = arith.addf %117, %121 : vector<13x13xf32>
    %c1_i32_92 = arith.constant 1 : i32
    %123 = arith.addi %0, %c1_i32_92 : i32
    %c0_93 = arith.constant 0 : index
    %c1_94 = arith.constant 1 : index
    %124 = arith.index_cast %123 : i32 to index
    %c3_95 = arith.constant 3 : index
    %125 = vector.load %arg2[%c0_93, %c1_94, %124, %c3_95] : memref<1x4x16x16xf32, #tpu.memory_space<vmem>>, vector<1x1x13x13xf32>
    %126 = vector.shape_cast %125 : vector<1x1x13x13xf32> to vector<13x13xf32>
    %127 = arith.addf %122, %126 : vector<13x13xf32>
    %c2_i32_96 = arith.constant 2 : i32
    %128 = arith.addi %0, %c2_i32_96 : i32
    %c0_97 = arith.constant 0 : index
    %c1_98 = arith.constant 1 : index
    %129 = arith.index_cast %128 : i32 to index
    %c0_99 = arith.constant 0 : index
    %130 = vector.load %arg2[%c0_97, %c1_98, %129, %c0_99] : memref<1x4x16x16xf32, #tpu.memory_space<vmem>>, vector<1x1x13x13xf32>
    %131 = vector.shape_cast %130 : vector<1x1x13x13xf32> to vector<13x13xf32>
    %132 = arith.addf %127, %131 : vector<13x13xf32>
    %c2_i32_100 = arith.constant 2 : i32
    %133 = arith.addi %0, %c2_i32_100 : i32
    %c0_101 = arith.constant 0 : index
    %c1_102 = arith.constant 1 : index
    %134 = arith.index_cast %133 : i32 to index
    %c1_103 = arith.constant 1 : index
    %135 = vector.load %arg2[%c0_101, %c1_102, %134, %c1_103] : memref<1x4x16x16xf32, #tpu.memory_space<vmem>>, vector<1x1x13x13xf32>
    %136 = vector.shape_cast %135 : vector<1x1x13x13xf32> to vector<13x13xf32>
    %137 = arith.addf %132, %136 : vector<13x13xf32>
    %c2_i32_104 = arith.constant 2 : i32
    %138 = arith.addi %0, %c2_i32_104 : i32
    %c0_105 = arith.constant 0 : index
    %c1_106 = arith.constant 1 : index
    %139 = arith.index_cast %138 : i32 to index
    %c2_107 = arith.constant 2 : index
    %140 = vector.load %arg2[%c0_105, %c1_106, %139, %c2_107] : memref<1x4x16x16xf32, #tpu.memory_space<vmem>>, vector<1x1x13x13xf32>
    %141 = vector.shape_cast %140 : vector<1x1x13x13xf32> to vector<13x13xf32>
    %142 = arith.addf %137, %141 : vector<13x13xf32>
    %c2_i32_108 = arith.constant 2 : i32
    %143 = arith.addi %0, %c2_i32_108 : i32
    %c0_109 = arith.constant 0 : index
    %c1_110 = arith.constant 1 : index
    %144 = arith.index_cast %143 : i32 to index
    %c3_111 = arith.constant 3 : index
    %145 = vector.load %arg2[%c0_109, %c1_110, %144, %c3_111] : memref<1x4x16x16xf32, #tpu.memory_space<vmem>>, vector<1x1x13x13xf32>
    %146 = vector.shape_cast %145 : vector<1x1x13x13xf32> to vector<13x13xf32>
    %147 = arith.addf %142, %146 : vector<13x13xf32>
    %c3_i32_112 = arith.constant 3 : i32
    %148 = arith.addi %0, %c3_i32_112 : i32
    %c0_113 = arith.constant 0 : index
    %c1_114 = arith.constant 1 : index
    %149 = arith.index_cast %148 : i32 to index
    %c0_115 = arith.constant 0 : index
    %150 = vector.load %arg2[%c0_113, %c1_114, %149, %c0_115] : memref<1x4x16x16xf32, #tpu.memory_space<vmem>>, vector<1x1x13x13xf32>
    %151 = vector.shape_cast %150 : vector<1x1x13x13xf32> to vector<13x13xf32>
    %152 = arith.addf %147, %151 : vector<13x13xf32>
    %c3_i32_116 = arith.constant 3 : i32
    %153 = arith.addi %0, %c3_i32_116 : i32
    %c0_117 = arith.constant 0 : index
    %c1_118 = arith.constant 1 : index
    %154 = arith.index_cast %153 : i32 to index
    %c1_119 = arith.constant 1 : index
    %155 = vector.load %arg2[%c0_117, %c1_118, %154, %c1_119] : memref<1x4x16x16xf32, #tpu.memory_space<vmem>>, vector<1x1x13x13xf32>
    %156 = vector.shape_cast %155 : vector<1x1x13x13xf32> to vector<13x13xf32>
    %157 = arith.addf %152, %156 : vector<13x13xf32>
    %c3_i32_120 = arith.constant 3 : i32
    %158 = arith.addi %0, %c3_i32_120 : i32
    %c0_121 = arith.constant 0 : index
    %c1_122 = arith.constant 1 : index
    %159 = arith.index_cast %158 : i32 to index
    %c2_123 = arith.constant 2 : index
    %160 = vector.load %arg2[%c0_121, %c1_122, %159, %c2_123] : memref<1x4x16x16xf32, #tpu.memory_space<vmem>>, vector<1x1x13x13xf32>
    %161 = vector.shape_cast %160 : vector<1x1x13x13xf32> to vector<13x13xf32>
    %162 = arith.addf %157, %161 : vector<13x13xf32>
    %c3_i32_124 = arith.constant 3 : i32
    %163 = arith.addi %0, %c3_i32_124 : i32
    %c0_125 = arith.constant 0 : index
    %c1_126 = arith.constant 1 : index
    %164 = arith.index_cast %163 : i32 to index
    %c3_127 = arith.constant 3 : index
    %165 = vector.load %arg2[%c0_125, %c1_126, %164, %c3_127] : memref<1x4x16x16xf32, #tpu.memory_space<vmem>>, vector<1x1x13x13xf32>
    %166 = vector.shape_cast %165 : vector<1x1x13x13xf32> to vector<13x13xf32>
    %167 = arith.addf %162, %166 : vector<13x13xf32>
    %c0_128 = arith.constant 0 : index
    %c0_129 = arith.constant 0 : index
    %168 = vector.load %arg4[%c0_128, %c0_129] : memref<13x13xf32, #tpu.memory_space<vmem>>, vector<13x13xf32>
    %169 = arith.addf %168, %167 : vector<13x13xf32>
    %c0_130 = arith.constant 0 : index
    %c0_131 = arith.constant 0 : index
    %170 = vector.load %arg4[%c0_130, %c0_131] : memref<13x13xf32, #tpu.memory_space<vmem>>, vector<13x13xf32>
    tpu.vector_store %arg4[%c0_130, %c0_131], %169 {strides = array<i32>} : memref<13x13xf32, #tpu.memory_space<vmem>>, vector<13x13xf32>,
    %cst_132 = arith.constant 0.000000e+00 : f32
    %171 = vector.broadcast %cst_132 : f32 to vector<13x13xf32>
    %c0_i32_133 = arith.constant 0 : i32
    %172 = arith.addi %0, %c0_i32_133 : i32
    %c0_134 = arith.constant 0 : index
    %c2_135 = arith.constant 2 : index
    %173 = arith.index_cast %172 : i32 to index
    %c0_136 = arith.constant 0 : index
    %174 = vector.load %arg2[%c0_134, %c2_135, %173, %c0_136] : memref<1x4x16x16xf32, #tpu.memory_space<vmem>>, vector<1x1x13x13xf32>
    %175 = vector.shape_cast %174 : vector<1x1x13x13xf32> to vector<13x13xf32>
    %176 = arith.addf %171, %175 : vector<13x13xf32>
    %c0_i32_137 = arith.constant 0 : i32
    %177 = arith.addi %0, %c0_i32_137 : i32
    %c0_138 = arith.constant 0 : index
    %c2_139 = arith.constant 2 : index
    %178 = arith.index_cast %177 : i32 to index
    %c1_140 = arith.constant 1 : index
    %179 = vector.load %arg2[%c0_138, %c2_139, %178, %c1_140] : memref<1x4x16x16xf32, #tpu.memory_space<vmem>>, vector<1x1x13x13xf32>
    %180 = vector.shape_cast %179 : vector<1x1x13x13xf32> to vector<13x13xf32>
    %181 = arith.addf %176, %180 : vector<13x13xf32>
    %c0_i32_141 = arith.constant 0 : i32
    %182 = arith.addi %0, %c0_i32_141 : i32
    %c0_142 = arith.constant 0 : index
    %c2_143 = arith.constant 2 : index
    %183 = arith.index_cast %182 : i32 to index
    %c2_144 = arith.constant 2 : index
    %184 = vector.load %arg2[%c0_142, %c2_143, %183, %c2_144] : memref<1x4x16x16xf32, #tpu.memory_space<vmem>>, vector<1x1x13x13xf32>
    %185 = vector.shape_cast %184 : vector<1x1x13x13xf32> to vector<13x13xf32>
    %186 = arith.addf %181, %185 : vector<13x13xf32>
    %c0_i32_145 = arith.constant 0 : i32
    %187 = arith.addi %0, %c0_i32_145 : i32
    %c0_146 = arith.constant 0 : index
    %c2_147 = arith.constant 2 : index
    %188 = arith.index_cast %187 : i32 to index
    %c3_148 = arith.constant 3 : index
    %189 = vector.load %arg2[%c0_146, %c2_147, %188, %c3_148] : memref<1x4x16x16xf32, #tpu.memory_space<vmem>>, vector<1x1x13x13xf32>
    %190 = vector.shape_cast %189 : vector<1x1x13x13xf32> to vector<13x13xf32>
    %191 = arith.addf %186, %190 : vector<13x13xf32>
    %c1_i32_149 = arith.constant 1 : i32
    %192 = arith.addi %0, %c1_i32_149 : i32
    %c0_150 = arith.constant 0 : index
    %c2_151 = arith.constant 2 : index
    %193 = arith.index_cast %192 : i32 to index
    %c0_152 = arith.constant 0 : index
    %194 = vector.load %arg2[%c0_150, %c2_151, %193, %c0_152] : memref<1x4x16x16xf32, #tpu.memory_space<vmem>>, vector<1x1x13x13xf32>
    %195 = vector.shape_cast %194 : vector<1x1x13x13xf32> to vector<13x13xf32>
    %196 = arith.addf %191, %195 : vector<13x13xf32>
    %c1_i32_153 = arith.constant 1 : i32
    %197 = arith.addi %0, %c1_i32_153 : i32
    %c0_154 = arith.constant 0 : index
    %c2_155 = arith.constant 2 : index
    %198 = arith.index_cast %197 : i32 to index
    %c1_156 = arith.constant 1 : index
    %199 = vector.load %arg2[%c0_154, %c2_155, %198, %c1_156] : memref<1x4x16x16xf32, #tpu.memory_space<vmem>>, vector<1x1x13x13xf32>
    %200 = vector.shape_cast %199 : vector<1x1x13x13xf32> to vector<13x13xf32>
    %201 = arith.addf %196, %200 : vector<13x13xf32>
    %c1_i32_157 = arith.constant 1 : i32
    %202 = arith.addi %0, %c1_i32_157 : i32
    %c0_158 = arith.constant 0 : index
    %c2_159 = arith.constant 2 : index
    %203 = arith.index_cast %202 : i32 to index
    %c2_160 = arith.constant 2 : index
    %204 = vector.load %arg2[%c0_158, %c2_159, %203, %c2_160] : memref<1x4x16x16xf32, #tpu.memory_space<vmem>>, vector<1x1x13x13xf32>
    %205 = vector.shape_cast %204 : vector<1x1x13x13xf32> to vector<13x13xf32>
    %206 = arith.addf %201, %205 : vector<13x13xf32>
    %c1_i32_161 = arith.constant 1 : i32
    %207 = arith.addi %0, %c1_i32_161 : i32
    %c0_162 = arith.constant 0 : index
    %c2_163 = arith.constant 2 : index
    %208 = arith.index_cast %207 : i32 to index
    %c3_164 = arith.constant 3 : index
    %209 = vector.load %arg2[%c0_162, %c2_163, %208, %c3_164] : memref<1x4x16x16xf32, #tpu.memory_space<vmem>>, vector<1x1x13x13xf32>
    %210 = vector.shape_cast %209 : vector<1x1x13x13xf32> to vector<13x13xf32>
    %211 = arith.addf %206, %210 : vector<13x13xf32>
    %c2_i32_165 = arith.constant 2 : i32
    %212 = arith.addi %0, %c2_i32_165 : i32
    %c0_166 = arith.constant 0 : index
    %c2_167 = arith.constant 2 : index
    %213 = arith.index_cast %212 : i32 to index
    %c0_168 = arith.constant 0 : index
    %214 = vector.load %arg2[%c0_166, %c2_167, %213, %c0_168] : memref<1x4x16x16xf32, #tpu.memory_space<vmem>>, vector<1x1x13x13xf32>
    %215 = vector.shape_cast %214 : vector<1x1x13x13xf32> to vector<13x13xf32>
    %216 = arith.addf %211, %215 : vector<13x13xf32>
    %c2_i32_169 = arith.constant 2 : i32
    %217 = arith.addi %0, %c2_i32_169 : i32
    %c0_170 = arith.constant 0 : index
    %c2_171 = arith.constant 2 : index
    %218 = arith.index_cast %217 : i32 to index
    %c1_172 = arith.constant 1 : index
    %219 = vector.load %arg2[%c0_170, %c2_171, %218, %c1_172] : memref<1x4x16x16xf32, #tpu.memory_space<vmem>>, vector<1x1x13x13xf32>
    %220 = vector.shape_cast %219 : vector<1x1x13x13xf32> to vector<13x13xf32>
    %221 = arith.addf %216, %220 : vector<13x13xf32>
    %c2_i32_173 = arith.constant 2 : i32
    %222 = arith.addi %0, %c2_i32_173 : i32
    %c0_174 = arith.constant 0 : index
    %c2_175 = arith.constant 2 : index
    %223 = arith.index_cast %222 : i32 to index
    %c2_176 = arith.constant 2 : index
    %224 = vector.load %arg2[%c0_174, %c2_175, %223, %c2_176] : memref<1x4x16x16xf32, #tpu.memory_space<vmem>>, vector<1x1x13x13xf32>
    %225 = vector.shape_cast %224 : vector<1x1x13x13xf32> to vector<13x13xf32>
    %226 = arith.addf %221, %225 : vector<13x13xf32>
    %c2_i32_177 = arith.constant 2 : i32
    %227 = arith.addi %0, %c2_i32_177 : i32
    %c0_178 = arith.constant 0 : index
    %c2_179 = arith.constant 2 : index
    %228 = arith.index_cast %227 : i32 to index
    %c3_180 = arith.constant 3 : index
    %229 = vector.load %arg2[%c0_178, %c2_179, %228, %c3_180] : memref<1x4x16x16xf32, #tpu.memory_space<vmem>>, vector<1x1x13x13xf32>
    %230 = vector.shape_cast %229 : vector<1x1x13x13xf32> to vector<13x13xf32>
    %231 = arith.addf %226, %230 : vector<13x13xf32>
    %c3_i32_181 = arith.constant 3 : i32
    %232 = arith.addi %0, %c3_i32_181 : i32
    %c0_182 = arith.constant 0 : index
    %c2_183 = arith.constant 2 : index
    %233 = arith.index_cast %232 : i32 to index
    %c0_184 = arith.constant 0 : index
    %234 = vector.load %arg2[%c0_182, %c2_183, %233, %c0_184] : memref<1x4x16x16xf32, #tpu.memory_space<vmem>>, vector<1x1x13x13xf32>
    %235 = vector.shape_cast %234 : vector<1x1x13x13xf32> to vector<13x13xf32>
    %236 = arith.addf %231, %235 : vector<13x13xf32>
    %c3_i32_185 = arith.constant 3 : i32
    %237 = arith.addi %0, %c3_i32_185 : i32
    %c0_186 = arith.constant 0 : index
    %c2_187 = arith.constant 2 : index
    %238 = arith.index_cast %237 : i32 to index
    %c1_188 = arith.constant 1 : index
    %239 = vector.load %arg2[%c0_186, %c2_187, %238, %c1_188] : memref<1x4x16x16xf32, #tpu.memory_space<vmem>>, vector<1x1x13x13xf32>
    %240 = vector.shape_cast %239 : vector<1x1x13x13xf32> to vector<13x13xf32>
    %241 = arith.addf %236, %240 : vector<13x13xf32>
    %c3_i32_189 = arith.constant 3 : i32
    %242 = arith.addi %0, %c3_i32_189 : i32
    %c0_190 = arith.constant 0 : index
    %c2_191 = arith.constant 2 : index
    %243 = arith.index_cast %242 : i32 to index
    %c2_192 = arith.constant 2 : index
    %244 = vector.load %arg2[%c0_190, %c2_191, %243, %c2_192] : memref<1x4x16x16xf32, #tpu.memory_space<vmem>>, vector<1x1x13x13xf32>
    %245 = vector.shape_cast %244 : vector<1x1x13x13xf32> to vector<13x13xf32>
    %246 = arith.addf %241, %245 : vector<13x13xf32>
    %c3_i32_193 = arith.constant 3 : i32
    %247 = arith.addi %0, %c3_i32_193 : i32
    %c0_194 = arith.constant 0 : index
    %c2_195 = arith.constant 2 : index
    %248 = arith.index_cast %247 : i32 to index
    %c3_196 = arith.constant 3 : index
    %249 = vector.load %arg2[%c0_194, %c2_195, %248, %c3_196] : memref<1x4x16x16xf32, #tpu.memory_space<vmem>>, vector<1x1x13x13xf32>
    %250 = vector.shape_cast %249 : vector<1x1x13x13xf32> to vector<13x13xf32>
    %251 = arith.addf %246, %250 : vector<13x13xf32>
    %c0_197 = arith.constant 0 : index
    %c0_198 = arith.constant 0 : index
    %252 = vector.load %arg4[%c0_197, %c0_198] : memref<13x13xf32, #tpu.memory_space<vmem>>, vector<13x13xf32>
    %253 = arith.addf %252, %251 : vector<13x13xf32>
    %c0_199 = arith.constant 0 : index
    %c0_200 = arith.constant 0 : index
    %254 = vector.load %arg4[%c0_199, %c0_200] : memref<13x13xf32, #tpu.memory_space<vmem>>, vector<13x13xf32>
    tpu.vector_store %arg4[%c0_199, %c0_200], %253 {strides = array<i32>} : memref<13x13xf32, #tpu.memory_space<vmem>>, vector<13x13xf32>,
    %cst_201 = arith.constant 0.000000e+00 : f32
    %255 = vector.broadcast %cst_201 : f32 to vector<13x13xf32>
    %c0_i32_202 = arith.constant 0 : i32
    %256 = arith.addi %0, %c0_i32_202 : i32
    %c0_203 = arith.constant 0 : index
    %c3_204 = arith.constant 3 : index
    %257 = arith.index_cast %256 : i32 to index
    %c0_205 = arith.constant 0 : index
    %258 = vector.load %arg2[%c0_203, %c3_204, %257, %c0_205] : memref<1x4x16x16xf32, #tpu.memory_space<vmem>>, vector<1x1x13x13xf32>
    %259 = vector.shape_cast %258 : vector<1x1x13x13xf32> to vector<13x13xf32>
    %260 = arith.addf %255, %259 : vector<13x13xf32>
    %c0_i32_206 = arith.constant 0 : i32
    %261 = arith.addi %0, %c0_i32_206 : i32
    %c0_207 = arith.constant 0 : index
    %c3_208 = arith.constant 3 : index
    %262 = arith.index_cast %261 : i32 to index
    %c1_209 = arith.constant 1 : index
    %263 = vector.load %arg2[%c0_207, %c3_208, %262, %c1_209] : memref<1x4x16x16xf32, #tpu.memory_space<vmem>>, vector<1x1x13x13xf32>
    %264 = vector.shape_cast %263 : vector<1x1x13x13xf32> to vector<13x13xf32>
    %265 = arith.addf %260, %264 : vector<13x13xf32>
    %c0_i32_210 = arith.constant 0 : i32
    %266 = arith.addi %0, %c0_i32_210 : i32
    %c0_211 = arith.constant 0 : index
    %c3_212 = arith.constant 3 : index
    %267 = arith.index_cast %266 : i32 to index
    %c2_213 = arith.constant 2 : index
    %268 = vector.load %arg2[%c0_211, %c3_212, %267, %c2_213] : memref<1x4x16x16xf32, #tpu.memory_space<vmem>>, vector<1x1x13x13xf32>
    %269 = vector.shape_cast %268 : vector<1x1x13x13xf32> to vector<13x13xf32>
    %270 = arith.addf %265, %269 : vector<13x13xf32>
    %c0_i32_214 = arith.constant 0 : i32
    %271 = arith.addi %0, %c0_i32_214 : i32
    %c0_215 = arith.constant 0 : index
    %c3_216 = arith.constant 3 : index
    %272 = arith.index_cast %271 : i32 to index
    %c3_217 = arith.constant 3 : index
    %273 = vector.load %arg2[%c0_215, %c3_216, %272, %c3_217] : memref<1x4x16x16xf32, #tpu.memory_space<vmem>>, vector<1x1x13x13xf32>
    %274 = vector.shape_cast %273 : vector<1x1x13x13xf32> to vector<13x13xf32>
    %275 = arith.addf %270, %274 : vector<13x13xf32>
    %c1_i32_218 = arith.constant 1 : i32
    %276 = arith.addi %0, %c1_i32_218 : i32
    %c0_219 = arith.constant 0 : index
    %c3_220 = arith.constant 3 : index
    %277 = arith.index_cast %276 : i32 to index
    %c0_221 = arith.constant 0 : index
    %278 = vector.load %arg2[%c0_219, %c3_220, %277, %c0_221] : memref<1x4x16x16xf32, #tpu.memory_space<vmem>>, vector<1x1x13x13xf32>
    %279 = vector.shape_cast %278 : vector<1x1x13x13xf32> to vector<13x13xf32>
    %280 = arith.addf %275, %279 : vector<13x13xf32>
    %c1_i32_222 = arith.constant 1 : i32
    %281 = arith.addi %0, %c1_i32_222 : i32
    %c0_223 = arith.constant 0 : index
    %c3_224 = arith.constant 3 : index
    %282 = arith.index_cast %281 : i32 to index
    %c1_225 = arith.constant 1 : index
    %283 = vector.load %arg2[%c0_223, %c3_224, %282, %c1_225] : memref<1x4x16x16xf32, #tpu.memory_space<vmem>>, vector<1x1x13x13xf32>
    %284 = vector.shape_cast %283 : vector<1x1x13x13xf32> to vector<13x13xf32>
    %285 = arith.addf %280, %284 : vector<13x13xf32>
    %c1_i32_226 = arith.constant 1 : i32
    %286 = arith.addi %0, %c1_i32_226 : i32
    %c0_227 = arith.constant 0 : index
    %c3_228 = arith.constant 3 : index
    %287 = arith.index_cast %286 : i32 to index
    %c2_229 = arith.constant 2 : index
    %288 = vector.load %arg2[%c0_227, %c3_228, %287, %c2_229] : memref<1x4x16x16xf32, #tpu.memory_space<vmem>>, vector<1x1x13x13xf32>
    %289 = vector.shape_cast %288 : vector<1x1x13x13xf32> to vector<13x13xf32>
    %290 = arith.addf %285, %289 : vector<13x13xf32>
    %c1_i32_230 = arith.constant 1 : i32
    %291 = arith.addi %0, %c1_i32_230 : i32
    %c0_231 = arith.constant 0 : index
    %c3_232 = arith.constant 3 : index
    %292 = arith.index_cast %291 : i32 to index
    %c3_233 = arith.constant 3 : index
    %293 = vector.load %arg2[%c0_231, %c3_232, %292, %c3_233] : memref<1x4x16x16xf32, #tpu.memory_space<vmem>>, vector<1x1x13x13xf32>
    %294 = vector.shape_cast %293 : vector<1x1x13x13xf32> to vector<13x13xf32>
    %295 = arith.addf %290, %294 : vector<13x13xf32>
    %c2_i32_234 = arith.constant 2 : i32
    %296 = arith.addi %0, %c2_i32_234 : i32
    %c0_235 = arith.constant 0 : index
    %c3_236 = arith.constant 3 : index
    %297 = arith.index_cast %296 : i32 to index
    %c0_237 = arith.constant 0 : index
    %298 = vector.load %arg2[%c0_235, %c3_236, %297, %c0_237] : memref<1x4x16x16xf32, #tpu.memory_space<vmem>>, vector<1x1x13x13xf32>
    %299 = vector.shape_cast %298 : vector<1x1x13x13xf32> to vector<13x13xf32>
    %300 = arith.addf %295, %299 : vector<13x13xf32>
    %c2_i32_238 = arith.constant 2 : i32
    %301 = arith.addi %0, %c2_i32_238 : i32
    %c0_239 = arith.constant 0 : index
    %c3_240 = arith.constant 3 : index
    %302 = arith.index_cast %301 : i32 to index
    %c1_241 = arith.constant 1 : index
    %303 = vector.load %arg2[%c0_239, %c3_240, %302, %c1_241] : memref<1x4x16x16xf32, #tpu.memory_space<vmem>>, vector<1x1x13x13xf32>
    %304 = vector.shape_cast %303 : vector<1x1x13x13xf32> to vector<13x13xf32>
    %305 = arith.addf %300, %304 : vector<13x13xf32>
    %c2_i32_242 = arith.constant 2 : i32
    %306 = arith.addi %0, %c2_i32_242 : i32
    %c0_243 = arith.constant 0 : index
    %c3_244 = arith.constant 3 : index
    %307 = arith.index_cast %306 : i32 to index
    %c2_245 = arith.constant 2 : index
    %308 = vector.load %arg2[%c0_243, %c3_244, %307, %c2_245] : memref<1x4x16x16xf32, #tpu.memory_space<vmem>>, vector<1x1x13x13xf32>
    %309 = vector.shape_cast %308 : vector<1x1x13x13xf32> to vector<13x13xf32>
    %310 = arith.addf %305, %309 : vector<13x13xf32>
    %c2_i32_246 = arith.constant 2 : i32
    %311 = arith.addi %0, %c2_i32_246 : i32
    %c0_247 = arith.constant 0 : index
    %c3_248 = arith.constant 3 : index
    %312 = arith.index_cast %311 : i32 to index
    %c3_249 = arith.constant 3 : index
    %313 = vector.load %arg2[%c0_247, %c3_248, %312, %c3_249] : memref<1x4x16x16xf32, #tpu.memory_space<vmem>>, vector<1x1x13x13xf32>
    %314 = vector.shape_cast %313 : vector<1x1x13x13xf32> to vector<13x13xf32>
    %315 = arith.addf %310, %314 : vector<13x13xf32>
    %c3_i32_250 = arith.constant 3 : i32
    %316 = arith.addi %0, %c3_i32_250 : i32
    %c0_251 = arith.constant 0 : index
    %c3_252 = arith.constant 3 : index
    %317 = arith.index_cast %316 : i32 to index
    %c0_253 = arith.constant 0 : index
    %318 = vector.load %arg2[%c0_251, %c3_252, %317, %c0_253] : memref<1x4x16x16xf32, #tpu.memory_space<vmem>>, vector<1x1x13x13xf32>
    %319 = vector.shape_cast %318 : vector<1x1x13x13xf32> to vector<13x13xf32>
    %320 = arith.addf %315, %319 : vector<13x13xf32>
    %c3_i32_254 = arith.constant 3 : i32
    %321 = arith.addi %0, %c3_i32_254 : i32
    %c0_255 = arith.constant 0 : index
    %c3_256 = arith.constant 3 : index
    %322 = arith.index_cast %321 : i32 to index
    %c1_257 = arith.constant 1 : index
    %323 = vector.load %arg2[%c0_255, %c3_256, %322, %c1_257] : memref<1x4x16x16xf32, #tpu.memory_space<vmem>>, vector<1x1x13x13xf32>
    %324 = vector.shape_cast %323 : vector<1x1x13x13xf32> to vector<13x13xf32>
    %325 = arith.addf %320, %324 : vector<13x13xf32>
    %c3_i32_258 = arith.constant 3 : i32
    %326 = arith.addi %0, %c3_i32_258 : i32
    %c0_259 = arith.constant 0 : index
    %c3_260 = arith.constant 3 : index
    %327 = arith.index_cast %326 : i32 to index
    %c2_261 = arith.constant 2 : index
    %328 = vector.load %arg2[%c0_259, %c3_260, %327, %c2_261] : memref<1x4x16x16xf32, #tpu.memory_space<vmem>>, vector<1x1x13x13xf32>
    %329 = vector.shape_cast %328 : vector<1x1x13x13xf32> to vector<13x13xf32>
    %330 = arith.addf %325, %329 : vector<13x13xf32>
    %c3_i32_262 = arith.constant 3 : i32
    %331 = arith.addi %0, %c3_i32_262 : i32
    %c0_263 = arith.constant 0 : index
    %c3_264 = arith.constant 3 : index
    %332 = arith.index_cast %331 : i32 to index
    %c3_265 = arith.constant 3 : index
    %333 = vector.load %arg2[%c0_263, %c3_264, %332, %c3_265] : memref<1x4x16x16xf32, #tpu.memory_space<vmem>>, vector<1x1x13x13xf32>
    %334 = vector.shape_cast %333 : vector<1x1x13x13xf32> to vector<13x13xf32>
    %335 = arith.addf %330, %334 : vector<13x13xf32>
    %c0_266 = arith.constant 0 : index
    %c0_267 = arith.constant 0 : index
    %336 = vector.load %arg4[%c0_266, %c0_267] : memref<13x13xf32, #tpu.memory_space<vmem>>, vector<13x13xf32>
    %337 = arith.addf %336, %335 : vector<13x13xf32>
    %c0_268 = arith.constant 0 : index
    %c0_269 = arith.constant 0 : index
    %338 = vector.load %arg4[%c0_268, %c0_269] : memref<13x13xf32, #tpu.memory_space<vmem>>, vector<13x13xf32>
    tpu.vector_store %arg4[%c0_268, %c0_269], %337 {strides = array<i32>} : memref<13x13xf32, #tpu.memory_space<vmem>>, vector<13x13xf32>,
    %c0_270 = arith.constant 0 : index
    %c0_271 = arith.constant 0 : index
    %339 = vector.load %arg4[%c0_270, %c0_271] : memref<13x13xf32, #tpu.memory_space<vmem>>, vector<13x13xf32>
    %cst_272 = arith.constant 1.562500e-02 : f32
    %340 = vector.broadcast %cst_272 : f32 to vector<13x13xf32>
    %341 = arith.mulf %339, %340 : vector<13x13xf32>
    %c0_i32_273 = arith.constant 0 : i32
    %342 = arith.addi %0, %c0_i32_273 : i32
    %c0_274 = arith.constant 0 : index
    %c0_275 = arith.constant 0 : index
    %343 = arith.index_cast %342 : i32 to index
    %c0_276 = arith.constant 0 : index
    %344 = vector.load %arg2[%c0_274, %c0_275, %343, %c0_276] : memref<1x4x16x16xf32, #tpu.memory_space<vmem>>, vector<1x1x13x13xf32>
    %345 = vector.shape_cast %344 : vector<1x1x13x13xf32> to vector<13x13xf32>
    %346 = arith.subf %345, %341 : vector<13x13xf32>
    %c0_277 = arith.constant 0 : index
    %c0_278 = arith.constant 0 : index
    %c0_279 = arith.constant 0 : index
    %c0_280 = arith.constant 0 : index
    %347 = vector.load %arg3[%c0_277, %c0_278, %c0_279, %c0_280] : memref<1x64x13x13xf32, #tpu.memory_space<vmem>>, vector<1x1x13x13xf32>
    %348 = vector.shape_cast %347 : vector<1x1x13x13xf32> to vector<13x13xf32>
    %349 = vector.shape_cast %346 : vector<13x13xf32> to vector<1x1x13x13xf32>
    tpu.vector_store %arg3[%c0_277, %c0_278, %c0_279, %c0_280], %349 {strides = array<i32>} : memref<1x64x13x13xf32, #tpu.memory_space<vmem>>, vector<1x1x13x13xf32>,
    %c0_i32_281 = arith.constant 0 : i32
    %350 = arith.addi %0, %c0_i32_281 : i32
    %c0_282 = arith.constant 0 : index
    %c0_283 = arith.constant 0 : index
    %351 = arith.index_cast %350 : i32 to index
    %c1_284 = arith.constant 1 : index
    %352 = vector.load %arg2[%c0_282, %c0_283, %351, %c1_284] : memref<1x4x16x16xf32, #tpu.memory_space<vmem>>, vector<1x1x13x13xf32>
    %353 = vector.shape_cast %352 : vector<1x1x13x13xf32> to vector<13x13xf32>
    %354 = arith.subf %353, %341 : vector<13x13xf32>
    %c0_285 = arith.constant 0 : index
    %c1_286 = arith.constant 1 : index
    %c0_287 = arith.constant 0 : index
    %c0_288 = arith.constant 0 : index
    %355 = vector.load %arg3[%c0_285, %c1_286, %c0_287, %c0_288] : memref<1x64x13x13xf32, #tpu.memory_space<vmem>>, vector<1x1x13x13xf32>
    %356 = vector.shape_cast %355 : vector<1x1x13x13xf32> to vector<13x13xf32>
    %357 = vector.shape_cast %354 : vector<13x13xf32> to vector<1x1x13x13xf32>
    tpu.vector_store %arg3[%c0_285, %c1_286, %c0_287, %c0_288], %357 {strides = array<i32>} : memref<1x64x13x13xf32, #tpu.memory_space<vmem>>, vector<1x1x13x13xf32>,
    %c0_i32_289 = arith.constant 0 : i32
    %358 = arith.addi %0, %c0_i32_289 : i32
    %c0_290 = arith.constant 0 : index
    %c0_291 = arith.constant 0 : index
    %359 = arith.index_cast %358 : i32 to index
    %c2_292 = arith.constant 2 : index
    %360 = vector.load %arg2[%c0_290, %c0_291, %359, %c2_292] : memref<1x4x16x16xf32, #tpu.memory_space<vmem>>, vector<1x1x13x13xf32>
    %361 = vector.shape_cast %360 : vector<1x1x13x13xf32> to vector<13x13xf32>
    %362 = arith.subf %361, %341 : vector<13x13xf32>
    %c0_293 = arith.constant 0 : index
    %c2_294 = arith.constant 2 : index
    %c0_295 = arith.constant 0 : index
    %c0_296 = arith.constant 0 : index
    %363 = vector.load %arg3[%c0_293, %c2_294, %c0_295, %c0_296] : memref<1x64x13x13xf32, #tpu.memory_space<vmem>>, vector<1x1x13x13xf32>
    %364 = vector.shape_cast %363 : vector<1x1x13x13xf32> to vector<13x13xf32>
    %365 = vector.shape_cast %362 : vector<13x13xf32> to vector<1x1x13x13xf32>
    tpu.vector_store %arg3[%c0_293, %c2_294, %c0_295, %c0_296], %365 {strides = array<i32>} : memref<1x64x13x13xf32, #tpu.memory_space<vmem>>, vector<1x1x13x13xf32>,
    %c0_i32_297 = arith.constant 0 : i32
    %366 = arith.addi %0, %c0_i32_297 : i32
    %c0_298 = arith.constant 0 : index
    %c0_299 = arith.constant 0 : index
    %367 = arith.index_cast %366 : i32 to index
    %c3_300 = arith.constant 3 : index
    %368 = vector.load %arg2[%c0_298, %c0_299, %367, %c3_300] : memref<1x4x16x16xf32, #tpu.memory_space<vmem>>, vector<1x1x13x13xf32>
    %369 = vector.shape_cast %368 : vector<1x1x13x13xf32> to vector<13x13xf32>
    %370 = arith.subf %369, %341 : vector<13x13xf32>
    %c0_301 = arith.constant 0 : index
    %c3_302 = arith.constant 3 : index
    %c0_303 = arith.constant 0 : index
    %c0_304 = arith.constant 0 : index
    %371 = vector.load %arg3[%c0_301, %c3_302, %c0_303, %c0_304] : memref<1x64x13x13xf32, #tpu.memory_space<vmem>>, vector<1x1x13x13xf32>
    %372 = vector.shape_cast %371 : vector<1x1x13x13xf32> to vector<13x13xf32>
    %373 = vector.shape_cast %370 : vector<13x13xf32> to vector<1x1x13x13xf32>
    tpu.vector_store %arg3[%c0_301, %c3_302, %c0_303, %c0_304], %373 {strides = array<i32>} : memref<1x64x13x13xf32, #tpu.memory_space<vmem>>, vector<1x1x13x13xf32>,
    %c1_i32_305 = arith.constant 1 : i32
    %374 = arith.addi %0, %c1_i32_305 : i32
    %c0_306 = arith.constant 0 : index
    %c0_307 = arith.constant 0 : index
    %375 = arith.index_cast %374 : i32 to index
    %c0_308 = arith.constant 0 : index
    %376 = vector.load %arg2[%c0_306, %c0_307, %375, %c0_308] : memref<1x4x16x16xf32, #tpu.memory_space<vmem>>, vector<1x1x13x13xf32>
    %377 = vector.shape_cast %376 : vector<1x1x13x13xf32> to vector<13x13xf32>
    %378 = arith.subf %377, %341 : vector<13x13xf32>
    %c0_309 = arith.constant 0 : index
    %c4 = arith.constant 4 : index
    %c0_310 = arith.constant 0 : index
    %c0_311 = arith.constant 0 : index
    %379 = vector.load %arg3[%c0_309, %c4, %c0_310, %c0_311] : memref<1x64x13x13xf32, #tpu.memory_space<vmem>>, vector<1x1x13x13xf32>
    %380 = vector.shape_cast %379 : vector<1x1x13x13xf32> to vector<13x13xf32>
    %381 = vector.shape_cast %378 : vector<13x13xf32> to vector<1x1x13x13xf32>
    tpu.vector_store %arg3[%c0_309, %c4, %c0_310, %c0_311], %381 {strides = array<i32>} : memref<1x64x13x13xf32, #tpu.memory_space<vmem>>, vector<1x1x13x13xf32>,
    %c1_i32_312 = arith.constant 1 : i32
    %382 = arith.addi %0, %c1_i32_312 : i32
    %c0_313 = arith.constant 0 : index
    %c0_314 = arith.constant 0 : index
    %383 = arith.index_cast %382 : i32 to index
    %c1_315 = arith.constant 1 : index
    %384 = vector.load %arg2[%c0_313, %c0_314, %383, %c1_315] : memref<1x4x16x16xf32, #tpu.memory_space<vmem>>, vector<1x1x13x13xf32>
    %385 = vector.shape_cast %384 : vector<1x1x13x13xf32> to vector<13x13xf32>
    %386 = arith.subf %385, %341 : vector<13x13xf32>
    %c0_316 = arith.constant 0 : index
    %c5 = arith.constant 5 : index
    %c0_317 = arith.constant 0 : index
    %c0_318 = arith.constant 0 : index
    %387 = vector.load %arg3[%c0_316, %c5, %c0_317, %c0_318] : memref<1x64x13x13xf32, #tpu.memory_space<vmem>>, vector<1x1x13x13xf32>
    %388 = vector.shape_cast %387 : vector<1x1x13x13xf32> to vector<13x13xf32>
    %389 = vector.shape_cast %386 : vector<13x13xf32> to vector<1x1x13x13xf32>
    tpu.vector_store %arg3[%c0_316, %c5, %c0_317, %c0_318], %389 {strides = array<i32>} : memref<1x64x13x13xf32, #tpu.memory_space<vmem>>, vector<1x1x13x13xf32>,
    %c1_i32_319 = arith.constant 1 : i32
    %390 = arith.addi %0, %c1_i32_319 : i32
    %c0_320 = arith.constant 0 : index
    %c0_321 = arith.constant 0 : index
    %391 = arith.index_cast %390 : i32 to index
    %c2_322 = arith.constant 2 : index
    %392 = vector.load %arg2[%c0_320, %c0_321, %391, %c2_322] : memref<1x4x16x16xf32, #tpu.memory_space<vmem>>, vector<1x1x13x13xf32>
    %393 = vector.shape_cast %392 : vector<1x1x13x13xf32> to vector<13x13xf32>
    %394 = arith.subf %393, %341 : vector<13x13xf32>
    %c0_323 = arith.constant 0 : index
    %c6 = arith.constant 6 : index
    %c0_324 = arith.constant 0 : index
    %c0_325 = arith.constant 0 : index
    %395 = vector.load %arg3[%c0_323, %c6, %c0_324, %c0_325] : memref<1x64x13x13xf32, #tpu.memory_space<vmem>>, vector<1x1x13x13xf32>
    %396 = vector.shape_cast %395 : vector<1x1x13x13xf32> to vector<13x13xf32>
    %397 = vector.shape_cast %394 : vector<13x13xf32> to vector<1x1x13x13xf32>
    tpu.vector_store %arg3[%c0_323, %c6, %c0_324, %c0_325], %397 {strides = array<i32>} : memref<1x64x13x13xf32, #tpu.memory_space<vmem>>, vector<1x1x13x13xf32>,
    %c1_i32_326 = arith.constant 1 : i32
    %398 = arith.addi %0, %c1_i32_326 : i32
    %c0_327 = arith.constant 0 : index
    %c0_328 = arith.constant 0 : index
    %399 = arith.index_cast %398 : i32 to index
    %c3_329 = arith.constant 3 : index
    %400 = vector.load %arg2[%c0_327, %c0_328, %399, %c3_329] : memref<1x4x16x16xf32, #tpu.memory_space<vmem>>, vector<1x1x13x13xf32>
    %401 = vector.shape_cast %400 : vector<1x1x13x13xf32> to vector<13x13xf32>
    %402 = arith.subf %401, %341 : vector<13x13xf32>
    %c0_330 = arith.constant 0 : index
    %c7 = arith.constant 7 : index
    %c0_331 = arith.constant 0 : index
    %c0_332 = arith.constant 0 : index
    %403 = vector.load %arg3[%c0_330, %c7, %c0_331, %c0_332] : memref<1x64x13x13xf32, #tpu.memory_space<vmem>>, vector<1x1x13x13xf32>
    %404 = vector.shape_cast %403 : vector<1x1x13x13xf32> to vector<13x13xf32>
    %405 = vector.shape_cast %402 : vector<13x13xf32> to vector<1x1x13x13xf32>
    tpu.vector_store %arg3[%c0_330, %c7, %c0_331, %c0_332], %405 {strides = array<i32>} : memref<1x64x13x13xf32, #tpu.memory_space<vmem>>, vector<1x1x13x13xf32>,
    %c2_i32_333 = arith.constant 2 : i32
    %406 = arith.addi %0, %c2_i32_333 : i32
    %c0_334 = arith.constant 0 : index
    %c0_335 = arith.constant 0 : index
    %407 = arith.index_cast %406 : i32 to index
    %c0_336 = arith.constant 0 : index
    %408 = vector.load %arg2[%c0_334, %c0_335, %407, %c0_336] : memref<1x4x16x16xf32, #tpu.memory_space<vmem>>, vector<1x1x13x13xf32>
    %409 = vector.shape_cast %408 : vector<1x1x13x13xf32> to vector<13x13xf32>
    %410 = arith.subf %409, %341 : vector<13x13xf32>
    %c0_337 = arith.constant 0 : index
    %c8 = arith.constant 8 : index
    %c0_338 = arith.constant 0 : index
    %c0_339 = arith.constant 0 : index
    %411 = vector.load %arg3[%c0_337, %c8, %c0_338, %c0_339] : memref<1x64x13x13xf32, #tpu.memory_space<vmem>>, vector<1x1x13x13xf32>
    %412 = vector.shape_cast %411 : vector<1x1x13x13xf32> to vector<13x13xf32>
    %413 = vector.shape_cast %410 : vector<13x13xf32> to vector<1x1x13x13xf32>
    tpu.vector_store %arg3[%c0_337, %c8, %c0_338, %c0_339], %413 {strides = array<i32>} : memref<1x64x13x13xf32, #tpu.memory_space<vmem>>, vector<1x1x13x13xf32>,
    %c2_i32_340 = arith.constant 2 : i32
    %414 = arith.addi %0, %c2_i32_340 : i32
    %c0_341 = arith.constant 0 : index
    %c0_342 = arith.constant 0 : index
    %415 = arith.index_cast %414 : i32 to index
    %c1_343 = arith.constant 1 : index
    %416 = vector.load %arg2[%c0_341, %c0_342, %415, %c1_343] : memref<1x4x16x16xf32, #tpu.memory_space<vmem>>, vector<1x1x13x13xf32>
    %417 = vector.shape_cast %416 : vector<1x1x13x13xf32> to vector<13x13xf32>
    %418 = arith.subf %417, %341 : vector<13x13xf32>
    %c0_344 = arith.constant 0 : index
    %c9 = arith.constant 9 : index
    %c0_345 = arith.constant 0 : index
    %c0_346 = arith.constant 0 : index
    %419 = vector.load %arg3[%c0_344, %c9, %c0_345, %c0_346] : memref<1x64x13x13xf32, #tpu.memory_space<vmem>>, vector<1x1x13x13xf32>
    %420 = vector.shape_cast %419 : vector<1x1x13x13xf32> to vector<13x13xf32>
    %421 = vector.shape_cast %418 : vector<13x13xf32> to vector<1x1x13x13xf32>
    tpu.vector_store %arg3[%c0_344, %c9, %c0_345, %c0_346], %421 {strides = array<i32>} : memref<1x64x13x13xf32, #tpu.memory_space<vmem>>, vector<1x1x13x13xf32>,
    %c2_i32_347 = arith.constant 2 : i32
    %422 = arith.addi %0, %c2_i32_347 : i32
    %c0_348 = arith.constant 0 : index
    %c0_349 = arith.constant 0 : index
    %423 = arith.index_cast %422 : i32 to index
    %c2_350 = arith.constant 2 : index
    %424 = vector.load %arg2[%c0_348, %c0_349, %423, %c2_350] : memref<1x4x16x16xf32, #tpu.memory_space<vmem>>, vector<1x1x13x13xf32>
    %425 = vector.shape_cast %424 : vector<1x1x13x13xf32> to vector<13x13xf32>
    %426 = arith.subf %425, %341 : vector<13x13xf32>
    %c0_351 = arith.constant 0 : index
    %c10 = arith.constant 10 : index
    %c0_352 = arith.constant 0 : index
    %c0_353 = arith.constant 0 : index
    %427 = vector.load %arg3[%c0_351, %c10, %c0_352, %c0_353] : memref<1x64x13x13xf32, #tpu.memory_space<vmem>>, vector<1x1x13x13xf32>
    %428 = vector.shape_cast %427 : vector<1x1x13x13xf32> to vector<13x13xf32>
    %429 = vector.shape_cast %426 : vector<13x13xf32> to vector<1x1x13x13xf32>
    tpu.vector_store %arg3[%c0_351, %c10, %c0_352, %c0_353], %429 {strides = array<i32>} : memref<1x64x13x13xf32, #tpu.memory_space<vmem>>, vector<1x1x13x13xf32>,
    %c2_i32_354 = arith.constant 2 : i32
    %430 = arith.addi %0, %c2_i32_354 : i32
    %c0_355 = arith.constant 0 : index
    %c0_356 = arith.constant 0 : index
    %431 = arith.index_cast %430 : i32 to index
    %c3_357 = arith.constant 3 : index
    %432 = vector.load %arg2[%c0_355, %c0_356, %431, %c3_357] : memref<1x4x16x16xf32, #tpu.memory_space<vmem>>, vector<1x1x13x13xf32>
    %433 = vector.shape_cast %432 : vector<1x1x13x13xf32> to vector<13x13xf32>
    %434 = arith.subf %433, %341 : vector<13x13xf32>
    %c0_358 = arith.constant 0 : index
    %c11 = arith.constant 11 : index
    %c0_359 = arith.constant 0 : index
    %c0_360 = arith.constant 0 : index
    %435 = vector.load %arg3[%c0_358, %c11, %c0_359, %c0_360] : memref<1x64x13x13xf32, #tpu.memory_space<vmem>>, vector<1x1x13x13xf32>
    %436 = vector.shape_cast %435 : vector<1x1x13x13xf32> to vector<13x13xf32>
    %437 = vector.shape_cast %434 : vector<13x13xf32> to vector<1x1x13x13xf32>
    tpu.vector_store %arg3[%c0_358, %c11, %c0_359, %c0_360], %437 {strides = array<i32>} : memref<1x64x13x13xf32, #tpu.memory_space<vmem>>, vector<1x1x13x13xf32>,
    %c3_i32_361 = arith.constant 3 : i32
    %438 = arith.addi %0, %c3_i32_361 : i32
    %c0_362 = arith.constant 0 : index
    %c0_363 = arith.constant 0 : index
    %439 = arith.index_cast %438 : i32 to index
    %c0_364 = arith.constant 0 : index
    %440 = vector.load %arg2[%c0_362, %c0_363, %439, %c0_364] : memref<1x4x16x16xf32, #tpu.memory_space<vmem>>, vector<1x1x13x13xf32>
    %441 = vector.shape_cast %440 : vector<1x1x13x13xf32> to vector<13x13xf32>
    %442 = arith.subf %441, %341 : vector<13x13xf32>
    %c0_365 = arith.constant 0 : index
    %c12 = arith.constant 12 : index
    %c0_366 = arith.constant 0 : index
    %c0_367 = arith.constant 0 : index
    %443 = vector.load %arg3[%c0_365, %c12, %c0_366, %c0_367] : memref<1x64x13x13xf32, #tpu.memory_space<vmem>>, vector<1x1x13x13xf32>
    %444 = vector.shape_cast %443 : vector<1x1x13x13xf32> to vector<13x13xf32>
    %445 = vector.shape_cast %442 : vector<13x13xf32> to vector<1x1x13x13xf32>
    tpu.vector_store %arg3[%c0_365, %c12, %c0_366, %c0_367], %445 {strides = array<i32>} : memref<1x64x13x13xf32, #tpu.memory_space<vmem>>, vector<1x1x13x13xf32>,
    %c3_i32_368 = arith.constant 3 : i32
    %446 = arith.addi %0, %c3_i32_368 : i32
    %c0_369 = arith.constant 0 : index
    %c0_370 = arith.constant 0 : index
    %447 = arith.index_cast %446 : i32 to index
    %c1_371 = arith.constant 1 : index
    %448 = vector.load %arg2[%c0_369, %c0_370, %447, %c1_371] : memref<1x4x16x16xf32, #tpu.memory_space<vmem>>, vector<1x1x13x13xf32>
    %449 = vector.shape_cast %448 : vector<1x1x13x13xf32> to vector<13x13xf32>
    %450 = arith.subf %449, %341 : vector<13x13xf32>
    %c0_372 = arith.constant 0 : index
    %c13 = arith.constant 13 : index
    %c0_373 = arith.constant 0 : index
    %c0_374 = arith.constant 0 : index
    %451 = vector.load %arg3[%c0_372, %c13, %c0_373, %c0_374] : memref<1x64x13x13xf32, #tpu.memory_space<vmem>>, vector<1x1x13x13xf32>
    %452 = vector.shape_cast %451 : vector<1x1x13x13xf32> to vector<13x13xf32>
    %453 = vector.shape_cast %450 : vector<13x13xf32> to vector<1x1x13x13xf32>
    tpu.vector_store %arg3[%c0_372, %c13, %c0_373, %c0_374], %453 {strides = array<i32>} : memref<1x64x13x13xf32, #tpu.memory_space<vmem>>, vector<1x1x13x13xf32>,
    %c3_i32_375 = arith.constant 3 : i32
    %454 = arith.addi %0, %c3_i32_375 : i32
    %c0_376 = arith.constant 0 : index
    %c0_377 = arith.constant 0 : index
    %455 = arith.index_cast %454 : i32 to index
    %c2_378 = arith.constant 2 : index
    %456 = vector.load %arg2[%c0_376, %c0_377, %455, %c2_378] : memref<1x4x16x16xf32, #tpu.memory_space<vmem>>, vector<1x1x13x13xf32>
    %457 = vector.shape_cast %456 : vector<1x1x13x13xf32> to vector<13x13xf32>
    %458 = arith.subf %457, %341 : vector<13x13xf32>
    %c0_379 = arith.constant 0 : index
    %c14 = arith.constant 14 : index
    %c0_380 = arith.constant 0 : index
    %c0_381 = arith.constant 0 : index
    %459 = vector.load %arg3[%c0_379, %c14, %c0_380, %c0_381] : memref<1x64x13x13xf32, #tpu.memory_space<vmem>>, vector<1x1x13x13xf32>
    %460 = vector.shape_cast %459 : vector<1x1x13x13xf32> to vector<13x13xf32>
    %461 = vector.shape_cast %458 : vector<13x13xf32> to vector<1x1x13x13xf32>
    tpu.vector_store %arg3[%c0_379, %c14, %c0_380, %c0_381], %461 {strides = array<i32>} : memref<1x64x13x13xf32, #tpu.memory_space<vmem>>, vector<1x1x13x13xf32>,
    %c3_i32_382 = arith.constant 3 : i32
    %462 = arith.addi %0, %c3_i32_382 : i32
    %c0_383 = arith.constant 0 : index
    %c0_384 = arith.constant 0 : index
    %463 = arith.index_cast %462 : i32 to index
    %c3_385 = arith.constant 3 : index
    %464 = vector.load %arg2[%c0_383, %c0_384, %463, %c3_385] : memref<1x4x16x16xf32, #tpu.memory_space<vmem>>, vector<1x1x13x13xf32>
    %465 = vector.shape_cast %464 : vector<1x1x13x13xf32> to vector<13x13xf32>
    %466 = arith.subf %465, %341 : vector<13x13xf32>
    %c0_386 = arith.constant 0 : index
    %c15 = arith.constant 15 : index
    %c0_387 = arith.constant 0 : index
    %c0_388 = arith.constant 0 : index
    %467 = vector.load %arg3[%c0_386, %c15, %c0_387, %c0_388] : memref<1x64x13x13xf32, #tpu.memory_space<vmem>>, vector<1x1x13x13xf32>
    %468 = vector.shape_cast %467 : vector<1x1x13x13xf32> to vector<13x13xf32>
    %469 = vector.shape_cast %466 : vector<13x13xf32> to vector<1x1x13x13xf32>
    tpu.vector_store %arg3[%c0_386, %c15, %c0_387, %c0_388], %469 {strides = array<i32>} : memref<1x64x13x13xf32, #tpu.memory_space<vmem>>, vector<1x1x13x13xf32>,
    %c0_i32_389 = arith.constant 0 : i32
    %470 = arith.addi %0, %c0_i32_389 : i32
    %c0_390 = arith.constant 0 : index
    %c1_391 = arith.constant 1 : index
    %471 = arith.index_cast %470 : i32 to index
    %c0_392 = arith.constant 0 : index
    %472 = vector.load %arg2[%c0_390, %c1_391, %471, %c0_392] : memref<1x4x16x16xf32, #tpu.memory_space<vmem>>, vector<1x1x13x13xf32>
    %473 = vector.shape_cast %472 : vector<1x1x13x13xf32> to vector<13x13xf32>
    %474 = arith.subf %473, %341 : vector<13x13xf32>
    %c0_393 = arith.constant 0 : index
    %c16 = arith.constant 16 : index
    %c0_394 = arith.constant 0 : index
    %c0_395 = arith.constant 0 : index
    %475 = vector.load %arg3[%c0_393, %c16, %c0_394, %c0_395] : memref<1x64x13x13xf32, #tpu.memory_space<vmem>>, vector<1x1x13x13xf32>
    %476 = vector.shape_cast %475 : vector<1x1x13x13xf32> to vector<13x13xf32>
    %477 = vector.shape_cast %474 : vector<13x13xf32> to vector<1x1x13x13xf32>
    tpu.vector_store %arg3[%c0_393, %c16, %c0_394, %c0_395], %477 {strides = array<i32>} : memref<1x64x13x13xf32, #tpu.memory_space<vmem>>, vector<1x1x13x13xf32>,
    %c0_i32_396 = arith.constant 0 : i32
    %478 = arith.addi %0, %c0_i32_396 : i32
    %c0_397 = arith.constant 0 : index
    %c1_398 = arith.constant 1 : index
    %479 = arith.index_cast %478 : i32 to index
    %c1_399 = arith.constant 1 : index
    %480 = vector.load %arg2[%c0_397, %c1_398, %479, %c1_399] : memref<1x4x16x16xf32, #tpu.memory_space<vmem>>, vector<1x1x13x13xf32>
    %481 = vector.shape_cast %480 : vector<1x1x13x13xf32> to vector<13x13xf32>
    %482 = arith.subf %481, %341 : vector<13x13xf32>
    %c0_400 = arith.constant 0 : index
    %c17 = arith.constant 17 : index
    %c0_401 = arith.constant 0 : index
    %c0_402 = arith.constant 0 : index
    %483 = vector.load %arg3[%c0_400, %c17, %c0_401, %c0_402] : memref<1x64x13x13xf32, #tpu.memory_space<vmem>>, vector<1x1x13x13xf32>
    %484 = vector.shape_cast %483 : vector<1x1x13x13xf32> to vector<13x13xf32>
    %485 = vector.shape_cast %482 : vector<13x13xf32> to vector<1x1x13x13xf32>
    tpu.vector_store %arg3[%c0_400, %c17, %c0_401, %c0_402], %485 {strides = array<i32>} : memref<1x64x13x13xf32, #tpu.memory_space<vmem>>, vector<1x1x13x13xf32>,
    %c0_i32_403 = arith.constant 0 : i32
    %486 = arith.addi %0, %c0_i32_403 : i32
    %c0_404 = arith.constant 0 : index
    %c1_405 = arith.constant 1 : index
    %487 = arith.index_cast %486 : i32 to index
    %c2_406 = arith.constant 2 : index
    %488 = vector.load %arg2[%c0_404, %c1_405, %487, %c2_406] : memref<1x4x16x16xf32, #tpu.memory_space<vmem>>, vector<1x1x13x13xf32>
    %489 = vector.shape_cast %488 : vector<1x1x13x13xf32> to vector<13x13xf32>
    %490 = arith.subf %489, %341 : vector<13x13xf32>
    %c0_407 = arith.constant 0 : index
    %c18 = arith.constant 18 : index
    %c0_408 = arith.constant 0 : index
    %c0_409 = arith.constant 0 : index
    %491 = vector.load %arg3[%c0_407, %c18, %c0_408, %c0_409] : memref<1x64x13x13xf32, #tpu.memory_space<vmem>>, vector<1x1x13x13xf32>
    %492 = vector.shape_cast %491 : vector<1x1x13x13xf32> to vector<13x13xf32>
    %493 = vector.shape_cast %490 : vector<13x13xf32> to vector<1x1x13x13xf32>
    tpu.vector_store %arg3[%c0_407, %c18, %c0_408, %c0_409], %493 {strides = array<i32>} : memref<1x64x13x13xf32, #tpu.memory_space<vmem>>, vector<1x1x13x13xf32>,
    %c0_i32_410 = arith.constant 0 : i32
    %494 = arith.addi %0, %c0_i32_410 : i32
    %c0_411 = arith.constant 0 : index
    %c1_412 = arith.constant 1 : index
    %495 = arith.index_cast %494 : i32 to index
    %c3_413 = arith.constant 3 : index
    %496 = vector.load %arg2[%c0_411, %c1_412, %495, %c3_413] : memref<1x4x16x16xf32, #tpu.memory_space<vmem>>, vector<1x1x13x13xf32>
    %497 = vector.shape_cast %496 : vector<1x1x13x13xf32> to vector<13x13xf32>
    %498 = arith.subf %497, %341 : vector<13x13xf32>
    %c0_414 = arith.constant 0 : index
    %c19 = arith.constant 19 : index
    %c0_415 = arith.constant 0 : index
    %c0_416 = arith.constant 0 : index
    %499 = vector.load %arg3[%c0_414, %c19, %c0_415, %c0_416] : memref<1x64x13x13xf32, #tpu.memory_space<vmem>>, vector<1x1x13x13xf32>
    %500 = vector.shape_cast %499 : vector<1x1x13x13xf32> to vector<13x13xf32>
    %501 = vector.shape_cast %498 : vector<13x13xf32> to vector<1x1x13x13xf32>
    tpu.vector_store %arg3[%c0_414, %c19, %c0_415, %c0_416], %501 {strides = array<i32>} : memref<1x64x13x13xf32, #tpu.memory_space<vmem>>, vector<1x1x13x13xf32>,
    %c1_i32_417 = arith.constant 1 : i32
    %502 = arith.addi %0, %c1_i32_417 : i32
    %c0_418 = arith.constant 0 : index
    %c1_419 = arith.constant 1 : index
    %503 = arith.index_cast %502 : i32 to index
    %c0_420 = arith.constant 0 : index
    %504 = vector.load %arg2[%c0_418, %c1_419, %503, %c0_420] : memref<1x4x16x16xf32, #tpu.memory_space<vmem>>, vector<1x1x13x13xf32>
    %505 = vector.shape_cast %504 : vector<1x1x13x13xf32> to vector<13x13xf32>
    %506 = arith.subf %505, %341 : vector<13x13xf32>
    %c0_421 = arith.constant 0 : index
    %c20 = arith.constant 20 : index
    %c0_422 = arith.constant 0 : index
    %c0_423 = arith.constant 0 : index
    %507 = vector.load %arg3[%c0_421, %c20, %c0_422, %c0_423] : memref<1x64x13x13xf32, #tpu.memory_space<vmem>>, vector<1x1x13x13xf32>
    %508 = vector.shape_cast %507 : vector<1x1x13x13xf32> to vector<13x13xf32>
    %509 = vector.shape_cast %506 : vector<13x13xf32> to vector<1x1x13x13xf32>
    tpu.vector_store %arg3[%c0_421, %c20, %c0_422, %c0_423], %509 {strides = array<i32>} : memref<1x64x13x13xf32, #tpu.memory_space<vmem>>, vector<1x1x13x13xf32>,
    %c1_i32_424 = arith.constant 1 : i32
    %510 = arith.addi %0, %c1_i32_424 : i32
    %c0_425 = arith.constant 0 : index
    %c1_426 = arith.constant 1 : index
    %511 = arith.index_cast %510 : i32 to index
    %c1_427 = arith.constant 1 : index
    %512 = vector.load %arg2[%c0_425, %c1_426, %511, %c1_427] : memref<1x4x16x16xf32, #tpu.memory_space<vmem>>, vector<1x1x13x13xf32>
    %513 = vector.shape_cast %512 : vector<1x1x13x13xf32> to vector<13x13xf32>
    %514 = arith.subf %513, %341 : vector<13x13xf32>
    %c0_428 = arith.constant 0 : index
    %c21 = arith.constant 21 : index
    %c0_429 = arith.constant 0 : index
    %c0_430 = arith.constant 0 : index
    %515 = vector.load %arg3[%c0_428, %c21, %c0_429, %c0_430] : memref<1x64x13x13xf32, #tpu.memory_space<vmem>>, vector<1x1x13x13xf32>
    %516 = vector.shape_cast %515 : vector<1x1x13x13xf32> to vector<13x13xf32>
    %517 = vector.shape_cast %514 : vector<13x13xf32> to vector<1x1x13x13xf32>
    tpu.vector_store %arg3[%c0_428, %c21, %c0_429, %c0_430], %517 {strides = array<i32>} : memref<1x64x13x13xf32, #tpu.memory_space<vmem>>, vector<1x1x13x13xf32>,
    %c1_i32_431 = arith.constant 1 : i32
    %518 = arith.addi %0, %c1_i32_431 : i32
    %c0_432 = arith.constant 0 : index
    %c1_433 = arith.constant 1 : index
    %519 = arith.index_cast %518 : i32 to index
    %c2_434 = arith.constant 2 : index
    %520 = vector.load %arg2[%c0_432, %c1_433, %519, %c2_434] : memref<1x4x16x16xf32, #tpu.memory_space<vmem>>, vector<1x1x13x13xf32>
    %521 = vector.shape_cast %520 : vector<1x1x13x13xf32> to vector<13x13xf32>
    %522 = arith.subf %521, %341 : vector<13x13xf32>
    %c0_435 = arith.constant 0 : index
    %c22 = arith.constant 22 : index
    %c0_436 = arith.constant 0 : index
    %c0_437 = arith.constant 0 : index
    %523 = vector.load %arg3[%c0_435, %c22, %c0_436, %c0_437] : memref<1x64x13x13xf32, #tpu.memory_space<vmem>>, vector<1x1x13x13xf32>
    %524 = vector.shape_cast %523 : vector<1x1x13x13xf32> to vector<13x13xf32>
    %525 = vector.shape_cast %522 : vector<13x13xf32> to vector<1x1x13x13xf32>
    tpu.vector_store %arg3[%c0_435, %c22, %c0_436, %c0_437], %525 {strides = array<i32>} : memref<1x64x13x13xf32, #tpu.memory_space<vmem>>, vector<1x1x13x13xf32>,
    %c1_i32_438 = arith.constant 1 : i32
    %526 = arith.addi %0, %c1_i32_438 : i32
    %c0_439 = arith.constant 0 : index
    %c1_440 = arith.constant 1 : index
    %527 = arith.index_cast %526 : i32 to index
    %c3_441 = arith.constant 3 : index
    %528 = vector.load %arg2[%c0_439, %c1_440, %527, %c3_441] : memref<1x4x16x16xf32, #tpu.memory_space<vmem>>, vector<1x1x13x13xf32>
    %529 = vector.shape_cast %528 : vector<1x1x13x13xf32> to vector<13x13xf32>
    %530 = arith.subf %529, %341 : vector<13x13xf32>
    %c0_442 = arith.constant 0 : index
    %c23 = arith.constant 23 : index
    %c0_443 = arith.constant 0 : index
    %c0_444 = arith.constant 0 : index
    %531 = vector.load %arg3[%c0_442, %c23, %c0_443, %c0_444] : memref<1x64x13x13xf32, #tpu.memory_space<vmem>>, vector<1x1x13x13xf32>
    %532 = vector.shape_cast %531 : vector<1x1x13x13xf32> to vector<13x13xf32>
    %533 = vector.shape_cast %530 : vector<13x13xf32> to vector<1x1x13x13xf32>
    tpu.vector_store %arg3[%c0_442, %c23, %c0_443, %c0_444], %533 {strides = array<i32>} : memref<1x64x13x13xf32, #tpu.memory_space<vmem>>, vector<1x1x13x13xf32>,
    %c2_i32_445 = arith.constant 2 : i32
    %534 = arith.addi %0, %c2_i32_445 : i32
    %c0_446 = arith.constant 0 : index
    %c1_447 = arith.constant 1 : index
    %535 = arith.index_cast %534 : i32 to index
    %c0_448 = arith.constant 0 : index
    %536 = vector.load %arg2[%c0_446, %c1_447, %535, %c0_448] : memref<1x4x16x16xf32, #tpu.memory_space<vmem>>, vector<1x1x13x13xf32>
    %537 = vector.shape_cast %536 : vector<1x1x13x13xf32> to vector<13x13xf32>
    %538 = arith.subf %537, %341 : vector<13x13xf32>
    %c0_449 = arith.constant 0 : index
    %c24 = arith.constant 24 : index
    %c0_450 = arith.constant 0 : index
    %c0_451 = arith.constant 0 : index
    %539 = vector.load %arg3[%c0_449, %c24, %c0_450, %c0_451] : memref<1x64x13x13xf32, #tpu.memory_space<vmem>>, vector<1x1x13x13xf32>
    %540 = vector.shape_cast %539 : vector<1x1x13x13xf32> to vector<13x13xf32>
    %541 = vector.shape_cast %538 : vector<13x13xf32> to vector<1x1x13x13xf32>
    tpu.vector_store %arg3[%c0_449, %c24, %c0_450, %c0_451], %541 {strides = array<i32>} : memref<1x64x13x13xf32, #tpu.memory_space<vmem>>, vector<1x1x13x13xf32>,
    %c2_i32_452 = arith.constant 2 : i32
    %542 = arith.addi %0, %c2_i32_452 : i32
    %c0_453 = arith.constant 0 : index
    %c1_454 = arith.constant 1 : index
    %543 = arith.index_cast %542 : i32 to index
    %c1_455 = arith.constant 1 : index
    %544 = vector.load %arg2[%c0_453, %c1_454, %543, %c1_455] : memref<1x4x16x16xf32, #tpu.memory_space<vmem>>, vector<1x1x13x13xf32>
    %545 = vector.shape_cast %544 : vector<1x1x13x13xf32> to vector<13x13xf32>
    %546 = arith.subf %545, %341 : vector<13x13xf32>
    %c0_456 = arith.constant 0 : index
    %c25 = arith.constant 25 : index
    %c0_457 = arith.constant 0 : index
    %c0_458 = arith.constant 0 : index
    %547 = vector.load %arg3[%c0_456, %c25, %c0_457, %c0_458] : memref<1x64x13x13xf32, #tpu.memory_space<vmem>>, vector<1x1x13x13xf32>
    %548 = vector.shape_cast %547 : vector<1x1x13x13xf32> to vector<13x13xf32>
    %549 = vector.shape_cast %546 : vector<13x13xf32> to vector<1x1x13x13xf32>
    tpu.vector_store %arg3[%c0_456, %c25, %c0_457, %c0_458], %549 {strides = array<i32>} : memref<1x64x13x13xf32, #tpu.memory_space<vmem>>, vector<1x1x13x13xf32>,
    %c2_i32_459 = arith.constant 2 : i32
    %550 = arith.addi %0, %c2_i32_459 : i32
    %c0_460 = arith.constant 0 : index
    %c1_461 = arith.constant 1 : index
    %551 = arith.index_cast %550 : i32 to index
    %c2_462 = arith.constant 2 : index
    %552 = vector.load %arg2[%c0_460, %c1_461, %551, %c2_462] : memref<1x4x16x16xf32, #tpu.memory_space<vmem>>, vector<1x1x13x13xf32>
    %553 = vector.shape_cast %552 : vector<1x1x13x13xf32> to vector<13x13xf32>
    %554 = arith.subf %553, %341 : vector<13x13xf32>
    %c0_463 = arith.constant 0 : index
    %c26 = arith.constant 26 : index
    %c0_464 = arith.constant 0 : index
    %c0_465 = arith.constant 0 : index
    %555 = vector.load %arg3[%c0_463, %c26, %c0_464, %c0_465] : memref<1x64x13x13xf32, #tpu.memory_space<vmem>>, vector<1x1x13x13xf32>
    %556 = vector.shape_cast %555 : vector<1x1x13x13xf32> to vector<13x13xf32>
    %557 = vector.shape_cast %554 : vector<13x13xf32> to vector<1x1x13x13xf32>
    tpu.vector_store %arg3[%c0_463, %c26, %c0_464, %c0_465], %557 {strides = array<i32>} : memref<1x64x13x13xf32, #tpu.memory_space<vmem>>, vector<1x1x13x13xf32>,
    %c2_i32_466 = arith.constant 2 : i32
    %558 = arith.addi %0, %c2_i32_466 : i32
    %c0_467 = arith.constant 0 : index
    %c1_468 = arith.constant 1 : index
    %559 = arith.index_cast %558 : i32 to index
    %c3_469 = arith.constant 3 : index
    %560 = vector.load %arg2[%c0_467, %c1_468, %559, %c3_469] : memref<1x4x16x16xf32, #tpu.memory_space<vmem>>, vector<1x1x13x13xf32>
    %561 = vector.shape_cast %560 : vector<1x1x13x13xf32> to vector<13x13xf32>
    %562 = arith.subf %561, %341 : vector<13x13xf32>
    %c0_470 = arith.constant 0 : index
    %c27 = arith.constant 27 : index
    %c0_471 = arith.constant 0 : index
    %c0_472 = arith.constant 0 : index
    %563 = vector.load %arg3[%c0_470, %c27, %c0_471, %c0_472] : memref<1x64x13x13xf32, #tpu.memory_space<vmem>>, vector<1x1x13x13xf32>
    %564 = vector.shape_cast %563 : vector<1x1x13x13xf32> to vector<13x13xf32>
    %565 = vector.shape_cast %562 : vector<13x13xf32> to vector<1x1x13x13xf32>
    tpu.vector_store %arg3[%c0_470, %c27, %c0_471, %c0_472], %565 {strides = array<i32>} : memref<1x64x13x13xf32, #tpu.memory_space<vmem>>, vector<1x1x13x13xf32>,
    %c3_i32_473 = arith.constant 3 : i32
    %566 = arith.addi %0, %c3_i32_473 : i32
    %c0_474 = arith.constant 0 : index
    %c1_475 = arith.constant 1 : index
    %567 = arith.index_cast %566 : i32 to index
    %c0_476 = arith.constant 0 : index
    %568 = vector.load %arg2[%c0_474, %c1_475, %567, %c0_476] : memref<1x4x16x16xf32, #tpu.memory_space<vmem>>, vector<1x1x13x13xf32>
    %569 = vector.shape_cast %568 : vector<1x1x13x13xf32> to vector<13x13xf32>
    %570 = arith.subf %569, %341 : vector<13x13xf32>
    %c0_477 = arith.constant 0 : index
    %c28 = arith.constant 28 : index
    %c0_478 = arith.constant 0 : index
    %c0_479 = arith.constant 0 : index
    %571 = vector.load %arg3[%c0_477, %c28, %c0_478, %c0_479] : memref<1x64x13x13xf32, #tpu.memory_space<vmem>>, vector<1x1x13x13xf32>
    %572 = vector.shape_cast %571 : vector<1x1x13x13xf32> to vector<13x13xf32>
    %573 = vector.shape_cast %570 : vector<13x13xf32> to vector<1x1x13x13xf32>
    tpu.vector_store %arg3[%c0_477, %c28, %c0_478, %c0_479], %573 {strides = array<i32>} : memref<1x64x13x13xf32, #tpu.memory_space<vmem>>, vector<1x1x13x13xf32>,
    %c3_i32_480 = arith.constant 3 : i32
    %574 = arith.addi %0, %c3_i32_480 : i32
    %c0_481 = arith.constant 0 : index
    %c1_482 = arith.constant 1 : index
    %575 = arith.index_cast %574 : i32 to index
    %c1_483 = arith.constant 1 : index
    %576 = vector.load %arg2[%c0_481, %c1_482, %575, %c1_483] : memref<1x4x16x16xf32, #tpu.memory_space<vmem>>, vector<1x1x13x13xf32>
    %577 = vector.shape_cast %576 : vector<1x1x13x13xf32> to vector<13x13xf32>
    %578 = arith.subf %577, %341 : vector<13x13xf32>
    %c0_484 = arith.constant 0 : index
    %c29 = arith.constant 29 : index
    %c0_485 = arith.constant 0 : index
    %c0_486 = arith.constant 0 : index
    %579 = vector.load %arg3[%c0_484, %c29, %c0_485, %c0_486] : memref<1x64x13x13xf32, #tpu.memory_space<vmem>>, vector<1x1x13x13xf32>
    %580 = vector.shape_cast %579 : vector<1x1x13x13xf32> to vector<13x13xf32>
    %581 = vector.shape_cast %578 : vector<13x13xf32> to vector<1x1x13x13xf32>
    tpu.vector_store %arg3[%c0_484, %c29, %c0_485, %c0_486], %581 {strides = array<i32>} : memref<1x64x13x13xf32, #tpu.memory_space<vmem>>, vector<1x1x13x13xf32>,
    %c3_i32_487 = arith.constant 3 : i32
    %582 = arith.addi %0, %c3_i32_487 : i32
    %c0_488 = arith.constant 0 : index
    %c1_489 = arith.constant 1 : index
    %583 = arith.index_cast %582 : i32 to index
    %c2_490 = arith.constant 2 : index
    %584 = vector.load %arg2[%c0_488, %c1_489, %583, %c2_490] : memref<1x4x16x16xf32, #tpu.memory_space<vmem>>, vector<1x1x13x13xf32>
    %585 = vector.shape_cast %584 : vector<1x1x13x13xf32> to vector<13x13xf32>
    %586 = arith.subf %585, %341 : vector<13x13xf32>
    %c0_491 = arith.constant 0 : index
    %c30 = arith.constant 30 : index
    %c0_492 = arith.constant 0 : index
    %c0_493 = arith.constant 0 : index
    %587 = vector.load %arg3[%c0_491, %c30, %c0_492, %c0_493] : memref<1x64x13x13xf32, #tpu.memory_space<vmem>>, vector<1x1x13x13xf32>
    %588 = vector.shape_cast %587 : vector<1x1x13x13xf32> to vector<13x13xf32>
    %589 = vector.shape_cast %586 : vector<13x13xf32> to vector<1x1x13x13xf32>
    tpu.vector_store %arg3[%c0_491, %c30, %c0_492, %c0_493], %589 {strides = array<i32>} : memref<1x64x13x13xf32, #tpu.memory_space<vmem>>, vector<1x1x13x13xf32>,
    %c3_i32_494 = arith.constant 3 : i32
    %590 = arith.addi %0, %c3_i32_494 : i32
    %c0_495 = arith.constant 0 : index
    %c1_496 = arith.constant 1 : index
    %591 = arith.index_cast %590 : i32 to index
    %c3_497 = arith.constant 3 : index
    %592 = vector.load %arg2[%c0_495, %c1_496, %591, %c3_497] : memref<1x4x16x16xf32, #tpu.memory_space<vmem>>, vector<1x1x13x13xf32>
    %593 = vector.shape_cast %592 : vector<1x1x13x13xf32> to vector<13x13xf32>
    %594 = arith.subf %593, %341 : vector<13x13xf32>
    %c0_498 = arith.constant 0 : index
    %c31 = arith.constant 31 : index
    %c0_499 = arith.constant 0 : index
    %c0_500 = arith.constant 0 : index
    %595 = vector.load %arg3[%c0_498, %c31, %c0_499, %c0_500] : memref<1x64x13x13xf32, #tpu.memory_space<vmem>>, vector<1x1x13x13xf32>
    %596 = vector.shape_cast %595 : vector<1x1x13x13xf32> to vector<13x13xf32>
    %597 = vector.shape_cast %594 : vector<13x13xf32> to vector<1x1x13x13xf32>
    tpu.vector_store %arg3[%c0_498, %c31, %c0_499, %c0_500], %597 {strides = array<i32>} : memref<1x64x13x13xf32, #tpu.memory_space<vmem>>, vector<1x1x13x13xf32>,
    %c0_i32_501 = arith.constant 0 : i32
    %598 = arith.addi %0, %c0_i32_501 : i32
    %c0_502 = arith.constant 0 : index
    %c2_503 = arith.constant 2 : index
    %599 = arith.index_cast %598 : i32 to index
    %c0_504 = arith.constant 0 : index
    %600 = vector.load %arg2[%c0_502, %c2_503, %599, %c0_504] : memref<1x4x16x16xf32, #tpu.memory_space<vmem>>, vector<1x1x13x13xf32>
    %601 = vector.shape_cast %600 : vector<1x1x13x13xf32> to vector<13x13xf32>
    %602 = arith.subf %601, %341 : vector<13x13xf32>
    %c0_505 = arith.constant 0 : index
    %c32 = arith.constant 32 : index
    %c0_506 = arith.constant 0 : index
    %c0_507 = arith.constant 0 : index
    %603 = vector.load %arg3[%c0_505, %c32, %c0_506, %c0_507] : memref<1x64x13x13xf32, #tpu.memory_space<vmem>>, vector<1x1x13x13xf32>
    %604 = vector.shape_cast %603 : vector<1x1x13x13xf32> to vector<13x13xf32>
    %605 = vector.shape_cast %602 : vector<13x13xf32> to vector<1x1x13x13xf32>
    tpu.vector_store %arg3[%c0_505, %c32, %c0_506, %c0_507], %605 {strides = array<i32>} : memref<1x64x13x13xf32, #tpu.memory_space<vmem>>, vector<1x1x13x13xf32>,
    %c0_i32_508 = arith.constant 0 : i32
    %606 = arith.addi %0, %c0_i32_508 : i32
    %c0_509 = arith.constant 0 : index
    %c2_510 = arith.constant 2 : index
    %607 = arith.index_cast %606 : i32 to index
    %c1_511 = arith.constant 1 : index
    %608 = vector.load %arg2[%c0_509, %c2_510, %607, %c1_511] : memref<1x4x16x16xf32, #tpu.memory_space<vmem>>, vector<1x1x13x13xf32>
    %609 = vector.shape_cast %608 : vector<1x1x13x13xf32> to vector<13x13xf32>
    %610 = arith.subf %609, %341 : vector<13x13xf32>
    %c0_512 = arith.constant 0 : index
    %c33 = arith.constant 33 : index
    %c0_513 = arith.constant 0 : index
    %c0_514 = arith.constant 0 : index
    %611 = vector.load %arg3[%c0_512, %c33, %c0_513, %c0_514] : memref<1x64x13x13xf32, #tpu.memory_space<vmem>>, vector<1x1x13x13xf32>
    %612 = vector.shape_cast %611 : vector<1x1x13x13xf32> to vector<13x13xf32>
    %613 = vector.shape_cast %610 : vector<13x13xf32> to vector<1x1x13x13xf32>
    tpu.vector_store %arg3[%c0_512, %c33, %c0_513, %c0_514], %613 {strides = array<i32>} : memref<1x64x13x13xf32, #tpu.memory_space<vmem>>, vector<1x1x13x13xf32>,
    %c0_i32_515 = arith.constant 0 : i32
    %614 = arith.addi %0, %c0_i32_515 : i32
    %c0_516 = arith.constant 0 : index
    %c2_517 = arith.constant 2 : index
    %615 = arith.index_cast %614 : i32 to index
    %c2_518 = arith.constant 2 : index
    %616 = vector.load %arg2[%c0_516, %c2_517, %615, %c2_518] : memref<1x4x16x16xf32, #tpu.memory_space<vmem>>, vector<1x1x13x13xf32>
    %617 = vector.shape_cast %616 : vector<1x1x13x13xf32> to vector<13x13xf32>
    %618 = arith.subf %617, %341 : vector<13x13xf32>
    %c0_519 = arith.constant 0 : index
    %c34 = arith.constant 34 : index
    %c0_520 = arith.constant 0 : index
    %c0_521 = arith.constant 0 : index
    %619 = vector.load %arg3[%c0_519, %c34, %c0_520, %c0_521] : memref<1x64x13x13xf32, #tpu.memory_space<vmem>>, vector<1x1x13x13xf32>
    %620 = vector.shape_cast %619 : vector<1x1x13x13xf32> to vector<13x13xf32>
    %621 = vector.shape_cast %618 : vector<13x13xf32> to vector<1x1x13x13xf32>
    tpu.vector_store %arg3[%c0_519, %c34, %c0_520, %c0_521], %621 {strides = array<i32>} : memref<1x64x13x13xf32, #tpu.memory_space<vmem>>, vector<1x1x13x13xf32>,
    %c0_i32_522 = arith.constant 0 : i32
    %622 = arith.addi %0, %c0_i32_522 : i32
    %c0_523 = arith.constant 0 : index
    %c2_524 = arith.constant 2 : index
    %623 = arith.index_cast %622 : i32 to index
    %c3_525 = arith.constant 3 : index
    %624 = vector.load %arg2[%c0_523, %c2_524, %623, %c3_525] : memref<1x4x16x16xf32, #tpu.memory_space<vmem>>, vector<1x1x13x13xf32>
    %625 = vector.shape_cast %624 : vector<1x1x13x13xf32> to vector<13x13xf32>
    %626 = arith.subf %625, %341 : vector<13x13xf32>
    %c0_526 = arith.constant 0 : index
    %c35 = arith.constant 35 : index
    %c0_527 = arith.constant 0 : index
    %c0_528 = arith.constant 0 : index
    %627 = vector.load %arg3[%c0_526, %c35, %c0_527, %c0_528] : memref<1x64x13x13xf32, #tpu.memory_space<vmem>>, vector<1x1x13x13xf32>
    %628 = vector.shape_cast %627 : vector<1x1x13x13xf32> to vector<13x13xf32>
    %629 = vector.shape_cast %626 : vector<13x13xf32> to vector<1x1x13x13xf32>
    tpu.vector_store %arg3[%c0_526, %c35, %c0_527, %c0_528], %629 {strides = array<i32>} : memref<1x64x13x13xf32, #tpu.memory_space<vmem>>, vector<1x1x13x13xf32>,
    %c1_i32_529 = arith.constant 1 : i32
    %630 = arith.addi %0, %c1_i32_529 : i32
    %c0_530 = arith.constant 0 : index
    %c2_531 = arith.constant 2 : index
    %631 = arith.index_cast %630 : i32 to index
    %c0_532 = arith.constant 0 : index
    %632 = vector.load %arg2[%c0_530, %c2_531, %631, %c0_532] : memref<1x4x16x16xf32, #tpu.memory_space<vmem>>, vector<1x1x13x13xf32>
    %633 = vector.shape_cast %632 : vector<1x1x13x13xf32> to vector<13x13xf32>
    %634 = arith.subf %633, %341 : vector<13x13xf32>
    %c0_533 = arith.constant 0 : index
    %c36 = arith.constant 36 : index
    %c0_534 = arith.constant 0 : index
    %c0_535 = arith.constant 0 : index
    %635 = vector.load %arg3[%c0_533, %c36, %c0_534, %c0_535] : memref<1x64x13x13xf32, #tpu.memory_space<vmem>>, vector<1x1x13x13xf32>
    %636 = vector.shape_cast %635 : vector<1x1x13x13xf32> to vector<13x13xf32>
    %637 = vector.shape_cast %634 : vector<13x13xf32> to vector<1x1x13x13xf32>
    tpu.vector_store %arg3[%c0_533, %c36, %c0_534, %c0_535], %637 {strides = array<i32>} : memref<1x64x13x13xf32, #tpu.memory_space<vmem>>, vector<1x1x13x13xf32>,
    %c1_i32_536 = arith.constant 1 : i32
    %638 = arith.addi %0, %c1_i32_536 : i32
    %c0_537 = arith.constant 0 : index
    %c2_538 = arith.constant 2 : index
    %639 = arith.index_cast %638 : i32 to index
    %c1_539 = arith.constant 1 : index
    %640 = vector.load %arg2[%c0_537, %c2_538, %639, %c1_539] : memref<1x4x16x16xf32, #tpu.memory_space<vmem>>, vector<1x1x13x13xf32>
    %641 = vector.shape_cast %640 : vector<1x1x13x13xf32> to vector<13x13xf32>
    %642 = arith.subf %641, %341 : vector<13x13xf32>
    %c0_540 = arith.constant 0 : index
    %c37 = arith.constant 37 : index
    %c0_541 = arith.constant 0 : index
    %c0_542 = arith.constant 0 : index
    %643 = vector.load %arg3[%c0_540, %c37, %c0_541, %c0_542] : memref<1x64x13x13xf32, #tpu.memory_space<vmem>>, vector<1x1x13x13xf32>
    %644 = vector.shape_cast %643 : vector<1x1x13x13xf32> to vector<13x13xf32>
    %645 = vector.shape_cast %642 : vector<13x13xf32> to vector<1x1x13x13xf32>
    tpu.vector_store %arg3[%c0_540, %c37, %c0_541, %c0_542], %645 {strides = array<i32>} : memref<1x64x13x13xf32, #tpu.memory_space<vmem>>, vector<1x1x13x13xf32>,
    %c1_i32_543 = arith.constant 1 : i32
    %646 = arith.addi %0, %c1_i32_543 : i32
    %c0_544 = arith.constant 0 : index
    %c2_545 = arith.constant 2 : index
    %647 = arith.index_cast %646 : i32 to index
    %c2_546 = arith.constant 2 : index
    %648 = vector.load %arg2[%c0_544, %c2_545, %647, %c2_546] : memref<1x4x16x16xf32, #tpu.memory_space<vmem>>, vector<1x1x13x13xf32>
    %649 = vector.shape_cast %648 : vector<1x1x13x13xf32> to vector<13x13xf32>
    %650 = arith.subf %649, %341 : vector<13x13xf32>
    %c0_547 = arith.constant 0 : index
    %c38 = arith.constant 38 : index
    %c0_548 = arith.constant 0 : index
    %c0_549 = arith.constant 0 : index
    %651 = vector.load %arg3[%c0_547, %c38, %c0_548, %c0_549] : memref<1x64x13x13xf32, #tpu.memory_space<vmem>>, vector<1x1x13x13xf32>
    %652 = vector.shape_cast %651 : vector<1x1x13x13xf32> to vector<13x13xf32>
    %653 = vector.shape_cast %650 : vector<13x13xf32> to vector<1x1x13x13xf32>
    tpu.vector_store %arg3[%c0_547, %c38, %c0_548, %c0_549], %653 {strides = array<i32>} : memref<1x64x13x13xf32, #tpu.memory_space<vmem>>, vector<1x1x13x13xf32>,
    %c1_i32_550 = arith.constant 1 : i32
    %654 = arith.addi %0, %c1_i32_550 : i32
    %c0_551 = arith.constant 0 : index
    %c2_552 = arith.constant 2 : index
    %655 = arith.index_cast %654 : i32 to index
    %c3_553 = arith.constant 3 : index
    %656 = vector.load %arg2[%c0_551, %c2_552, %655, %c3_553] : memref<1x4x16x16xf32, #tpu.memory_space<vmem>>, vector<1x1x13x13xf32>
    %657 = vector.shape_cast %656 : vector<1x1x13x13xf32> to vector<13x13xf32>
    %658 = arith.subf %657, %341 : vector<13x13xf32>
    %c0_554 = arith.constant 0 : index
    %c39 = arith.constant 39 : index
    %c0_555 = arith.constant 0 : index
    %c0_556 = arith.constant 0 : index
    %659 = vector.load %arg3[%c0_554, %c39, %c0_555, %c0_556] : memref<1x64x13x13xf32, #tpu.memory_space<vmem>>, vector<1x1x13x13xf32>
    %660 = vector.shape_cast %659 : vector<1x1x13x13xf32> to vector<13x13xf32>
    %661 = vector.shape_cast %658 : vector<13x13xf32> to vector<1x1x13x13xf32>
    tpu.vector_store %arg3[%c0_554, %c39, %c0_555, %c0_556], %661 {strides = array<i32>} : memref<1x64x13x13xf32, #tpu.memory_space<vmem>>, vector<1x1x13x13xf32>,
    %c2_i32_557 = arith.constant 2 : i32
    %662 = arith.addi %0, %c2_i32_557 : i32
    %c0_558 = arith.constant 0 : index
    %c2_559 = arith.constant 2 : index
    %663 = arith.index_cast %662 : i32 to index
    %c0_560 = arith.constant 0 : index
    %664 = vector.load %arg2[%c0_558, %c2_559, %663, %c0_560] : memref<1x4x16x16xf32, #tpu.memory_space<vmem>>, vector<1x1x13x13xf32>
    %665 = vector.shape_cast %664 : vector<1x1x13x13xf32> to vector<13x13xf32>
    %666 = arith.subf %665, %341 : vector<13x13xf32>
    %c0_561 = arith.constant 0 : index
    %c40 = arith.constant 40 : index
    %c0_562 = arith.constant 0 : index
    %c0_563 = arith.constant 0 : index
    %667 = vector.load %arg3[%c0_561, %c40, %c0_562, %c0_563] : memref<1x64x13x13xf32, #tpu.memory_space<vmem>>, vector<1x1x13x13xf32>
    %668 = vector.shape_cast %667 : vector<1x1x13x13xf32> to vector<13x13xf32>
    %669 = vector.shape_cast %666 : vector<13x13xf32> to vector<1x1x13x13xf32>
    tpu.vector_store %arg3[%c0_561, %c40, %c0_562, %c0_563], %669 {strides = array<i32>} : memref<1x64x13x13xf32, #tpu.memory_space<vmem>>, vector<1x1x13x13xf32>,
    %c2_i32_564 = arith.constant 2 : i32
    %670 = arith.addi %0, %c2_i32_564 : i32
    %c0_565 = arith.constant 0 : index
    %c2_566 = arith.constant 2 : index
    %671 = arith.index_cast %670 : i32 to index
    %c1_567 = arith.constant 1 : index
    %672 = vector.load %arg2[%c0_565, %c2_566, %671, %c1_567] : memref<1x4x16x16xf32, #tpu.memory_space<vmem>>, vector<1x1x13x13xf32>
    %673 = vector.shape_cast %672 : vector<1x1x13x13xf32> to vector<13x13xf32>
    %674 = arith.subf %673, %341 : vector<13x13xf32>
    %c0_568 = arith.constant 0 : index
    %c41 = arith.constant 41 : index
    %c0_569 = arith.constant 0 : index
    %c0_570 = arith.constant 0 : index
    %675 = vector.load %arg3[%c0_568, %c41, %c0_569, %c0_570] : memref<1x64x13x13xf32, #tpu.memory_space<vmem>>, vector<1x1x13x13xf32>
    %676 = vector.shape_cast %675 : vector<1x1x13x13xf32> to vector<13x13xf32>
    %677 = vector.shape_cast %674 : vector<13x13xf32> to vector<1x1x13x13xf32>
    tpu.vector_store %arg3[%c0_568, %c41, %c0_569, %c0_570], %677 {strides = array<i32>} : memref<1x64x13x13xf32, #tpu.memory_space<vmem>>, vector<1x1x13x13xf32>,
    %c2_i32_571 = arith.constant 2 : i32
    %678 = arith.addi %0, %c2_i32_571 : i32
    %c0_572 = arith.constant 0 : index
    %c2_573 = arith.constant 2 : index
    %679 = arith.index_cast %678 : i32 to index
    %c2_574 = arith.constant 2 : index
    %680 = vector.load %arg2[%c0_572, %c2_573, %679, %c2_574] : memref<1x4x16x16xf32, #tpu.memory_space<vmem>>, vector<1x1x13x13xf32>
    %681 = vector.shape_cast %680 : vector<1x1x13x13xf32> to vector<13x13xf32>
    %682 = arith.subf %681, %341 : vector<13x13xf32>
    %c0_575 = arith.constant 0 : index
    %c42 = arith.constant 42 : index
    %c0_576 = arith.constant 0 : index
    %c0_577 = arith.constant 0 : index
    %683 = vector.load %arg3[%c0_575, %c42, %c0_576, %c0_577] : memref<1x64x13x13xf32, #tpu.memory_space<vmem>>, vector<1x1x13x13xf32>
    %684 = vector.shape_cast %683 : vector<1x1x13x13xf32> to vector<13x13xf32>
    %685 = vector.shape_cast %682 : vector<13x13xf32> to vector<1x1x13x13xf32>
    tpu.vector_store %arg3[%c0_575, %c42, %c0_576, %c0_577], %685 {strides = array<i32>} : memref<1x64x13x13xf32, #tpu.memory_space<vmem>>, vector<1x1x13x13xf32>,
    %c2_i32_578 = arith.constant 2 : i32
    %686 = arith.addi %0, %c2_i32_578 : i32
    %c0_579 = arith.constant 0 : index
    %c2_580 = arith.constant 2 : index
    %687 = arith.index_cast %686 : i32 to index
    %c3_581 = arith.constant 3 : index
    %688 = vector.load %arg2[%c0_579, %c2_580, %687, %c3_581] : memref<1x4x16x16xf32, #tpu.memory_space<vmem>>, vector<1x1x13x13xf32>
    %689 = vector.shape_cast %688 : vector<1x1x13x13xf32> to vector<13x13xf32>
    %690 = arith.subf %689, %341 : vector<13x13xf32>
    %c0_582 = arith.constant 0 : index
    %c43 = arith.constant 43 : index
    %c0_583 = arith.constant 0 : index
    %c0_584 = arith.constant 0 : index
    %691 = vector.load %arg3[%c0_582, %c43, %c0_583, %c0_584] : memref<1x64x13x13xf32, #tpu.memory_space<vmem>>, vector<1x1x13x13xf32>
    %692 = vector.shape_cast %691 : vector<1x1x13x13xf32> to vector<13x13xf32>
    %693 = vector.shape_cast %690 : vector<13x13xf32> to vector<1x1x13x13xf32>
    tpu.vector_store %arg3[%c0_582, %c43, %c0_583, %c0_584], %693 {strides = array<i32>} : memref<1x64x13x13xf32, #tpu.memory_space<vmem>>, vector<1x1x13x13xf32>,
    %c3_i32_585 = arith.constant 3 : i32
    %694 = arith.addi %0, %c3_i32_585 : i32
    %c0_586 = arith.constant 0 : index
    %c2_587 = arith.constant 2 : index
    %695 = arith.index_cast %694 : i32 to index
    %c0_588 = arith.constant 0 : index
    %696 = vector.load %arg2[%c0_586, %c2_587, %695, %c0_588] : memref<1x4x16x16xf32, #tpu.memory_space<vmem>>, vector<1x1x13x13xf32>
    %697 = vector.shape_cast %696 : vector<1x1x13x13xf32> to vector<13x13xf32>
    %698 = arith.subf %697, %341 : vector<13x13xf32>
    %c0_589 = arith.constant 0 : index
    %c44 = arith.constant 44 : index
    %c0_590 = arith.constant 0 : index
    %c0_591 = arith.constant 0 : index
    %699 = vector.load %arg3[%c0_589, %c44, %c0_590, %c0_591] : memref<1x64x13x13xf32, #tpu.memory_space<vmem>>, vector<1x1x13x13xf32>
    %700 = vector.shape_cast %699 : vector<1x1x13x13xf32> to vector<13x13xf32>
    %701 = vector.shape_cast %698 : vector<13x13xf32> to vector<1x1x13x13xf32>
    tpu.vector_store %arg3[%c0_589, %c44, %c0_590, %c0_591], %701 {strides = array<i32>} : memref<1x64x13x13xf32, #tpu.memory_space<vmem>>, vector<1x1x13x13xf32>,
    %c3_i32_592 = arith.constant 3 : i32
    %702 = arith.addi %0, %c3_i32_592 : i32
    %c0_593 = arith.constant 0 : index
    %c2_594 = arith.constant 2 : index
    %703 = arith.index_cast %702 : i32 to index
    %c1_595 = arith.constant 1 : index
    %704 = vector.load %arg2[%c0_593, %c2_594, %703, %c1_595] : memref<1x4x16x16xf32, #tpu.memory_space<vmem>>, vector<1x1x13x13xf32>
    %705 = vector.shape_cast %704 : vector<1x1x13x13xf32> to vector<13x13xf32>
    %706 = arith.subf %705, %341 : vector<13x13xf32>
    %c0_596 = arith.constant 0 : index
    %c45 = arith.constant 45 : index
    %c0_597 = arith.constant 0 : index
    %c0_598 = arith.constant 0 : index
    %707 = vector.load %arg3[%c0_596, %c45, %c0_597, %c0_598] : memref<1x64x13x13xf32, #tpu.memory_space<vmem>>, vector<1x1x13x13xf32>
    %708 = vector.shape_cast %707 : vector<1x1x13x13xf32> to vector<13x13xf32>
    %709 = vector.shape_cast %706 : vector<13x13xf32> to vector<1x1x13x13xf32>
    tpu.vector_store %arg3[%c0_596, %c45, %c0_597, %c0_598], %709 {strides = array<i32>} : memref<1x64x13x13xf32, #tpu.memory_space<vmem>>, vector<1x1x13x13xf32>,
    %c3_i32_599 = arith.constant 3 : i32
    %710 = arith.addi %0, %c3_i32_599 : i32
    %c0_600 = arith.constant 0 : index
    %c2_601 = arith.constant 2 : index
    %711 = arith.index_cast %710 : i32 to index
    %c2_602 = arith.constant 2 : index
    %712 = vector.load %arg2[%c0_600, %c2_601, %711, %c2_602] : memref<1x4x16x16xf32, #tpu.memory_space<vmem>>, vector<1x1x13x13xf32>
    %713 = vector.shape_cast %712 : vector<1x1x13x13xf32> to vector<13x13xf32>
    %714 = arith.subf %713, %341 : vector<13x13xf32>
    %c0_603 = arith.constant 0 : index
    %c46 = arith.constant 46 : index
    %c0_604 = arith.constant 0 : index
    %c0_605 = arith.constant 0 : index
    %715 = vector.load %arg3[%c0_603, %c46, %c0_604, %c0_605] : memref<1x64x13x13xf32, #tpu.memory_space<vmem>>, vector<1x1x13x13xf32>
    %716 = vector.shape_cast %715 : vector<1x1x13x13xf32> to vector<13x13xf32>
    %717 = vector.shape_cast %714 : vector<13x13xf32> to vector<1x1x13x13xf32>
    tpu.vector_store %arg3[%c0_603, %c46, %c0_604, %c0_605], %717 {strides = array<i32>} : memref<1x64x13x13xf32, #tpu.memory_space<vmem>>, vector<1x1x13x13xf32>,
    %c3_i32_606 = arith.constant 3 : i32
    %718 = arith.addi %0, %c3_i32_606 : i32
    %c0_607 = arith.constant 0 : index
    %c2_608 = arith.constant 2 : index
    %719 = arith.index_cast %718 : i32 to index
    %c3_609 = arith.constant 3 : index
    %720 = vector.load %arg2[%c0_607, %c2_608, %719, %c3_609] : memref<1x4x16x16xf32, #tpu.memory_space<vmem>>, vector<1x1x13x13xf32>
    %721 = vector.shape_cast %720 : vector<1x1x13x13xf32> to vector<13x13xf32>
    %722 = arith.subf %721, %341 : vector<13x13xf32>
    %c0_610 = arith.constant 0 : index
    %c47 = arith.constant 47 : index
    %c0_611 = arith.constant 0 : index
    %c0_612 = arith.constant 0 : index
    %723 = vector.load %arg3[%c0_610, %c47, %c0_611, %c0_612] : memref<1x64x13x13xf32, #tpu.memory_space<vmem>>, vector<1x1x13x13xf32>
    %724 = vector.shape_cast %723 : vector<1x1x13x13xf32> to vector<13x13xf32>
    %725 = vector.shape_cast %722 : vector<13x13xf32> to vector<1x1x13x13xf32>
    tpu.vector_store %arg3[%c0_610, %c47, %c0_611, %c0_612], %725 {strides = array<i32>} : memref<1x64x13x13xf32, #tpu.memory_space<vmem>>, vector<1x1x13x13xf32>,
    %c0_i32_613 = arith.constant 0 : i32
    %726 = arith.addi %0, %c0_i32_613 : i32
    %c0_614 = arith.constant 0 : index
    %c3_615 = arith.constant 3 : index
    %727 = arith.index_cast %726 : i32 to index
    %c0_616 = arith.constant 0 : index
    %728 = vector.load %arg2[%c0_614, %c3_615, %727, %c0_616] : memref<1x4x16x16xf32, #tpu.memory_space<vmem>>, vector<1x1x13x13xf32>
    %729 = vector.shape_cast %728 : vector<1x1x13x13xf32> to vector<13x13xf32>
    %730 = arith.subf %729, %341 : vector<13x13xf32>
    %c0_617 = arith.constant 0 : index
    %c48 = arith.constant 48 : index
    %c0_618 = arith.constant 0 : index
    %c0_619 = arith.constant 0 : index
    %731 = vector.load %arg3[%c0_617, %c48, %c0_618, %c0_619] : memref<1x64x13x13xf32, #tpu.memory_space<vmem>>, vector<1x1x13x13xf32>
    %732 = vector.shape_cast %731 : vector<1x1x13x13xf32> to vector<13x13xf32>
    %733 = vector.shape_cast %730 : vector<13x13xf32> to vector<1x1x13x13xf32>
    tpu.vector_store %arg3[%c0_617, %c48, %c0_618, %c0_619], %733 {strides = array<i32>} : memref<1x64x13x13xf32, #tpu.memory_space<vmem>>, vector<1x1x13x13xf32>,
    %c0_i32_620 = arith.constant 0 : i32
    %734 = arith.addi %0, %c0_i32_620 : i32
    %c0_621 = arith.constant 0 : index
    %c3_622 = arith.constant 3 : index
    %735 = arith.index_cast %734 : i32 to index
    %c1_623 = arith.constant 1 : index
    %736 = vector.load %arg2[%c0_621, %c3_622, %735, %c1_623] : memref<1x4x16x16xf32, #tpu.memory_space<vmem>>, vector<1x1x13x13xf32>
    %737 = vector.shape_cast %736 : vector<1x1x13x13xf32> to vector<13x13xf32>
    %738 = arith.subf %737, %341 : vector<13x13xf32>
    %c0_624 = arith.constant 0 : index
    %c49 = arith.constant 49 : index
    %c0_625 = arith.constant 0 : index
    %c0_626 = arith.constant 0 : index
    %739 = vector.load %arg3[%c0_624, %c49, %c0_625, %c0_626] : memref<1x64x13x13xf32, #tpu.memory_space<vmem>>, vector<1x1x13x13xf32>
    %740 = vector.shape_cast %739 : vector<1x1x13x13xf32> to vector<13x13xf32>
    %741 = vector.shape_cast %738 : vector<13x13xf32> to vector<1x1x13x13xf32>
    tpu.vector_store %arg3[%c0_624, %c49, %c0_625, %c0_626], %741 {strides = array<i32>} : memref<1x64x13x13xf32, #tpu.memory_space<vmem>>, vector<1x1x13x13xf32>,
    %c0_i32_627 = arith.constant 0 : i32
    %742 = arith.addi %0, %c0_i32_627 : i32
    %c0_628 = arith.constant 0 : index
    %c3_629 = arith.constant 3 : index
    %743 = arith.index_cast %742 : i32 to index
    %c2_630 = arith.constant 2 : index
    %744 = vector.load %arg2[%c0_628, %c3_629, %743, %c2_630] : memref<1x4x16x16xf32, #tpu.memory_space<vmem>>, vector<1x1x13x13xf32>
    %745 = vector.shape_cast %744 : vector<1x1x13x13xf32> to vector<13x13xf32>
    %746 = arith.subf %745, %341 : vector<13x13xf32>
    %c0_631 = arith.constant 0 : index
    %c50 = arith.constant 50 : index
    %c0_632 = arith.constant 0 : index
    %c0_633 = arith.constant 0 : index
    %747 = vector.load %arg3[%c0_631, %c50, %c0_632, %c0_633] : memref<1x64x13x13xf32, #tpu.memory_space<vmem>>, vector<1x1x13x13xf32>
    %748 = vector.shape_cast %747 : vector<1x1x13x13xf32> to vector<13x13xf32>
    %749 = vector.shape_cast %746 : vector<13x13xf32> to vector<1x1x13x13xf32>
    tpu.vector_store %arg3[%c0_631, %c50, %c0_632, %c0_633], %749 {strides = array<i32>} : memref<1x64x13x13xf32, #tpu.memory_space<vmem>>, vector<1x1x13x13xf32>,
    %c0_i32_634 = arith.constant 0 : i32
    %750 = arith.addi %0, %c0_i32_634 : i32
    %c0_635 = arith.constant 0 : index
    %c3_636 = arith.constant 3 : index
    %751 = arith.index_cast %750 : i32 to index
    %c3_637 = arith.constant 3 : index
    %752 = vector.load %arg2[%c0_635, %c3_636, %751, %c3_637] : memref<1x4x16x16xf32, #tpu.memory_space<vmem>>, vector<1x1x13x13xf32>
    %753 = vector.shape_cast %752 : vector<1x1x13x13xf32> to vector<13x13xf32>
    %754 = arith.subf %753, %341 : vector<13x13xf32>
    %c0_638 = arith.constant 0 : index
    %c51 = arith.constant 51 : index
    %c0_639 = arith.constant 0 : index
    %c0_640 = arith.constant 0 : index
    %755 = vector.load %arg3[%c0_638, %c51, %c0_639, %c0_640] : memref<1x64x13x13xf32, #tpu.memory_space<vmem>>, vector<1x1x13x13xf32>
    %756 = vector.shape_cast %755 : vector<1x1x13x13xf32> to vector<13x13xf32>
    %757 = vector.shape_cast %754 : vector<13x13xf32> to vector<1x1x13x13xf32>
    tpu.vector_store %arg3[%c0_638, %c51, %c0_639, %c0_640], %757 {strides = array<i32>} : memref<1x64x13x13xf32, #tpu.memory_space<vmem>>, vector<1x1x13x13xf32>,
    %c1_i32_641 = arith.constant 1 : i32
    %758 = arith.addi %0, %c1_i32_641 : i32
    %c0_642 = arith.constant 0 : index
    %c3_643 = arith.constant 3 : index
    %759 = arith.index_cast %758 : i32 to index
    %c0_644 = arith.constant 0 : index
    %760 = vector.load %arg2[%c0_642, %c3_643, %759, %c0_644] : memref<1x4x16x16xf32, #tpu.memory_space<vmem>>, vector<1x1x13x13xf32>
    %761 = vector.shape_cast %760 : vector<1x1x13x13xf32> to vector<13x13xf32>
    %762 = arith.subf %761, %341 : vector<13x13xf32>
    %c0_645 = arith.constant 0 : index
    %c52 = arith.constant 52 : index
    %c0_646 = arith.constant 0 : index
    %c0_647 = arith.constant 0 : index
    %763 = vector.load %arg3[%c0_645, %c52, %c0_646, %c0_647] : memref<1x64x13x13xf32, #tpu.memory_space<vmem>>, vector<1x1x13x13xf32>
    %764 = vector.shape_cast %763 : vector<1x1x13x13xf32> to vector<13x13xf32>
    %765 = vector.shape_cast %762 : vector<13x13xf32> to vector<1x1x13x13xf32>
    tpu.vector_store %arg3[%c0_645, %c52, %c0_646, %c0_647], %765 {strides = array<i32>} : memref<1x64x13x13xf32, #tpu.memory_space<vmem>>, vector<1x1x13x13xf32>,
    %c1_i32_648 = arith.constant 1 : i32
    %766 = arith.addi %0, %c1_i32_648 : i32
    %c0_649 = arith.constant 0 : index
    %c3_650 = arith.constant 3 : index
    %767 = arith.index_cast %766 : i32 to index
    %c1_651 = arith.constant 1 : index
    %768 = vector.load %arg2[%c0_649, %c3_650, %767, %c1_651] : memref<1x4x16x16xf32, #tpu.memory_space<vmem>>, vector<1x1x13x13xf32>
    %769 = vector.shape_cast %768 : vector<1x1x13x13xf32> to vector<13x13xf32>
    %770 = arith.subf %769, %341 : vector<13x13xf32>
    %c0_652 = arith.constant 0 : index
    %c53 = arith.constant 53 : index
    %c0_653 = arith.constant 0 : index
    %c0_654 = arith.constant 0 : index
    %771 = vector.load %arg3[%c0_652, %c53, %c0_653, %c0_654] : memref<1x64x13x13xf32, #tpu.memory_space<vmem>>, vector<1x1x13x13xf32>
    %772 = vector.shape_cast %771 : vector<1x1x13x13xf32> to vector<13x13xf32>
    %773 = vector.shape_cast %770 : vector<13x13xf32> to vector<1x1x13x13xf32>
    tpu.vector_store %arg3[%c0_652, %c53, %c0_653, %c0_654], %773 {strides = array<i32>} : memref<1x64x13x13xf32, #tpu.memory_space<vmem>>, vector<1x1x13x13xf32>,
    %c1_i32_655 = arith.constant 1 : i32
    %774 = arith.addi %0, %c1_i32_655 : i32
    %c0_656 = arith.constant 0 : index
    %c3_657 = arith.constant 3 : index
    %775 = arith.index_cast %774 : i32 to index
    %c2_658 = arith.constant 2 : index
    %776 = vector.load %arg2[%c0_656, %c3_657, %775, %c2_658] : memref<1x4x16x16xf32, #tpu.memory_space<vmem>>, vector<1x1x13x13xf32>
    %777 = vector.shape_cast %776 : vector<1x1x13x13xf32> to vector<13x13xf32>
    %778 = arith.subf %777, %341 : vector<13x13xf32>
    %c0_659 = arith.constant 0 : index
    %c54 = arith.constant 54 : index
    %c0_660 = arith.constant 0 : index
    %c0_661 = arith.constant 0 : index
    %779 = vector.load %arg3[%c0_659, %c54, %c0_660, %c0_661] : memref<1x64x13x13xf32, #tpu.memory_space<vmem>>, vector<1x1x13x13xf32>
    %780 = vector.shape_cast %779 : vector<1x1x13x13xf32> to vector<13x13xf32>
    %781 = vector.shape_cast %778 : vector<13x13xf32> to vector<1x1x13x13xf32>
    tpu.vector_store %arg3[%c0_659, %c54, %c0_660, %c0_661], %781 {strides = array<i32>} : memref<1x64x13x13xf32, #tpu.memory_space<vmem>>, vector<1x1x13x13xf32>,
    %c1_i32_662 = arith.constant 1 : i32
    %782 = arith.addi %0, %c1_i32_662 : i32
    %c0_663 = arith.constant 0 : index
    %c3_664 = arith.constant 3 : index
    %783 = arith.index_cast %782 : i32 to index
    %c3_665 = arith.constant 3 : index
    %784 = vector.load %arg2[%c0_663, %c3_664, %783, %c3_665] : memref<1x4x16x16xf32, #tpu.memory_space<vmem>>, vector<1x1x13x13xf32>
    %785 = vector.shape_cast %784 : vector<1x1x13x13xf32> to vector<13x13xf32>
    %786 = arith.subf %785, %341 : vector<13x13xf32>
    %c0_666 = arith.constant 0 : index
    %c55 = arith.constant 55 : index
    %c0_667 = arith.constant 0 : index
    %c0_668 = arith.constant 0 : index
    %787 = vector.load %arg3[%c0_666, %c55, %c0_667, %c0_668] : memref<1x64x13x13xf32, #tpu.memory_space<vmem>>, vector<1x1x13x13xf32>
    %788 = vector.shape_cast %787 : vector<1x1x13x13xf32> to vector<13x13xf32>
    %789 = vector.shape_cast %786 : vector<13x13xf32> to vector<1x1x13x13xf32>
    tpu.vector_store %arg3[%c0_666, %c55, %c0_667, %c0_668], %789 {strides = array<i32>} : memref<1x64x13x13xf32, #tpu.memory_space<vmem>>, vector<1x1x13x13xf32>,
    %c2_i32_669 = arith.constant 2 : i32
    %790 = arith.addi %0, %c2_i32_669 : i32
    %c0_670 = arith.constant 0 : index
    %c3_671 = arith.constant 3 : index
    %791 = arith.index_cast %790 : i32 to index
    %c0_672 = arith.constant 0 : index
    %792 = vector.load %arg2[%c0_670, %c3_671, %791, %c0_672] : memref<1x4x16x16xf32, #tpu.memory_space<vmem>>, vector<1x1x13x13xf32>
    %793 = vector.shape_cast %792 : vector<1x1x13x13xf32> to vector<13x13xf32>
    %794 = arith.subf %793, %341 : vector<13x13xf32>
    %c0_673 = arith.constant 0 : index
    %c56 = arith.constant 56 : index
    %c0_674 = arith.constant 0 : index
    %c0_675 = arith.constant 0 : index
    %795 = vector.load %arg3[%c0_673, %c56, %c0_674, %c0_675] : memref<1x64x13x13xf32, #tpu.memory_space<vmem>>, vector<1x1x13x13xf32>
    %796 = vector.shape_cast %795 : vector<1x1x13x13xf32> to vector<13x13xf32>
    %797 = vector.shape_cast %794 : vector<13x13xf32> to vector<1x1x13x13xf32>
    tpu.vector_store %arg3[%c0_673, %c56, %c0_674, %c0_675], %797 {strides = array<i32>} : memref<1x64x13x13xf32, #tpu.memory_space<vmem>>, vector<1x1x13x13xf32>,
    %c2_i32_676 = arith.constant 2 : i32
    %798 = arith.addi %0, %c2_i32_676 : i32
    %c0_677 = arith.constant 0 : index
    %c3_678 = arith.constant 3 : index
    %799 = arith.index_cast %798 : i32 to index
    %c1_679 = arith.constant 1 : index
    %800 = vector.load %arg2[%c0_677, %c3_678, %799, %c1_679] : memref<1x4x16x16xf32, #tpu.memory_space<vmem>>, vector<1x1x13x13xf32>
    %801 = vector.shape_cast %800 : vector<1x1x13x13xf32> to vector<13x13xf32>
    %802 = arith.subf %801, %341 : vector<13x13xf32>
    %c0_680 = arith.constant 0 : index
    %c57 = arith.constant 57 : index
    %c0_681 = arith.constant 0 : index
    %c0_682 = arith.constant 0 : index
    %803 = vector.load %arg3[%c0_680, %c57, %c0_681, %c0_682] : memref<1x64x13x13xf32, #tpu.memory_space<vmem>>, vector<1x1x13x13xf32>
    %804 = vector.shape_cast %803 : vector<1x1x13x13xf32> to vector<13x13xf32>
    %805 = vector.shape_cast %802 : vector<13x13xf32> to vector<1x1x13x13xf32>
    tpu.vector_store %arg3[%c0_680, %c57, %c0_681, %c0_682], %805 {strides = array<i32>} : memref<1x64x13x13xf32, #tpu.memory_space<vmem>>, vector<1x1x13x13xf32>,
    %c2_i32_683 = arith.constant 2 : i32
    %806 = arith.addi %0, %c2_i32_683 : i32
    %c0_684 = arith.constant 0 : index
    %c3_685 = arith.constant 3 : index
    %807 = arith.index_cast %806 : i32 to index
    %c2_686 = arith.constant 2 : index
    %808 = vector.load %arg2[%c0_684, %c3_685, %807, %c2_686] : memref<1x4x16x16xf32, #tpu.memory_space<vmem>>, vector<1x1x13x13xf32>
    %809 = vector.shape_cast %808 : vector<1x1x13x13xf32> to vector<13x13xf32>
    %810 = arith.subf %809, %341 : vector<13x13xf32>
    %c0_687 = arith.constant 0 : index
    %c58 = arith.constant 58 : index
    %c0_688 = arith.constant 0 : index
    %c0_689 = arith.constant 0 : index
    %811 = vector.load %arg3[%c0_687, %c58, %c0_688, %c0_689] : memref<1x64x13x13xf32, #tpu.memory_space<vmem>>, vector<1x1x13x13xf32>
    %812 = vector.shape_cast %811 : vector<1x1x13x13xf32> to vector<13x13xf32>
    %813 = vector.shape_cast %810 : vector<13x13xf32> to vector<1x1x13x13xf32>
    tpu.vector_store %arg3[%c0_687, %c58, %c0_688, %c0_689], %813 {strides = array<i32>} : memref<1x64x13x13xf32, #tpu.memory_space<vmem>>, vector<1x1x13x13xf32>,
    %c2_i32_690 = arith.constant 2 : i32
    %814 = arith.addi %0, %c2_i32_690 : i32
    %c0_691 = arith.constant 0 : index
    %c3_692 = arith.constant 3 : index
    %815 = arith.index_cast %814 : i32 to index
    %c3_693 = arith.constant 3 : index
    %816 = vector.load %arg2[%c0_691, %c3_692, %815, %c3_693] : memref<1x4x16x16xf32, #tpu.memory_space<vmem>>, vector<1x1x13x13xf32>
    %817 = vector.shape_cast %816 : vector<1x1x13x13xf32> to vector<13x13xf32>
    %818 = arith.subf %817, %341 : vector<13x13xf32>
    %c0_694 = arith.constant 0 : index
    %c59 = arith.constant 59 : index
    %c0_695 = arith.constant 0 : index
    %c0_696 = arith.constant 0 : index
    %819 = vector.load %arg3[%c0_694, %c59, %c0_695, %c0_696] : memref<1x64x13x13xf32, #tpu.memory_space<vmem>>, vector<1x1x13x13xf32>
    %820 = vector.shape_cast %819 : vector<1x1x13x13xf32> to vector<13x13xf32>
    %821 = vector.shape_cast %818 : vector<13x13xf32> to vector<1x1x13x13xf32>
    tpu.vector_store %arg3[%c0_694, %c59, %c0_695, %c0_696], %821 {strides = array<i32>} : memref<1x64x13x13xf32, #tpu.memory_space<vmem>>, vector<1x1x13x13xf32>,
    %c3_i32_697 = arith.constant 3 : i32
    %822 = arith.addi %0, %c3_i32_697 : i32
    %c0_698 = arith.constant 0 : index
    %c3_699 = arith.constant 3 : index
    %823 = arith.index_cast %822 : i32 to index
    %c0_700 = arith.constant 0 : index
    %824 = vector.load %arg2[%c0_698, %c3_699, %823, %c0_700] : memref<1x4x16x16xf32, #tpu.memory_space<vmem>>, vector<1x1x13x13xf32>
    %825 = vector.shape_cast %824 : vector<1x1x13x13xf32> to vector<13x13xf32>
    %826 = arith.subf %825, %341 : vector<13x13xf32>
    %c0_701 = arith.constant 0 : index
    %c60 = arith.constant 60 : index
    %c0_702 = arith.constant 0 : index
    %c0_703 = arith.constant 0 : index
    %827 = vector.load %arg3[%c0_701, %c60, %c0_702, %c0_703] : memref<1x64x13x13xf32, #tpu.memory_space<vmem>>, vector<1x1x13x13xf32>
    %828 = vector.shape_cast %827 : vector<1x1x13x13xf32> to vector<13x13xf32>
    %829 = vector.shape_cast %826 : vector<13x13xf32> to vector<1x1x13x13xf32>
    tpu.vector_store %arg3[%c0_701, %c60, %c0_702, %c0_703], %829 {strides = array<i32>} : memref<1x64x13x13xf32, #tpu.memory_space<vmem>>, vector<1x1x13x13xf32>,
    %c3_i32_704 = arith.constant 3 : i32
    %830 = arith.addi %0, %c3_i32_704 : i32
    %c0_705 = arith.constant 0 : index
    %c3_706 = arith.constant 3 : index
    %831 = arith.index_cast %830 : i32 to index
    %c1_707 = arith.constant 1 : index
    %832 = vector.load %arg2[%c0_705, %c3_706, %831, %c1_707] : memref<1x4x16x16xf32, #tpu.memory_space<vmem>>, vector<1x1x13x13xf32>
    %833 = vector.shape_cast %832 : vector<1x1x13x13xf32> to vector<13x13xf32>
    %834 = arith.subf %833, %341 : vector<13x13xf32>
    %c0_708 = arith.constant 0 : index
    %c61 = arith.constant 61 : index
    %c0_709 = arith.constant 0 : index
    %c0_710 = arith.constant 0 : index
    %835 = vector.load %arg3[%c0_708, %c61, %c0_709, %c0_710] : memref<1x64x13x13xf32, #tpu.memory_space<vmem>>, vector<1x1x13x13xf32>
    %836 = vector.shape_cast %835 : vector<1x1x13x13xf32> to vector<13x13xf32>
    %837 = vector.shape_cast %834 : vector<13x13xf32> to vector<1x1x13x13xf32>
    tpu.vector_store %arg3[%c0_708, %c61, %c0_709, %c0_710], %837 {strides = array<i32>} : memref<1x64x13x13xf32, #tpu.memory_space<vmem>>, vector<1x1x13x13xf32>,
    %c3_i32_711 = arith.constant 3 : i32
    %838 = arith.addi %0, %c3_i32_711 : i32
    %c0_712 = arith.constant 0 : index
    %c3_713 = arith.constant 3 : index
    %839 = arith.index_cast %838 : i32 to index
    %c2_714 = arith.constant 2 : index
    %840 = vector.load %arg2[%c0_712, %c3_713, %839, %c2_714] : memref<1x4x16x16xf32, #tpu.memory_space<vmem>>, vector<1x1x13x13xf32>
    %841 = vector.shape_cast %840 : vector<1x1x13x13xf32> to vector<13x13xf32>
    %842 = arith.subf %841, %341 : vector<13x13xf32>
    %c0_715 = arith.constant 0 : index
    %c62 = arith.constant 62 : index
    %c0_716 = arith.constant 0 : index
    %c0_717 = arith.constant 0 : index
    %843 = vector.load %arg3[%c0_715, %c62, %c0_716, %c0_717] : memref<1x64x13x13xf32, #tpu.memory_space<vmem>>, vector<1x1x13x13xf32>
    %844 = vector.shape_cast %843 : vector<1x1x13x13xf32> to vector<13x13xf32>
    %845 = vector.shape_cast %842 : vector<13x13xf32> to vector<1x1x13x13xf32>
    tpu.vector_store %arg3[%c0_715, %c62, %c0_716, %c0_717], %845 {strides = array<i32>} : memref<1x64x13x13xf32, #tpu.memory_space<vmem>>, vector<1x1x13x13xf32>,
    %c3_i32_718 = arith.constant 3 : i32
    %846 = arith.addi %0, %c3_i32_718 : i32
    %c0_719 = arith.constant 0 : index
    %c3_720 = arith.constant 3 : index
    %847 = arith.index_cast %846 : i32 to index
    %c3_721 = arith.constant 3 : index
    %848 = vector.load %arg2[%c0_719, %c3_720, %847, %c3_721] : memref<1x4x16x16xf32, #tpu.memory_space<vmem>>, vector<1x1x13x13xf32>
    %849 = vector.shape_cast %848 : vector<1x1x13x13xf32> to vector<13x13xf32>
    %850 = arith.subf %849, %341 : vector<13x13xf32>
    %c0_722 = arith.constant 0 : index
    %c63 = arith.constant 63 : index
    %c0_723 = arith.constant 0 : index
    %c0_724 = arith.constant 0 : index
    %851 = vector.load %arg3[%c0_722, %c63, %c0_723, %c0_724] : memref<1x64x13x13xf32, #tpu.memory_space<vmem>>, vector<1x1x13x13xf32>
    %852 = vector.shape_cast %851 : vector<1x1x13x13xf32> to vector<13x13xf32>
    %853 = vector.shape_cast %850 : vector<13x13xf32> to vector<1x1x13x13xf32>
    tpu.vector_store %arg3[%c0_722, %c63, %c0_723, %c0_724], %853 {strides = array<i32>} : memref<1x64x13x13xf32, #tpu.memory_space<vmem>>, vector<1x1x13x13xf32>,
    return
  }
  func.func @transform_0(%arg0: i32, %arg1: i32) -> (i32, i32, i32, i32) {
    %c0_i32 = arith.constant 0 : i32
    %c0_i32_0 = arith.constant 0 : i32
    %c0_i32_1 = arith.constant 0 : i32
    %c0_i32_2 = arith.constant 0 : i32
    return %arg0, %c0_i32, %c0_i32_0, %c0_i32_1 : i32, i32, i32, i32
  }
  func.func @transform_1(%arg0: i32, %arg1: i32) -> (i32, i32, i32, i32) {
    %c0_i32 = arith.constant 0 : i32
    %c0_i32_0 = arith.constant 0 : i32
    %c0_i32_1 = arith.constant 0 : i32
    return %arg0, %c0_i32, %arg1, %c0_i32_0 : i32, i32, i32, i32
  }
}

</mosaic_0001>

<bundles_post_ra>
// kernel: tpu_custom_call.1
= control target key start
LH: loop header
LB: loop body
LE: loop exit
PB: predicated region body
PF: predicated region fallthrough
CT: control target
= control target key end

     0   :  { %6 = vsyncpa [#allocation4], 0  ;;  %s3211_s0 = inlined_call_operand.hbm [shape: f32[2,4,16,16], index: 0, kind: input, shape index: {}]   ;;  %s3212_s1 = inlined_call_operand.vmem [shape: f32[2,64,13,13], index: 1, kind: output, shape index: {}]  }
   0x1   :  { %8 = vsyncpa [#allocation4 + $0x1], 0  ;;  %s2151_s6 = smov 0   ;;  %s2153_s7 = smov 0  }
   0x2   :  { %s2155_s8 = smov 0   ;;  %s2157_s9 = smov 0  }
   0x3   :  { %s2159_s10 = smov 0   ;;  %s2161_s11 = smov 0  }
   0x4 LB: > { %s1694_s12 = sadd.s32 4294967295, %s2129_s11   ;;  %s26_s13 = sadd.s32 1, %s2125_s10  ;;  %s2129_s11 = sphi %s2161_s11, %s14_s11   ;;  %s2125_s10 = sphi %s2159_s10, %s3220_s10   ;;  %s2121_s9 = sphi %s2157_s9, %s3219_s9   ;;  %s2117_s8 = sphi %s2155_s8, %s3218_s8   ;;  %s2113_s7 = sphi %s2153_s7, %s3217_s7   ;;  %s2109_s6 = sphi %s2151_s6, %s3216_s6  }
   0x5   : > { %p28_p0 = scmp.ge.s32.totalorder %s26_s13, 2  ;;  %s33_s14 = sadd.s32 1, %s2117_s8 }
   0x6   : > { %p40_p1 = scmp.ne.s32.totalorder %s2117_s8, %s2113_s7  ;;  %p41_p2 = scmp.eq.s32.totalorder %s2129_s11, 0 }
   0x7   : > { %s3222_s13 = smov (%p28_p0, %s26_s13), 0  ;;  %p46_p4 = scmp.ne.s32.totalorder %s2113_s7, %s2109_s6 }
   0x8   : > { %p2187_p3 = por %p41_p2, %p40_p1  ;;  %s30_s16 = ssub.s32 %s2125_s10, %s3222_s13 }
   0x9   : > { %p47_p5 = scmp.eq.s32.totalorder %s1694_s12, 0  ;;  %p31_p6 = scmp.eq.s32.totalorder %s30_s16, 0 }
   0xa   : > { %p1991_p8 = scmp.lt.s32.totalorder %s2129_s11, 2  ;;  %s98_s19 = sand.u32 1, %s2117_s8  }
   0xb   : > { %p2194_p7 = por %p47_p5, %p46_p4  ;;  %s1983_s20 = sshll.u32 %s2125_s10, 10 }
   0xc   : > { %s2200_s18 = scalar_select %p31_p6, %s2117_s8, %s33_s14  }
   0xd   : > { %s1698_s21 = sshll.u32 %s98_s19, 6  ;;  %s2207_s24 = scalar_lea.hbm %s3211_s0, %s1983_s20 }
   0xe   : > { %s102_s25 = scalar_lea.vmem [#allocation3], %s1698_s21  ;;  %p2211_p9 = pnand %p1991_p8, %p2187_p3 }
   0xf   : > { %s109_s26 = sshll.u32 %s102_s25, 4  ;;  %s2217_s28 = scalar_lea.sflag [#allocation4], %s98_s19  ;;  %s2215_s26 = int_to_ptr.vmem [resolvable:$true] %s109_s26 }
  0x10   : > { %s2049_s29 = scalar_lea.hbm %s2207_s24, 1024  ;;  %p2051_p11 = pneg %p2211_p9 }
  0x11   : > { %p2050_p10 = scmp.ne.s32.totalorder %s2207_s24, %s2049_s29  ;;  %s2054_s3 = scalar_lea.hbm %s3211_s0, 2048 }
  0x12   : > { %p2055_p0 = scmp.lt.u32.totalorder %s2207_s24, %s3211_s0  ;;  %p2056_p1 = scmp.lt.u32.totalorder %s2054_s3, %s2049_s29 }
  0x13   : > { %p2052_p12 = pnand %p2051_p11, %p2050_p10  ;;  %p2058_p3 = scmp.lt.u32.totalorder %s2049_s29, %s2207_s24 }
  0x14   : > { %p2057_p2 = por %p2056_p1, %p2055_p0 }
  0x15   : > { %p2053_p13 = pneg %p2052_p12 }
  0x16   : > { %p2059_p4 = por %p2058_p3, %p2057_p2 }
  0x18   : > { %p2060_p5 = pnand %p2059_p4, %p2053_p13 }
  0x1a   : > { %2063 = shalt.err (!%p2060_p5)
}
  0x1b   : > { %s2064_s6 = scalar_lea.vmem %s2215_s26, 1024  ;;  %s2131_s12 = smov [#allocation3]  }
  0x1c   : > { %p2065_p6 = scmp.ne.s32.totalorder %s2215_s26, %s2064_s6  ;;  %s2069_s14 = sshll.u32 %s2131_s12, 4  ;;  %s2070_s14 = int_to_ptr.vmem [resolvable:$false] %s2069_s14 }
  0x1d   : > { %s2071_s15 = scalar_lea.vmem %s2070_s14, 2048  ;;  %p2072_p12 = scmp.lt.s32.totalorder %s2215_s26, %s2070_s14 }
  0x1e   : > { %p2067_p8 = pnand %p2065_p6, %p2051_p11  ;;  %p2073_p0 = scmp.lt.s32.totalorder %s2071_s15, %s2064_s6 }
  0x20   : > { %p2068_p10 = pneg %p2067_p8  ;;  %p2074_p1 = por %p2073_p0, %p2072_p12 }
  0x22   : > { %p2075_p2 = pnand %p2074_p1, %p2068_p10 }
  0x24   : > { %2078 = shalt.err (!%p2075_p2)
}
  0x25   : > { %s2132_s16 = smov 128   ;;  %s2133_s19 = smov 8  }
  0x26   : > { %1990 = dma.hbm_to_vmem [thread:$0]  (!%p2211_p9), %s2207_s24, 1024, %s2215_s26, %s2217_s28, %s2132_s16, %s2132_s16, %s2133_s19  }
  0x27   : > { %p1701_p11 = scmp.ge.s32.totalorder %s2129_s11, 1  ;;  %p117_p13 = scmp.lt.s32.totalorder %s2129_s11, 3 }
  0x29   : > { %p118_p3 = pnand %p1701_p11, %p117_p13 }
  0x2a   : > { %s123_s20 = sand.u32 (!%p118_p3), 1, %s2113_s7  }
  0x2b   : > { %121 = sbr.rel (%p118_p3) target bundleno = 791 (0x317), region = 24  ;;  %s1702_s21 = sshll.u32 (!%p118_p3), %s123_s20, 6 }
  0x2c   : > { %s124_s22 = scalar_lea.sflag (!%p118_p3), [#allocation4], %s123_s20  ;;  %s2248_s23 = scalar_lea.vmem (!%p118_p3), [#allocation3], %s1702_s21 }
  0x32   : > { %2104 = dma.done.wait (%p2194_p7), %s124_s22, 1024  }
  0x33   : > { %2106 = vsyncadd (%p2194_p7), %s124_s22, 4294966272  ;;  %v2255_v0 = vld [vmem:[%s2248_s23] sm:$0xff]  ;;  %s2134_s24 = smov 126   ;;  %s2135_s25 = smov 127   ;;  %v2262_v1 = vld [vmem:[%s2248_s23 + $0x8] sm:$0x1f] }
  0x34   : > { %180 = vrot.lane.b32.xlu1 %v2255_v0, %s2134_s24  ;;  %172 = vrot.lane.b32.xlu0 %v2255_v0, %s2135_s25  ;;  %s2136_s17 = smov 125   ;;  %v2273_v2 = vld [vmem:[%s2248_s23 + $0x9] sm:$0x1f]  ;;  %v2276_v3 = vld [vmem:[%s2248_s23 + $0x1] sm:$0xff]  ;;  %vm163_vm0 = vcmask 102400   ;;  %vm161_vm1 = vcmask 105472  }
  0x35   : > { %v2291_v4 = vld [vmem:[%s2248_s23 + $0xa] sm:$0x1f]  ;;  %v2294_v5 = vld [vmem:[%s2248_s23 + $0x2] sm:$0xff]  ;;  %v2137_v6 = vmov 0.0   ;;  %v2329_v9 = vld [vmem:[%s2248_s23 + $0x18] sm:$0x1f] }
  0x36   : > { %164 = vst.msk [vmem:[#allocation2 + $0x8] sm:$0x1f] %vm163_vm0, %v2137_v6  ;;  %v2311_v7 = vld [vmem:[%s2248_s23 + $0xb] sm:$0x1f]  ;;  %v2314_v8 = vld [vmem:[%s2248_s23 + $0x3] sm:$0xff]  ;;  %v2332_v10 = vld [vmem:[%s2248_s23 + $0x10] sm:$0xff] }
  0x37   : > { %162 = vst.msk [vmem:[#allocation2] sm:$0xff] %vm161_vm1, %v2137_v6  ;;  %v2347_v11 = vld [vmem:[%s2248_s23 + $0x19] sm:$0x1f]  ;;  %v2350_v12 = vld [vmem:[%s2248_s23 + $0x11] sm:$0xff]  ;;  %v2401_v17 = vld [vmem:[%s2248_s23 + $0x28] sm:$0x1f] }
  0x38   : > { %182 = vrot.lane.b32.xlu1 %v2262_v1, %s2134_s24  ;;  %174 = vrot.lane.b32.xlu0 %v2262_v1, %s2135_s25  ;;  %v2365_v13 = vld [vmem:[%s2248_s23 + $0x1a] sm:$0x1f]  ;;  %v2368_v14 = vld [vmem:[%s2248_s23 + $0x12] sm:$0xff]  ;;  %p151_p7 = scmp.lt.s32.totalorder %s2121_s9, 1  ;;  %s2139_s30 = smov 2  }
  0x39   : > { %v2383_v15 = vld [vmem:[%s2248_s23 + $0x1b] sm:$0x1f]  ;;  %v2386_v16 = vld [vmem:[%s2248_s23 + $0x13] sm:$0xff]  ;;  %v2404_v18 = vld [vmem:[%s2248_s23 + $0x20] sm:$0xff]  ;;  %s2140_s2 = smov 3  }
  0x3a   : > { %v2419_v19 = vld [vmem:[%s2248_s23 + $0x29] sm:$0x1f]  ;;  %v2422_v20 = vld [vmem:[%s2248_s23 + $0x21] sm:$0xff]  ;;  %v2479_v55 = vld [vmem:[%s2248_s23 + $0x38] sm:$0x1f]  ;;  %s3224_s9 = smov (!%p151_p7, %s2121_s9), 1 }
  0x3b   : > { %v2438_v24 = vld [vmem:[%s2248_s23 + $0x2a] sm:$0x1f]  ;;  %v2441_v25 = vld [vmem:[%s2248_s23 + $0x22] sm:$0xff]  ;;  %v2482_v56 = vld [vmem:[%s2248_s23 + $0x30] sm:$0xff]  ;;  %s1984_s26 = sshll.u32 %s3224_s9, 10  ;;  %s2138_s9 = smov 1  }
  0x3c   : > { %190 = vrot.lane.b32.xlu1 %v2262_v1, %s2136_s17  ;;  %188 = vrot.lane.b32.xlu0 %v2255_v0, %s2136_s17  ;;  %v2459_v39 = vld [vmem:[%s2248_s23 + $0x2b] sm:$0x1f]  ;;  %v2462_v40 = vld [vmem:[%s2248_s23 + $0x23] sm:$0xff]  ;;  %s2603_s29 = scalar_lea.vmem %s3212_s1, %s1984_s26 }
  0x40   : > { %206 = vrot.lane.b32.xlu1 %v2273_v2, %s2135_s25  ;;  %204 = vrot.lane.b32.xlu0 %v2276_v3, %s2135_s25 }
  0x44   : > { %214 = vrot.lane.b32.xlu1 %v2273_v2, %s2134_s24  ;;  %212 = vrot.lane.b32.xlu0 %v2276_v3, %s2134_s24 }
  0x48   : > { %222 = vrot.lane.b32.xlu1 %v2273_v2, %s2136_s17  ;;  %220 = vrot.lane.b32.xlu0 %v2276_v3, %s2136_s17 }
  0x4c   : > { %238 = vrot.lane.b32.xlu1 %v2291_v4, %s2135_s25  ;;  %236 = vrot.lane.b32.xlu0 %v2294_v5, %s2135_s25 }
  0x50   : > { %246 = vrot.lane.b32.xlu1 %v2291_v4, %s2134_s24  ;;  %244 = vrot.lane.b32.xlu0 %v2294_v5, %s2134_s24 }
  0x54   : > { %254 = vrot.lane.b32.xlu1 %v2291_v4, %s2136_s17  ;;  %252 = vrot.lane.b32.xlu0 %v2294_v5, %s2136_s17 }
  0x58   : > { %270 = vrot.lane.b32.xlu1 %v2311_v7, %s2135_s25  ;;  %268 = vrot.lane.b32.xlu0 %v2314_v8, %s2135_s25 }
  0x5c   : > { %278 = vrot.lane.b32.xlu1 %v2311_v7, %s2134_s24  ;;  %276 = vrot.lane.b32.xlu0 %v2314_v8, %s2134_s24 }
  0x60   : > { %286 = vrot.lane.b32.xlu1 %v2311_v7, %s2136_s17  ;;  %284 = vrot.lane.b32.xlu0 %v2314_v8, %s2136_s17 }
  0x64   : > { %308 = vrot.lane.b32.xlu1 %v2329_v9, %s2135_s25  ;;  %306 = vrot.lane.b32.xlu0 %v2332_v10, %s2135_s25 }
  0x68   : > { %316 = vrot.lane.b32.xlu1 %v2329_v9, %s2134_s24  ;;  %314 = vrot.lane.b32.xlu0 %v2332_v10, %s2134_s24 }
  0x6c   : > { %324 = vrot.lane.b32.xlu1 %v2329_v9, %s2136_s17  ;;  %322 = vrot.lane.b32.xlu0 %v2332_v10, %s2136_s17 }
  0x70   : > { %340 = vrot.lane.b32.xlu1 %v2347_v11, %s2135_s25  ;;  %338 = vrot.lane.b32.xlu0 %v2350_v12, %s2135_s25 }
  0x74   : > { %348 = vrot.lane.b32.xlu1 %v2347_v11, %s2134_s24  ;;  %346 = vrot.lane.b32.xlu0 %v2350_v12, %s2134_s24 }
  0x78   : > { %356 = vrot.lane.b32.xlu1 %v2347_v11, %s2136_s17  ;;  %354 = vrot.lane.b32.xlu0 %v2350_v12, %s2136_s17 }
  0x7c   : > { %372 = vrot.lane.b32.xlu1 %v2365_v13, %s2135_s25  ;;  %370 = vrot.lane.b32.xlu0 %v2368_v14, %s2135_s25 }
  0x80   : > { %380 = vrot.lane.b32.xlu1 %v2365_v13, %s2134_s24  ;;  %378 = vrot.lane.b32.xlu0 %v2368_v14, %s2134_s24 }
  0x84   : > { %388 = vrot.lane.b32.xlu1 %v2365_v13, %s2136_s17  ;;  %386 = vrot.lane.b32.xlu0 %v2368_v14, %s2136_s17 }
  0x88   : > { %404 = vrot.lane.b32.xlu1 %v2383_v15, %s2135_s25  ;;  %402 = vrot.lane.b32.xlu0 %v2386_v16, %s2135_s25 }
  0x8c   : > { %412 = vrot.lane.b32.xlu1 %v2383_v15, %s2134_s24  ;;  %410 = vrot.lane.b32.xlu0 %v2386_v16, %s2134_s24 }
  0x90   : > { %420 = vrot.lane.b32.xlu1 %v2383_v15, %s2136_s17  ;;  %418 = vrot.lane.b32.xlu0 %v2386_v16, %s2136_s17 }
  0x94   : > { %442 = vrot.lane.b32.xlu1 %v2401_v17, %s2135_s25  ;;  %440 = vrot.lane.b32.xlu0 %v2404_v18, %s2135_s25 }
  0x98   : > { %450 = vrot.lane.b32.xlu1 %v2401_v17, %s2134_s24  ;;  %448 = vrot.lane.b32.xlu0 %v2404_v18, %s2134_s24 }
  0x9c   : > { %458 = vrot.lane.b32.xlu1 %v2401_v17, %s2136_s17  ;;  %456 = vrot.lane.b32.xlu0 %v2404_v18, %s2136_s17 }
  0xa0   : > { %474 = vrot.lane.b32.xlu1 %v2419_v19, %s2135_s25  ;;  %472 = vrot.lane.b32.xlu0 %v2422_v20, %s2135_s25 }
  0xa4   : > { %482 = vrot.lane.b32.xlu1 %v2419_v19, %s2134_s24  ;;  %480 = vrot.lane.b32.xlu0 %v2422_v20, %s2134_s24 }
  0xa6   : > { %v181_v21 = vpop.permute.xlu1 %180  ;;  %v173_v22 = vpop.permute.xlu0 %172 }
  0xa7   : > { %v178_v23 = vadd.f32 %v173_v22, %v2255_v0 }
  0xa8   : > { %490 = vrot.lane.b32.xlu1 %v2419_v19, %s2136_s17  ;;  %488 = vrot.lane.b32.xlu0 %v2422_v20, %s2136_s17 }
  0xa9   : > { %v186_v30 = vadd.f32 %v181_v21, %v178_v23 }
  0xaa   : > { %v183_v26 = vpop.permute.xlu1 %182  ;;  %v175_v27 = vpop.permute.xlu0 %174 }
  0xab   : > { %v179_v28 = vadd.f32 %v175_v27, %v2262_v1  ;;  %v2502_v27 = vld [vmem:[%s2248_s23 + $0x31] sm:$0xff] }
  0xac   : > { %506 = vrot.lane.b32.xlu1 %v2438_v24, %s2135_s25  ;;  %504 = vrot.lane.b32.xlu0 %v2441_v25, %s2135_s25 }
  0xad   : > { %v187_v29 = vadd.f32 %v183_v26, %v179_v28  ;;  %v2499_v26 = vld [vmem:[%s2248_s23 + $0x39] sm:$0x1f] }
  0xae   : > { %v191_v31 = vpop.permute.xlu1 %190  ;;  %v189_v32 = vpop.permute.xlu0 %188 }
  0xaf   : > { %v195_v33 = vadd.f32 %v191_v31, %v187_v29  ;;  %v194_v34 = vadd.f32 %v189_v32, %v186_v30 }
  0xb0   : > { %514 = vrot.lane.b32.xlu1 %v2438_v24, %s2134_s24  ;;  %512 = vrot.lane.b32.xlu0 %v2441_v25, %s2134_s24 }
  0xb1   : > { %v201_v37 = vadd.f32 %v2273_v2, %v195_v33  ;;  %v200_v38 = vadd.f32 %v2276_v3, %v194_v34  ;;  %v293_v34 = vld [vmem:[#allocation2 + $0x8] sm:$0x1f] }
  0xb2   : > { %v207_v35 = vpop.permute.xlu1 %206  ;;  %v205_v36 = vpop.permute.xlu0 %204 }
  0xb3   : > { %v211_v43 = vadd.f32 %v207_v35, %v201_v37  ;;  %v210_v44 = vadd.f32 %v205_v36, %v200_v38  ;;  %v292_v36 = vld [vmem:[#allocation2] sm:$0xff] }
  0xb4   : > { %522 = vrot.lane.b32.xlu1 %v2438_v24, %s2136_s17  ;;  %520 = vrot.lane.b32.xlu0 %v2441_v25, %s2136_s17 }
  0xb6   : > { %v215_v41 = vpop.permute.xlu1 %214  ;;  %v213_v42 = vpop.permute.xlu0 %212 }
  0xb7   : > { %v219_v45 = vadd.f32 %v215_v41, %v211_v43  ;;  %v218_v46 = vadd.f32 %v213_v42, %v210_v44 }
  0xb8   : > { %538 = vrot.lane.b32.xlu1 %v2459_v39, %s2135_s25  ;;  %536 = vrot.lane.b32.xlu0 %v2462_v40, %s2135_s25 }
  0xba   : > { %v223_v47 = vpop.permute.xlu1 %222  ;;  %v221_v48 = vpop.permute.xlu0 %220 }
  0xbb   : > { %v227_v49 = vadd.f32 %v223_v47, %v219_v45  ;;  %v226_v50 = vadd.f32 %v221_v48, %v218_v46  ;;  %v2519_v45 = vld [vmem:[%s2248_s23 + $0x3a] sm:$0x1f]  ;;  %v2522_v46 = vld [vmem:[%s2248_s23 + $0x32] sm:$0xff] }
  0xbc   : > { %546 = vrot.lane.b32.xlu1 %v2459_v39, %s2134_s24  ;;  %544 = vrot.lane.b32.xlu0 %v2462_v40, %s2134_s24 }
  0xbd   : > { %v233_v53 = vadd.f32 %v2291_v4, %v227_v49  ;;  %v232_v54 = vadd.f32 %v2294_v5, %v226_v50 }
  0xbe   : > { %v239_v51 = vpop.permute.xlu1 %238  ;;  %v237_v52 = vpop.permute.xlu0 %236 }
  0xbf   : > { %v243_v59 = vadd.f32 %v239_v51, %v233_v53  ;;  %v242_v60 = vadd.f32 %v237_v52, %v232_v54 }
  0xc0   : > { %554 = vrot.lane.b32.xlu1 %v2459_v39, %s2136_s17  ;;  %552 = vrot.lane.b32.xlu0 %v2462_v40, %s2136_s17 }
  0xc2   : > { %v247_v57 = vpop.permute.xlu1 %246  ;;  %v245_v58 = vpop.permute.xlu0 %244 }
  0xc3   : > { %v251_v61 = vadd.f32 %v247_v57, %v243_v59  ;;  %v250_v62 = vadd.f32 %v245_v58, %v242_v60 }
  0xc4   : > { %576 = vrot.lane.b32.xlu1 %v2479_v55, %s2135_s25  ;;  %574 = vrot.lane.b32.xlu0 %v2482_v56, %s2135_s25 }
  0xc6   : > { %v255_v63 = vpop.permute.xlu1 %254  ;;  %v253_v1 = vpop.permute.xlu0 %252 }
  0xc7   : > { %v259_v2 = vadd.f32 %v255_v63, %v251_v61  ;;  %v258_v4 = vadd.f32 %v253_v1, %v250_v62  ;;  %v2541_v62 = vld [vmem:[%s2248_s23 + $0x3b] sm:$0x1f]  ;;  %v2544_v63 = vld [vmem:[%s2248_s23 + $0x33] sm:$0xff] }
  0xc8   : > { %584 = vrot.lane.b32.xlu1 %v2479_v55, %s2134_s24  ;;  %582 = vrot.lane.b32.xlu0 %v2482_v56, %s2134_s24 }
  0xc9   : > { %v265_v22 = vadd.f32 %v2311_v7, %v259_v2  ;;  %v264_v23 = vadd.f32 %v2314_v8, %v258_v4 }
  0xca   : > { %v271_v6 = vpop.permute.xlu1 %270  ;;  %v269_v21 = vpop.permute.xlu0 %268 }
  0xcb   : > { %v275_v30 = vadd.f32 %v271_v6, %v265_v22  ;;  %v274_v31 = vadd.f32 %v269_v21, %v264_v23 }
  0xcc   : > { %592 = vrot.lane.b32.xlu1 %v2479_v55, %s2136_s17  ;;  %590 = vrot.lane.b32.xlu0 %v2482_v56, %s2136_s17 }
  0xce   : > { %v279_v28 = vpop.permute.xlu1 %278  ;;  %v277_v29 = vpop.permute.xlu0 %276 }
  0xcf   : > { %v283_v7 = vadd.f32 %v279_v28, %v275_v30  ;;  %v282_v32 = vadd.f32 %v277_v29, %v274_v31 }
  0xd0   : > { %608 = vrot.lane.b32.xlu1 %v2499_v26, %s2135_s25  ;;  %606 = vrot.lane.b32.xlu0 %v2502_v27, %s2135_s25 }
  0xd2   : > { %v287_v33 = vpop.permute.xlu1 %286  ;;  %v285_v35 = vpop.permute.xlu0 %284 }
  0xd3   : > { %v291_v37 = vadd.f32 %v287_v33, %v283_v7  ;;  %v290_v38 = vadd.f32 %v285_v35, %v282_v32 }
  0xd4   : > { %616 = vrot.lane.b32.xlu1 %v2499_v26, %s2134_s24  ;;  %614 = vrot.lane.b32.xlu0 %v2502_v27, %s2134_s24 }
  0xd5   : > { %v295_v41 = vadd.f32 %v293_v34, %v291_v37  ;;  %v294_v42 = vadd.f32 %v292_v36, %v290_v38 }
  0xd6   : > { %v309_v43 = vpop.permute.xlu1 %308  ;;  %v307_v44 = vpop.permute.xlu0 %306 }
  0xd7   : > { %297 = vst.msk [vmem:[#allocation2 + $0x8] sm:$0x1f] %vm163_vm0, %v295_v41  ;;  %v313_v49 = vadd.f32 %v2329_v9, %v309_v43  ;;  %v312_v50 = vadd.f32 %v2332_v10, %v307_v44 }
  0xd8   : > { %296 = vst.msk [vmem:[#allocation2] sm:$0xff] %vm161_vm1, %v294_v42  ;;  %624 = vrot.lane.b32.xlu1 %v2499_v26, %s2136_s17  ;;  %622 = vrot.lane.b32.xlu0 %v2502_v27, %s2136_s17 }
  0xda   : > { %v317_v47 = vpop.permute.xlu1 %316  ;;  %v315_v48 = vpop.permute.xlu0 %314 }
  0xdb   : > { %v321_v51 = vadd.f32 %v317_v47, %v313_v49  ;;  %v320_v52 = vadd.f32 %v315_v48, %v312_v50 }
  0xdc   : > { %640 = vrot.lane.b32.xlu1 %v2519_v45, %s2135_s25  ;;  %638 = vrot.lane.b32.xlu0 %v2522_v46, %s2135_s25 }
  0xde   : > { %v325_v53 = vpop.permute.xlu1 %324  ;;  %v323_v54 = vpop.permute.xlu0 %322 }
  0xdf   : > { %v329_v57 = vadd.f32 %v325_v53, %v321_v51  ;;  %v328_v58 = vadd.f32 %v323_v54, %v320_v52 }
  0xe0   : > { %648 = vrot.lane.b32.xlu1 %v2519_v45, %s2134_s24  ;;  %646 = vrot.lane.b32.xlu0 %v2522_v46, %s2134_s24 }
  0xe1   : > { %v335_v60 = vadd.f32 %v2347_v11, %v329_v57  ;;  %v334_v61 = vadd.f32 %v2350_v12, %v328_v58 }
  0xe2   : > { %v341_v9 = vpop.permute.xlu1 %340  ;;  %v339_v59 = vpop.permute.xlu0 %338 }
  0xe3   : > { %v345_v4 = vadd.f32 %v341_v9, %v335_v60  ;;  %v344_v6 = vadd.f32 %v339_v59, %v334_v61  ;;  %v427_v61 = vld [vmem:[#allocation2 + $0x8] sm:$0x1f] }
  0xe4   : > { %656 = vrot.lane.b32.xlu1 %v2519_v45, %s2136_s17  ;;  %654 = vrot.lane.b32.xlu0 %v2522_v46, %s2136_s17 }
  0xe6   : > { %v349_v1 = vpop.permute.xlu1 %348  ;;  %v347_v2 = vpop.permute.xlu0 %346 }
  0xe7   : > { %v353_v11 = vadd.f32 %v349_v1, %v345_v4  ;;  %v352_v21 = vadd.f32 %v347_v2, %v344_v6  ;;  %v426_v1 = vld [vmem:[#allocation2] sm:$0xff] }
  0xe8   : > { %672 = vrot.lane.b32.xlu1 %v2541_v62, %s2135_s25  ;;  %670 = vrot.lane.b32.xlu0 %v2544_v63, %s2135_s25 }
  0xea   : > { %v357_v22 = vpop.permute.xlu1 %356  ;;  %v355_v23 = vpop.permute.xlu0 %354 }
  0xeb   : > { %v361_v28 = vadd.f32 %v357_v22, %v353_v11  ;;  %v360_v29 = vadd.f32 %v355_v23, %v352_v21 }
  0xec   : > { %680 = vrot.lane.b32.xlu1 %v2541_v62, %s2134_s24  ;;  %678 = vrot.lane.b32.xlu0 %v2544_v63, %s2134_s24 }
  0xed   : > { %v367_v7 = vadd.f32 %v2365_v13, %v361_v28  ;;  %v366_v32 = vadd.f32 %v2368_v14, %v360_v29 }
  0xee   : > { %v373_v30 = vpop.permute.xlu1 %372  ;;  %v371_v31 = vpop.permute.xlu0 %370 }
  0xef   : > { %v377_v35 = vadd.f32 %v373_v30, %v367_v7  ;;  %v376_v36 = vadd.f32 %v371_v31, %v366_v32 }
  0xf0   : > { %688 = vrot.lane.b32.xlu1 %v2541_v62, %s2136_s17  ;;  %686 = vrot.lane.b32.xlu0 %v2544_v63, %s2136_s17 }
  0xf2   : > { %v381_v33 = vpop.permute.xlu1 %380  ;;  %v379_v34 = vpop.permute.xlu0 %378 }
  0xf3   : > { %v385_v37 = vadd.f32 %v381_v33, %v377_v35  ;;  %v384_v38 = vadd.f32 %v379_v34, %v376_v36 }
  0xf6   : > { %v389_v41 = vpop.permute.xlu1 %388  ;;  %v387_v42 = vpop.permute.xlu0 %386 }
  0xf7   : > { %v393_v43 = vadd.f32 %v389_v41, %v385_v37  ;;  %v392_v44 = vadd.f32 %v387_v42, %v384_v38 }
  0xf9   : > { %v399_v48 = vadd.f32 %v2383_v15, %v393_v43  ;;  %v398_v49 = vadd.f32 %v2386_v16, %v392_v44 }
  0xfa   : > { %v405_v47 = vpop.permute.xlu1 %404  ;;  %v403_v13 = vpop.permute.xlu0 %402 }
  0xfb   : > { %v409_v52 = vadd.f32 %v405_v47, %v399_v48  ;;  %v408_v53 = vadd.f32 %v403_v13, %v398_v49 }
  0xfe   : > { %v413_v50 = vpop.permute.xlu1 %412  ;;  %v411_v51 = vpop.permute.xlu0 %410 }
  0xff   : > { %v417_v54 = vadd.f32 %v413_v50, %v409_v52  ;;  %v416_v57 = vadd.f32 %v411_v51, %v408_v53 }
 0x102   : > { %v421_v58 = vpop.permute.xlu1 %420  ;;  %v419_v9 = vpop.permute.xlu0 %418 }
 0x103   : > { %v425_v59 = vadd.f32 %v421_v58, %v417_v54  ;;  %v424_v60 = vadd.f32 %v419_v9, %v416_v57 }
 0x105   : > { %v429_v2 = vadd.f32 %v427_v61, %v425_v59  ;;  %v428_v4 = vadd.f32 %v426_v1, %v424_v60 }
 0x106   : > { %v443_v6 = vpop.permute.xlu1 %442  ;;  %v441_v11 = vpop.permute.xlu0 %440 }
 0x107   : > { %431 = vst.msk [vmem:[#allocation2 + $0x8] sm:$0x1f] %vm163_vm0, %v429_v2  ;;  %v447_v22 = vadd.f32 %v2401_v17, %v443_v6  ;;  %v446_v23 = vadd.f32 %v2404_v18, %v441_v11 }
 0x108   : > { %430 = vst.msk [vmem:[#allocation2] sm:$0xff] %vm161_vm1, %v428_v4 }
 0x10a   : > { %v451_v15 = vpop.permute.xlu1 %450  ;;  %v449_v21 = vpop.permute.xlu0 %448 }
 0x10b   : > { %v455_v28 = vadd.f32 %v451_v15, %v447_v22  ;;  %v454_v29 = vadd.f32 %v449_v21, %v446_v23 }
 0x10e   : > { %v459_v30 = vpop.permute.xlu1 %458  ;;  %v457_v31 = vpop.permute.xlu0 %456 }
 0x10f   : > { %v463_v7 = vadd.f32 %v459_v30, %v455_v28  ;;  %v462_v32 = vadd.f32 %v457_v31, %v454_v29 }
 0x111   : > { %v469_v35 = vadd.f32 %v2419_v19, %v463_v7  ;;  %v468_v36 = vadd.f32 %v2422_v20, %v462_v32  ;;  %v561_v32 = vld [vmem:[#allocation2 + $0x8] sm:$0x1f] }
 0x112   : > { %v475_v33 = vpop.permute.xlu1 %474  ;;  %v473_v34 = vpop.permute.xlu0 %472 }
 0x113   : > { %v479_v41 = vadd.f32 %v475_v33, %v469_v35  ;;  %v478_v42 = vadd.f32 %v473_v34, %v468_v36  ;;  %v560_v33 = vld [vmem:[#allocation2] sm:$0xff] }
 0x116   : > { %v483_v37 = vpop.permute.xlu1 %482  ;;  %v481_v38 = vpop.permute.xlu0 %480 }
 0x117   : > { %v487_v43 = vadd.f32 %v483_v37, %v479_v41  ;;  %v486_v17 = vadd.f32 %v481_v38, %v478_v42 }
 0x11a   : > { %v491_v44 = vpop.permute.xlu1 %490  ;;  %v489_v47 = vpop.permute.xlu0 %488 }
 0x11b   : > { %v495_v13 = vadd.f32 %v491_v44, %v487_v43  ;;  %v494_v48 = vadd.f32 %v489_v47, %v486_v17 }
 0x11d   : > { %v501_v51 = vadd.f32 %v2438_v24, %v495_v13  ;;  %v500_v52 = vadd.f32 %v2441_v25, %v494_v48 }
 0x11e   : > { %v507_v49 = vpop.permute.xlu1 %506  ;;  %v505_v50 = vpop.permute.xlu0 %504 }
 0x11f   : > { %v511_v54 = vadd.f32 %v507_v49, %v501_v51  ;;  %v510_v57 = vadd.f32 %v505_v50, %v500_v52 }
 0x122   : > { %v515_v53 = vpop.permute.xlu1 %514  ;;  %v513_v19 = vpop.permute.xlu0 %512 }
 0x123   : > { %v519_v58 = vadd.f32 %v515_v53, %v511_v54  ;;  %v518_v9 = vadd.f32 %v513_v19, %v510_v57 }
 0x126   : > { %v523_v59 = vpop.permute.xlu1 %522  ;;  %v521_v60 = vpop.permute.xlu0 %520 }
 0x127   : > { %v527_v61 = vadd.f32 %v523_v59, %v519_v58  ;;  %v526_v1 = vadd.f32 %v521_v60, %v518_v9 }
 0x129   : > { %v533_v6 = vadd.f32 %v2459_v39, %v527_v61  ;;  %v532_v11 = vadd.f32 %v2462_v40, %v526_v1 }
 0x12a   : > { %v539_v2 = vpop.permute.xlu1 %538  ;;  %v537_v4 = vpop.permute.xlu0 %536 }
 0x12b   : > { %v543_v21 = vadd.f32 %v539_v2, %v533_v6  ;;  %v542_v22 = vadd.f32 %v537_v4, %v532_v11 }
 0x12e   : > { %v547_v15 = vpop.permute.xlu1 %546  ;;  %v545_v24 = vpop.permute.xlu0 %544 }
 0x12f   : > { %v551_v23 = vadd.f32 %v547_v15, %v543_v21  ;;  %v550_v28 = vadd.f32 %v545_v24, %v542_v22 }
 0x132   : > { %v555_v29 = vpop.permute.xlu1 %554  ;;  %v553_v30 = vpop.permute.xlu0 %552 }
 0x133   : > { %v559_v31 = vadd.f32 %v555_v29, %v551_v23  ;;  %v558_v7 = vadd.f32 %v553_v30, %v550_v28 }
 0x135   : > { %v563_v34 = vadd.f32 %v561_v32, %v559_v31  ;;  %v562_v35 = vadd.f32 %v560_v33, %v558_v7 }
 0x136   : > { %v577_v36 = vpop.permute.xlu1 %576  ;;  %v575_v37 = vpop.permute.xlu0 %574 }
 0x137   : > { %565 = vst.msk [vmem:[#allocation2 + $0x8] sm:$0x1f] %vm163_vm0, %v563_v34  ;;  %v581_v41 = vadd.f32 %v2479_v55, %v577_v36  ;;  %v580_v42 = vadd.f32 %v2482_v56, %v575_v37 }
 0x138   : > { %564 = vst.msk [vmem:[#allocation2] sm:$0xff] %vm161_vm1, %v562_v35 }
 0x13a   : > { %v585_v39 = vpop.permute.xlu1 %584  ;;  %v583_v38 = vpop.permute.xlu0 %582 }
 0x13b   : > { %v589_v43 = vadd.f32 %v585_v39, %v581_v41  ;;  %v588_v17 = vadd.f32 %v583_v38, %v580_v42 }
 0x13e   : > { %v593_v44 = vpop.permute.xlu1 %592  ;;  %v591_v47 = vpop.permute.xlu0 %590 }
 0x13f   : > { %v597_v13 = vadd.f32 %v593_v44, %v589_v43  ;;  %v596_v48 = vadd.f32 %v591_v47, %v588_v17  ;;  %v694_v17 = vld [vmem:[#allocation2] sm:$0xff] }
 0x141   : > { %v603_v51 = vadd.f32 %v2499_v26, %v597_v13  ;;  %v602_v52 = vadd.f32 %v2502_v27, %v596_v48  ;;  %v705_v13 = vld [vmem:[%s2248_s23 + $0x8] sm:$0x1f] }
 0x142   : > { %v609_v49 = vpop.permute.xlu1 %608  ;;  %v607_v50 = vpop.permute.xlu0 %606  ;;  %v1742_v48 = vld [vmem:[%s2248_s23 + $0x9] sm:$0x1f] }
 0x143   : > { %v613_v54 = vadd.f32 %v609_v49, %v603_v51  ;;  %v612_v57 = vadd.f32 %v607_v50, %v602_v52  ;;  %v1758_v49 = vld [vmem:[%s2248_s23 + $0xa] sm:$0x1f]  ;;  %v1790_v51 = vld [vmem:[%s2248_s23 + $0x18] sm:$0x1f] }
 0x144   : > { %v1774_v50 = vld [vmem:[%s2248_s23 + $0xb] sm:$0x1f]  ;;  %v1806_v52 = vld [vmem:[%s2248_s23 + $0x19] sm:$0x1f] }
 0x146   : > { %v617_v53 = vpop.permute.xlu1 %616  ;;  %v615_v19 = vpop.permute.xlu0 %614 }
 0x147   : > { %v621_v58 = vadd.f32 %v617_v53, %v613_v54  ;;  %v620_v55 = vadd.f32 %v615_v19, %v612_v57  ;;  %v1822_v53 = vld [vmem:[%s2248_s23 + $0x1a] sm:$0x1f] }
 0x148   : > { %v1838_v19 = vld [vmem:[%s2248_s23 + $0x1b] sm:$0x1f] }
 0x14a   : > { %v625_v9 = vpop.permute.xlu1 %624  ;;  %v623_v59 = vpop.permute.xlu0 %622 }
 0x14b   : > { %v629_v60 = vadd.f32 %v625_v9, %v621_v58  ;;  %v628_v61 = vadd.f32 %v623_v59, %v620_v55  ;;  %v1854_v58 = vld [vmem:[%s2248_s23 + $0x28] sm:$0x1f] }
 0x14c   : > { %v1870_v55 = vld [vmem:[%s2248_s23 + $0x29] sm:$0x1f] }
 0x14d   : > { %v635_v4 = vadd.f32 %v2519_v45, %v629_v60  ;;  %v634_v6 = vadd.f32 %v2522_v46, %v628_v61  ;;  %v1886_v60 = vld [vmem:[%s2248_s23 + $0x2a] sm:$0x1f] }
 0x14e   : > { %v641_v1 = vpop.permute.xlu1 %640  ;;  %v639_v2 = vpop.permute.xlu0 %638  ;;  %v1902_v61 = vld [vmem:[%s2248_s23 + $0x2b] sm:$0x1f] }
 0x14f   : > { %v645_v15 = vadd.f32 %v641_v1, %v635_v4  ;;  %v644_v24 = vadd.f32 %v639_v2, %v634_v6  ;;  %v1918_v1 = vld [vmem:[%s2248_s23 + $0x38] sm:$0x1f] }
 0x150   : > { %v1934_v2 = vld [vmem:[%s2248_s23 + $0x39] sm:$0x1f] }
 0x151   : > { %v1950_v4 = vld [vmem:[%s2248_s23 + $0x3a] sm:$0x1f] }
 0x152   : > { %v649_v11 = vpop.permute.xlu1 %648  ;;  %v647_v26 = vpop.permute.xlu0 %646  ;;  %v1966_v6 = vld [vmem:[%s2248_s23 + $0x3b] sm:$0x1f] }
 0x153   : > { %v653_v21 = vadd.f32 %v649_v11, %v645_v15  ;;  %v652_v22 = vadd.f32 %v647_v26, %v644_v24 }
 0x156   : > { %v657_v23 = vpop.permute.xlu1 %656  ;;  %v655_v28 = vpop.permute.xlu0 %654 }
 0x157   : > { %v661_v29 = vadd.f32 %v657_v23, %v653_v21  ;;  %v660_v30 = vadd.f32 %v655_v28, %v652_v22 }
 0x159   : > { %v667_v32 = vadd.f32 %v2541_v62, %v661_v29  ;;  %v666_v33 = vadd.f32 %v2544_v63, %v660_v30  ;;  %v695_v62 = vld [vmem:[#allocation2 + $0x8] sm:$0x1f] }
 0x15a   : > { %v673_v31 = vpop.permute.xlu1 %672  ;;  %v671_v7 = vpop.permute.xlu0 %670 }
 0x15b   : > { %v677_v35 = vadd.f32 %v673_v31, %v667_v32  ;;  %v676_v36 = vadd.f32 %v671_v7, %v666_v33 }
 0x15e   : > { %v681_v45 = vpop.permute.xlu1 %680  ;;  %v679_v34 = vpop.permute.xlu0 %678 }
 0x15f   : > { %v685_v37 = vadd.f32 %v681_v45, %v677_v35  ;;  %v684_v39 = vadd.f32 %v679_v34, %v676_v36 }
 0x162   : > { %v689_v38 = vpop.permute.xlu1 %688  ;;  %v687_v41 = vpop.permute.xlu0 %686 }
 0x163   : > { %v693_v42 = vadd.f32 %v689_v38, %v685_v37  ;;  %v692_v43 = vadd.f32 %v687_v41, %v684_v39 }
 0x165   : > { %v697_v44 = vadd.f32 %v695_v62, %v693_v42  ;;  %v696_v47 = vadd.f32 %v694_v17, %v692_v43  ;;  %v734_v43 = vld [vmem:[%s2248_s23 + $0x8] sm:$0x1f] }
 0x167   : > { %699 = vst.msk [vmem:[#allocation2 + $0x8] sm:$0x1f] %vm163_vm0, %v697_v44 }
 0x168   : > { %698 = vst.msk [vmem:[#allocation2] sm:$0xff] %vm161_vm1, %v696_v47 }
 0x16e   : > { %v701_v54 = vld [vmem:[#allocation2 + $0x8] sm:$0x1f] }
 0x16f   : > { %v700_v57 = vld [vmem:[#allocation2] sm:$0xff]  ;;  %v2596_v9 = vmul.f32 0.015625, %v701_v54  ;;  %v1750_v54 = vld [vmem:[%s2248_s23 + $0x9] sm:$0x1f] }
 0x170   : > { %v2598_v59 = vmul.f32 0.015625, %v700_v57 }
 0x171   : > { %v707_v11 = vsub.f32 %v705_v13, %v2596_v9  ;;  %v778_v26 = vsub.f32 %v1742_v48, %v2596_v9  ;;  %v830_v15 = vsub.f32 %v1758_v49, %v2596_v9  ;;  %v882_v24 = vsub.f32 %v1774_v50, %v2596_v9  ;;  %716 = vrot.lane.b32.xlu1 %v2596_v9, %s2138_s9  ;;  %v755_v13 = vld [vmem:[%s2248_s23 + $0x8] sm:$0x1f] }
 0x172   : > { %v934_v21 = vsub.f32 %v1790_v51, %v2596_v9  ;;  %v986_v22 = vsub.f32 %v1806_v52, %v2596_v9  ;;  %v1038_v23 = vsub.f32 %v1822_v53, %v2596_v9  ;;  %v1090_v28 = vsub.f32 %v1838_v19, %v2596_v9  ;;  %714 = vrot.lane.b32.xlu0 %v2598_v59, %s2138_s9  ;;  %v1746_v52 = vld [vmem:[%s2248_s23 + $0x9] sm:$0x1f] }
 0x173   : > { %709 = vst.msk [vmem:[%s2603_s29 + $0x8] sm:$0x1f] %vm163_vm0, %v707_v11  ;;  %1744 = vst.msk [vmem:[%s2603_s29 + $0x48] sm:$0x1f] %vm163_vm0, %v778_v26  ;;  %v1142_v29 = vsub.f32 %v1854_v58, %v2596_v9  ;;  %v1194_v30 = vsub.f32 %v1870_v55, %v2596_v9  ;;  %v1246_v31 = vsub.f32 %v1886_v60, %v2596_v9  ;;  %v1754_v58 = vld [vmem:[%s2248_s23 + $0x9] sm:$0x1f] }
 0x174   : > { %1760 = vst.msk [vmem:[%s2603_s29 + $0x88] sm:$0x1f] %vm163_vm0, %v830_v15  ;;  %1776 = vst.msk [vmem:[%s2603_s29 + $0xc8] sm:$0x1f] %vm163_vm0, %v882_v24  ;;  %v1298_v7 = vsub.f32 %v1902_v61, %v2596_v9  ;;  %v1350_v32 = vsub.f32 %v1918_v1, %v2596_v9  ;;  %v1402_v33 = vsub.f32 %v1934_v2, %v2596_v9  ;;  %v1753_v55 = vld [vmem:[%s2248_s23 + $0x1] sm:$0xff] }
 0x175   : > { %1792 = vst.msk [vmem:[%s2603_s29 + $0x108] sm:$0x1f] %vm163_vm0, %v934_v21  ;;  %1808 = vst.msk [vmem:[%s2603_s29 + $0x148] sm:$0x1f] %vm163_vm0, %v986_v22  ;;  %v1454_v45 = vsub.f32 %v1950_v4, %v2596_v9  ;;  %v1506_v34 = vsub.f32 %v1966_v6, %v2596_v9  ;;  %v706_v35 = vsub.f32 %v2255_v0, %v2598_v59  ;;  %737 = vrot.lane.b32.xlu1 %v2596_v9, %s2139_s30  ;;  %v1762_v60 = vld [vmem:[%s2248_s23 + $0xa] sm:$0x1f] }
 0x176   : > { %1824 = vst.msk [vmem:[%s2603_s29 + $0x188] sm:$0x1f] %vm163_vm0, %v1038_v23  ;;  %1840 = vst.msk [vmem:[%s2603_s29 + $0x1c8] sm:$0x1f] %vm163_vm0, %v1090_v28  ;;  %v777_v36 = vsub.f32 %v2276_v3, %v2598_v59  ;;  %v829_v37 = vsub.f32 %v2294_v5, %v2598_v59  ;;  %v881_v39 = vsub.f32 %v2314_v8, %v2598_v59  ;;  %735 = vrot.lane.b32.xlu0 %v2598_v59, %s2139_s30  ;;  %v1761_v61 = vld [vmem:[%s2248_s23 + $0x2] sm:$0xff] }
 0x177   : > { %1856 = vst.msk [vmem:[%s2603_s29 + $0x208] sm:$0x1f] %vm163_vm0, %v1142_v29  ;;  %1872 = vst.msk [vmem:[%s2603_s29 + $0x248] sm:$0x1f] %vm163_vm0, %v1194_v30  ;;  %v933_v5 = vsub.f32 %v2332_v10, %v2598_v59  ;;  %v985_v8 = vsub.f32 %v2350_v12, %v2598_v59  ;;  %v1037_v38 = vsub.f32 %v2368_v14, %v2598_v59  ;;  %v1766_v2 = vld [vmem:[%s2248_s23 + $0xa] sm:$0x1f] }
 0x178   : > { %1888 = vst.msk [vmem:[%s2603_s29 + $0x288] sm:$0x1f] %vm163_vm0, %v1246_v31  ;;  %1904 = vst.msk [vmem:[%s2603_s29 + $0x2c8] sm:$0x1f] %vm163_vm0, %v1298_v7  ;;  %v1089_v41 = vsub.f32 %v2386_v16, %v2598_v59  ;;  %v1141_v10 = vsub.f32 %v2404_v18, %v2598_v59  ;;  %v1193_v12 = vsub.f32 %v2422_v20, %v2598_v59  ;;  %v1770_v11 = vld [vmem:[%s2248_s23 + $0xa] sm:$0x1f] }
 0x179   : > { %1920 = vst.msk [vmem:[%s2603_s29 + $0x308] sm:$0x1f] %vm163_vm0, %v1350_v32  ;;  %1936 = vst.msk [vmem:[%s2603_s29 + $0x348] sm:$0x1f] %vm163_vm0, %v1402_v33  ;;  %v1245_v14 = vsub.f32 %v2441_v25, %v2598_v59  ;;  %v1297_v16 = vsub.f32 %v2462_v40, %v2598_v59  ;;  %v1349_v18 = vsub.f32 %v2482_v56, %v2598_v59  ;;  %758 = vrot.lane.b32.xlu1 %v2596_v9, %s2140_s2  ;;  %v711_v56 = vld [vmem:[%s2248_s23 + $0x8] sm:$0x1f] }
 0x17a   : > { %1952 = vst.msk [vmem:[%s2603_s29 + $0x388] sm:$0x1f] %vm163_vm0, %v1454_v45  ;;  %1968 = vst.msk [vmem:[%s2603_s29 + $0x3c8] sm:$0x1f] %vm163_vm0, %v1506_v34  ;;  %v1401_v20 = vsub.f32 %v2502_v27, %v2598_v59  ;;  %v1453_v25 = vsub.f32 %v2522_v46, %v2598_v59  ;;  %v1505_v40 = vsub.f32 %v2544_v63, %v2598_v59  ;;  %756 = vrot.lane.b32.xlu0 %v2598_v59, %s2140_s2  ;;  %v1778_v24 = vld [vmem:[%s2248_s23 + $0xb] sm:$0x1f] }
 0x17b   : > { %708 = vst.msk [vmem:[%s2603_s29] sm:$0xff] %vm161_vm1, %v706_v35  ;;  %1743 = vst.msk [vmem:[%s2603_s29 + $0x40] sm:$0xff] %vm161_vm1, %v777_v36  ;;  %v1777_v21 = vld [vmem:[%s2248_s23 + $0x3] sm:$0xff]  ;;  %v1782_v28 = vld [vmem:[%s2248_s23 + $0xb] sm:$0x1f] }
 0x17c   : > { %1759 = vst.msk [vmem:[%s2603_s29 + $0x80] sm:$0xff] %vm161_vm1, %v829_v37  ;;  %1775 = vst.msk [vmem:[%s2603_s29 + $0xc0] sm:$0xff] %vm161_vm1, %v881_v39  ;;  %v1786_v31 = vld [vmem:[%s2248_s23 + $0xb] sm:$0x1f]  ;;  %v1794_v33 = vld [vmem:[%s2248_s23 + $0x18] sm:$0x1f] }
 0x17d   : > { %1791 = vst.msk [vmem:[%s2603_s29 + $0x100] sm:$0xff] %vm161_vm1, %v933_v5  ;;  %1807 = vst.msk [vmem:[%s2603_s29 + $0x140] sm:$0xff] %vm161_vm1, %v985_v8  ;;  %v1793_v45 = vld [vmem:[%s2248_s23 + $0x10] sm:$0xff]  ;;  %v1798_v36 = vld [vmem:[%s2248_s23 + $0x18] sm:$0x1f] }
 0x17e   : > { %1823 = vst.msk [vmem:[%s2603_s29 + $0x180] sm:$0xff] %vm161_vm1, %v1037_v38  ;;  %1839 = vst.msk [vmem:[%s2603_s29 + $0x1c0] sm:$0xff] %vm161_vm1, %v1089_v41  ;;  %v1802_v5 = vld [vmem:[%s2248_s23 + $0x18] sm:$0x1f] }
 0x17f   : > { %1855 = vst.msk [vmem:[%s2603_s29 + $0x200] sm:$0xff] %vm161_vm1, %v1141_v10  ;;  %1871 = vst.msk [vmem:[%s2603_s29 + $0x240] sm:$0xff] %vm161_vm1, %v1193_v12  ;;  %v1810_v41 = vld [vmem:[%s2248_s23 + $0x19] sm:$0x1f]  ;;  %v1809_v10 = vld [vmem:[%s2248_s23 + $0x11] sm:$0xff] }
 0x180   : > { %1887 = vst.msk [vmem:[%s2603_s29 + $0x280] sm:$0xff] %vm161_vm1, %v1245_v14  ;;  %1903 = vst.msk [vmem:[%s2603_s29 + $0x2c0] sm:$0xff] %vm161_vm1, %v1297_v16  ;;  %v1814_v16 = vld [vmem:[%s2248_s23 + $0x19] sm:$0x1f] }
 0x181   : > { %1919 = vst.msk [vmem:[%s2603_s29 + $0x300] sm:$0xff] %vm161_vm1, %v1349_v18  ;;  %1935 = vst.msk [vmem:[%s2603_s29 + $0x340] sm:$0xff] %vm161_vm1, %v1401_v20 }
 0x182   : > { %1951 = vst.msk [vmem:[%s2603_s29 + $0x380] sm:$0xff] %vm161_vm1, %v1453_v25  ;;  %1967 = vst.msk [vmem:[%s2603_s29 + $0x3c0] sm:$0xff] %vm161_vm1, %v1505_v40  ;;  %v1818_v25 = vld [vmem:[%s2248_s23 + $0x19] sm:$0x1f] }
 0x1e3   : > { %v2730_v27 = vpop.permute.xlu1 %716 }
 0x1e4   : > { %v2732_v46 = vpop.permute.xlu0 %714  ;;  %v721_v63 = vsub.f32 %v711_v56, %v2730_v27  ;;  %v785_v53 = vsub.f32 %v1746_v52, %v2730_v27  ;;  %v889_v22 = vsub.f32 %v1778_v24, %v2730_v27  ;;  %v941_v34 = vsub.f32 %v1794_v33, %v2730_v27 }
 0x1e5   : > { %v720_v42 = vsub.f32 %v2255_v0, %v2732_v46  ;;  %v784_v19 = vsub.f32 %v2276_v3, %v2732_v46  ;;  %v836_v1 = vsub.f32 %v1761_v61, %v2732_v46  ;;  %v888_v23 = vsub.f32 %v1777_v21, %v2732_v46 }
 0x1e6   : > { %726 = vrot.lane.b32.xlu1 %v721_v63, %s2135_s25  ;;  %v940_v35 = vsub.f32 %v1793_v45, %v2732_v46  ;;  %v993_v12 = vsub.f32 %v1810_v41, %v2730_v27  ;;  %v992_v14 = vsub.f32 %v1809_v10, %v2732_v46  ;;  %v1826_v63 = vld [vmem:[%s2248_s23 + $0x1a] sm:$0x1f]  ;;  %v1894_v41 = vld [vmem:[%s2248_s23 + $0x2a] sm:$0x1f] }
 0x1e7   : > { %724 = vrot.lane.b32.xlu0 %v720_v42, %s2135_s25  ;;  %v2740_v62 = vpop.permute.xlu1 %737  ;;  %v1825_v42 = vld [vmem:[%s2248_s23 + $0x12] sm:$0xff] }
 0x1e8   : > { %v2742_v17 = vpop.permute.xlu0 %735  ;;  %v742_v44 = vsub.f32 %v734_v43, %v2740_v62  ;;  %v852_v4 = vsub.f32 %v1766_v2, %v2740_v62  ;;  %v904_v29 = vsub.f32 %v1782_v28, %v2740_v62  ;;  %v956_v37 = vsub.f32 %v1798_v36, %v2740_v62  ;;  %v1890_v36 = vld [vmem:[%s2248_s23 + $0x2a] sm:$0x1f] }
 0x1e9   : > { %v741_v47 = vsub.f32 %v2255_v0, %v2742_v17  ;;  %v799_v57 = vsub.f32 %v2276_v3, %v2742_v17  ;;  %v837_v3 = vsub.f32 %v1762_v60, %v2730_v27  ;;  %v851_v6 = vsub.f32 %v1761_v61, %v2742_v17 }
 0x1ea   : > { %747 = vrot.lane.b32.xlu1 %v742_v44, %s2134_s24  ;;  %v903_v30 = vsub.f32 %v1777_v21, %v2742_v17  ;;  %v955_v39 = vsub.f32 %v1793_v45, %v2742_v17  ;;  %v1008_v18 = vsub.f32 %v1814_v16, %v2740_v62  ;;  %v1007_v20 = vsub.f32 %v1809_v10, %v2742_v17 }
 0x1eb   : > { %745 = vrot.lane.b32.xlu0 %v741_v47, %s2134_s24  ;;  %v2750_v48 = vpop.permute.xlu1 %758  ;;  %v1045_v43 = vsub.f32 %v1826_v63, %v2730_v27  ;;  %v1044_v44 = vsub.f32 %v1825_v42, %v2732_v46  ;;  %v1830_v47 = vld [vmem:[%s2248_s23 + $0x1a] sm:$0x1f]  ;;  %v1906_v63 = vld [vmem:[%s2248_s23 + $0x2b] sm:$0x1f] }
 0x1ec   : > { %v2752_v49 = vpop.permute.xlu0 %756  ;;  %v763_v50 = vsub.f32 %v755_v13, %v2750_v48  ;;  %v815_v9 = vsub.f32 %v1754_v58, %v2750_v48  ;;  %v867_v26 = vsub.f32 %v1770_v11, %v2750_v48  ;;  %v919_v7 = vsub.f32 %v1786_v31, %v2750_v48  ;;  %v1846_v58 = vld [vmem:[%s2248_s23 + $0x1b] sm:$0x1f] }
 0x1ed   : > { %v762_v51 = vsub.f32 %v2255_v0, %v2752_v49  ;;  %v800_v0 = vsub.f32 %v1750_v54, %v2740_v62  ;;  %v814_v59 = vsub.f32 %v1753_v55, %v2752_v49  ;;  %v866_v15 = vsub.f32 %v1761_v61, %v2752_v49  ;;  %v1841_v54 = vld [vmem:[%s2248_s23 + $0x13] sm:$0xff] }
 0x1ee   : > { %768 = vrot.lane.b32.xlu1 %v763_v50, %s2136_s17  ;;  %v918_v32 = vsub.f32 %v1777_v21, %v2752_v49  ;;  %v971_v8 = vsub.f32 %v1802_v5, %v2750_v48  ;;  %v970_v38 = vsub.f32 %v1793_v45, %v2752_v49  ;;  %v1023_v40 = vsub.f32 %v1818_v25, %v2750_v48 }
 0x1ef   : > { %766 = vrot.lane.b32.xlu0 %v762_v51, %s2136_s17  ;;  %v1022_v56 = vsub.f32 %v1809_v10, %v2752_v49  ;;  %v1060_v13 = vsub.f32 %v1830_v47, %v2740_v62  ;;  %v1059_v50 = vsub.f32 %v1825_v42, %v2742_v17  ;;  %v1834_v51 = vld [vmem:[%s2248_s23 + $0x1a] sm:$0x1f]  ;;  %v1112_v55 = vsub.f32 %v1846_v58, %v2740_v62 }
 0x1f0   : > { %v1075_v52 = vsub.f32 %v1834_v51, %v2750_v48  ;;  %v1126_v61 = vsub.f32 %v1841_v54, %v2752_v49  ;;  %v1253_v5 = vsub.f32 %v1890_v36, %v2730_v27 }
 0x1f2   : > { %790 = vrot.lane.b32.xlu1 %v785_v53, %s2135_s25  ;;  %v1074_v53 = vsub.f32 %v1825_v42, %v2752_v49  ;;  %v1905_v42 = vld [vmem:[%s2248_s23 + $0x23] sm:$0xff] }
 0x1f3   : > { %788 = vrot.lane.b32.xlu0 %v784_v19, %s2135_s25  ;;  %v1842_v19 = vld [vmem:[%s2248_s23 + $0x1b] sm:$0x1f] }
 0x1f6   : > { %805 = vrot.lane.b32.xlu1 %v800_v0, %s2134_s24  ;;  %v1097_v0 = vsub.f32 %v1842_v19, %v2730_v27  ;;  %v1319_v19 = vsub.f32 %v1905_v42, %v2742_v17 }
 0x1f7   : > { %803 = vrot.lane.b32.xlu0 %v799_v57, %s2134_s24  ;;  %v1096_v57 = vsub.f32 %v1841_v54, %v2732_v46 }
 0x1fa   : > { %820 = vrot.lane.b32.xlu1 %v815_v9, %s2136_s17  ;;  %v1111_v9 = vsub.f32 %v1841_v54, %v2742_v17  ;;  %v1914_v54 = vld [vmem:[%s2248_s23 + $0x2b] sm:$0x1f] }
 0x1fb   : > { %818 = vrot.lane.b32.xlu0 %v814_v59, %s2136_s17  ;;  %v1850_v59 = vld [vmem:[%s2248_s23 + $0x1b] sm:$0x1f] }
 0x1fc   : > { %v1127_v60 = vsub.f32 %v1850_v59, %v2750_v48  ;;  %v1921_v59 = vld [vmem:[%s2248_s23 + $0x30] sm:$0xff] }
 0x1fe   : > { %842 = vrot.lane.b32.xlu1 %v837_v3, %s2135_s25  ;;  %v1858_v3 = vld [vmem:[%s2248_s23 + $0x28] sm:$0x1f] }
 0x1ff   : > { %840 = vrot.lane.b32.xlu0 %v836_v1, %s2135_s25  ;;  %v1857_v1 = vld [vmem:[%s2248_s23 + $0x20] sm:$0xff]  ;;  %v1149_v2 = vsub.f32 %v1858_v3, %v2730_v27 }
 0x200   : > { %v1178_v21 = vsub.f32 %v1857_v1, %v2752_v49 }
 0x202   : > { %857 = vrot.lane.b32.xlu1 %v852_v4, %s2134_s24  ;;  %v1148_v4 = vsub.f32 %v1857_v1, %v2732_v46 }
 0x203   : > { %855 = vrot.lane.b32.xlu0 %v851_v6, %s2134_s24  ;;  %v1862_v6 = vld [vmem:[%s2248_s23 + $0x28] sm:$0x1f] }
 0x204   : > { %v1164_v11 = vsub.f32 %v1862_v6, %v2740_v62 }
 0x206   : > { %872 = vrot.lane.b32.xlu1 %v867_v26, %s2136_s17  ;;  %v1163_v26 = vsub.f32 %v1857_v1, %v2742_v17  ;;  %v1356_v1 = vsub.f32 %v1921_v59, %v2732_v46 }
 0x207   : > { %870 = vrot.lane.b32.xlu0 %v866_v15, %s2136_s17  ;;  %v1866_v15 = vld [vmem:[%s2248_s23 + $0x28] sm:$0x1f] }
 0x208   : > { %v1179_v24 = vsub.f32 %v1866_v15, %v2750_v48  ;;  %v1930_v15 = vld [vmem:[%s2248_s23 + $0x38] sm:$0x1f] }
 0x20a   : > { %894 = vrot.lane.b32.xlu1 %v889_v22, %s2135_s25  ;;  %v1874_v22 = vld [vmem:[%s2248_s23 + $0x29] sm:$0x1f] }
 0x20b   : > { %892 = vrot.lane.b32.xlu0 %v888_v23, %s2135_s25  ;;  %v1873_v23 = vld [vmem:[%s2248_s23 + $0x21] sm:$0xff]  ;;  %v1201_v28 = vsub.f32 %v1874_v22, %v2730_v27 }
 0x20e   : > { %909 = vrot.lane.b32.xlu1 %v904_v29, %s2134_s24  ;;  %v1200_v29 = vsub.f32 %v1873_v23, %v2732_v46 }
 0x20f   : > { %907 = vrot.lane.b32.xlu0 %v903_v30, %s2134_s24  ;;  %v1878_v30 = vld [vmem:[%s2248_s23 + $0x29] sm:$0x1f] }
 0x210   : > { %v1216_v31 = vsub.f32 %v1878_v30, %v2740_v62 }
 0x212   : > { %924 = vrot.lane.b32.xlu1 %v919_v7, %s2136_s17  ;;  %v1215_v7 = vsub.f32 %v1873_v23, %v2742_v17 }
 0x213   : > { %922 = vrot.lane.b32.xlu0 %v918_v32, %s2136_s17  ;;  %v1882_v32 = vld [vmem:[%s2248_s23 + $0x29] sm:$0x1f] }
 0x214   : > { %v1231_v45 = vsub.f32 %v1882_v32, %v2750_v48 }
 0x216   : > { %946 = vrot.lane.b32.xlu1 %v941_v34, %s2135_s25 }
 0x217   : > { %944 = vrot.lane.b32.xlu0 %v940_v35, %s2135_s25  ;;  %v1230_v35 = vsub.f32 %v1873_v23, %v2752_v49  ;;  %v1386_v23 = vsub.f32 %v1921_v59, %v2752_v49 }
 0x21a   : > { %961 = vrot.lane.b32.xlu1 %v956_v37, %s2134_s24  ;;  %v1889_v37 = vld [vmem:[%s2248_s23 + $0x22] sm:$0xff] }
 0x21b   : > { %959 = vrot.lane.b32.xlu0 %v955_v39, %s2134_s24  ;;  %v1267_v16 = vsub.f32 %v1889_v37, %v2742_v17 }
 0x21e   : > { %976 = vrot.lane.b32.xlu1 %v971_v8, %s2136_s17 }
 0x21f   : > { %974 = vrot.lane.b32.xlu0 %v970_v38, %s2136_s17  ;;  %v1252_v38 = vsub.f32 %v1889_v37, %v2732_v46 }
 0x222   : > { %998 = vrot.lane.b32.xlu1 %v993_v12, %s2135_s25  ;;  %v1268_v12 = vsub.f32 %v1894_v41, %v2740_v62  ;;  %v1954_v41 = vld [vmem:[%s2248_s23 + $0x3a] sm:$0x1f] }
 0x223   : > { %996 = vrot.lane.b32.xlu0 %v992_v14, %s2135_s25 }
 0x226   : > { %1013 = vrot.lane.b32.xlu1 %v1008_v18, %s2134_s24  ;;  %v1898_v18 = vld [vmem:[%s2248_s23 + $0x2a] sm:$0x1f] }
 0x227   : > { %1011 = vrot.lane.b32.xlu0 %v1007_v20, %s2134_s24  ;;  %v1283_v25 = vsub.f32 %v1898_v18, %v2750_v48 }
 0x22a   : > { %1028 = vrot.lane.b32.xlu1 %v1023_v40, %s2136_s17 }
 0x22b   : > { %1026 = vrot.lane.b32.xlu0 %v1022_v56, %s2136_s17  ;;  %v1282_v56 = vsub.f32 %v1889_v37, %v2752_v49  ;;  %v1946_v37 = vld [vmem:[%s2248_s23 + $0x39] sm:$0x1f] }
 0x22e   : > { %1050 = vrot.lane.b32.xlu1 %v1045_v43, %s2135_s25 }
 0x22f   : > { %1048 = vrot.lane.b32.xlu0 %v1044_v44, %s2135_s25  ;;  %v1305_v44 = vsub.f32 %v1906_v63, %v2730_v27 }
 0x232   : > { %1065 = vrot.lane.b32.xlu1 %v1060_v13, %s2134_s24  ;;  %v1304_v13 = vsub.f32 %v1905_v42, %v2732_v46 }
 0x233   : > { %1063 = vrot.lane.b32.xlu0 %v1059_v50, %s2134_s24  ;;  %v1910_v50 = vld [vmem:[%s2248_s23 + $0x2b] sm:$0x1f] }
 0x236   : > { %1080 = vrot.lane.b32.xlu1 %v1075_v52, %s2136_s17  ;;  %v1320_v52 = vsub.f32 %v1910_v50, %v2740_v62  ;;  %v1970_v50 = vld [vmem:[%s2248_s23 + $0x3b] sm:$0x1f] }
 0x237   : > { %1078 = vrot.lane.b32.xlu0 %v1074_v53, %s2136_s17 }
 0x23a   : > { %1102 = vrot.lane.b32.xlu1 %v1097_v0, %s2135_s25 }
 0x23b   : > { %1100 = vrot.lane.b32.xlu0 %v1096_v57, %s2135_s25  ;;  %v1335_v57 = vsub.f32 %v1914_v54, %v2750_v48 }
 0x23e   : > { %1117 = vrot.lane.b32.xlu1 %v1112_v55, %s2134_s24  ;;  %v1334_v55 = vsub.f32 %v1905_v42, %v2752_v49  ;;  %v1962_v42 = vld [vmem:[%s2248_s23 + $0x3a] sm:$0x1f] }
 0x23f   : > { %1115 = vrot.lane.b32.xlu0 %v1111_v9, %s2134_s24  ;;  %v1922_v9 = vld [vmem:[%s2248_s23 + $0x38] sm:$0x1f] }
 0x242   : > { %1132 = vrot.lane.b32.xlu1 %v1127_v60, %s2136_s17 }
 0x243   : > { %1130 = vrot.lane.b32.xlu0 %v1126_v61, %s2136_s17  ;;  %v1357_v61 = vsub.f32 %v1922_v9, %v2730_v27 }
 0x246   : > { %1154 = vrot.lane.b32.xlu1 %v1149_v2, %s2135_s25  ;;  %v1926_v2 = vld [vmem:[%s2248_s23 + $0x38] sm:$0x1f] }
 0x247   : > { %1152 = vrot.lane.b32.xlu0 %v1148_v4, %s2135_s25  ;;  %v1372_v6 = vsub.f32 %v1926_v2, %v2740_v62 }
 0x24a   : > { %1169 = vrot.lane.b32.xlu1 %v1164_v11, %s2134_s24 }
 0x24b   : > { %1167 = vrot.lane.b32.xlu0 %v1163_v26, %s2134_s24  ;;  %v1371_v26 = vsub.f32 %v1921_v59, %v2742_v17 }
 0x24e   : > { %1184 = vrot.lane.b32.xlu1 %v1179_v24, %s2136_s17 }
 0x24f   : > { %1182 = vrot.lane.b32.xlu0 %v1178_v21, %s2136_s17  ;;  %v1387_v21 = vsub.f32 %v1930_v15, %v2750_v48 }
 0x252   : > { %1206 = vrot.lane.b32.xlu1 %v1201_v28, %s2135_s25  ;;  %v1938_v28 = vld [vmem:[%s2248_s23 + $0x39] sm:$0x1f] }
 0x253   : > { %1204 = vrot.lane.b32.xlu0 %v1200_v29, %s2135_s25  ;;  %v1937_v29 = vld [vmem:[%s2248_s23 + $0x31] sm:$0xff] }
 0x254   : > { %v1408_v32 = vsub.f32 %v1937_v29, %v2732_v46  ;;  %v1423_v36 = vsub.f32 %v1937_v29, %v2742_v17 }
 0x256   : > { %1221 = vrot.lane.b32.xlu1 %v1216_v31, %s2134_s24  ;;  %v1409_v31 = vsub.f32 %v1938_v28, %v2730_v27 }
 0x257   : > { %1219 = vrot.lane.b32.xlu0 %v1215_v7, %s2134_s24 }
 0x258   : > { %v727_v33 = vpop.permute.xlu1 %726 }
 0x259   : > { %1736 = vst.msk [vmem:[%s2603_s29 + $0x18] sm:$0x1f] %vm163_vm0, %v727_v33  ;;  %v725_v34 = vpop.permute.xlu0 %724  ;;  %v1942_v33 = vld [vmem:[%s2248_s23 + $0x39] sm:$0x1f] }
 0x25a   : > { %1735 = vst.msk [vmem:[%s2603_s29 + $0x10] sm:$0xff] %vm161_vm1, %v725_v34  ;;  %1236 = vrot.lane.b32.xlu1 %v1231_v45, %s2136_s17  ;;  %v1424_v34 = vsub.f32 %v1942_v33, %v2740_v62 }
 0x25b   : > { %1234 = vrot.lane.b32.xlu0 %v1230_v35, %s2136_s17 }
 0x25c   : > { %v748_v39 = vpop.permute.xlu1 %747 }
 0x25d   : > { %1738 = vst.msk [vmem:[%s2603_s29 + $0x28] sm:$0x1f] %vm163_vm0, %v748_v39  ;;  %v746_v8 = vpop.permute.xlu0 %745 }
 0x25e   : > { %1737 = vst.msk [vmem:[%s2603_s29 + $0x20] sm:$0xff] %vm161_vm1, %v746_v8  ;;  %1258 = vrot.lane.b32.xlu1 %v1253_v5, %s2135_s25  ;;  %v1439_v5 = vsub.f32 %v1946_v37, %v2750_v48 }
 0x25f   : > { %1256 = vrot.lane.b32.xlu0 %v1252_v38, %s2135_s25  ;;  %v1438_v38 = vsub.f32 %v1937_v29, %v2752_v49 }
 0x260   : > { %v769_v10 = vpop.permute.xlu1 %768 }
 0x261   : > { %1740 = vst.msk [vmem:[%s2603_s29 + $0x38] sm:$0x1f] %vm163_vm0, %v769_v10  ;;  %v767_v14 = vpop.permute.xlu0 %766  ;;  %v1953_v10 = vld [vmem:[%s2248_s23 + $0x32] sm:$0xff] }
 0x262   : > { %1739 = vst.msk [vmem:[%s2603_s29 + $0x30] sm:$0xff] %vm161_vm1, %v767_v14  ;;  %1273 = vrot.lane.b32.xlu1 %v1268_v12, %s2134_s24  ;;  %v1461_v14 = vsub.f32 %v1954_v41, %v2730_v27  ;;  %v1460_v18 = vsub.f32 %v1953_v10, %v2732_v46  ;;  %v1475_v63 = vsub.f32 %v1953_v10, %v2742_v17 }
 0x263   : > { %1271 = vrot.lane.b32.xlu0 %v1267_v16, %s2134_s24 }
 0x264   : > { %v791_v20 = vpop.permute.xlu1 %790 }
 0x265   : > { %1748 = vst.msk [vmem:[%s2603_s29 + $0x58] sm:$0x1f] %vm163_vm0, %v791_v20  ;;  %v789_v40 = vpop.permute.xlu0 %788  ;;  %v1958_v20 = vld [vmem:[%s2248_s23 + $0x3a] sm:$0x1f] }
 0x266   : > { %1747 = vst.msk [vmem:[%s2603_s29 + $0x50] sm:$0xff] %vm161_vm1, %v789_v40  ;;  %1288 = vrot.lane.b32.xlu1 %v1283_v25, %s2136_s17  ;;  %v1476_v40 = vsub.f32 %v1958_v20, %v2740_v62 }
 0x267   : > { %1286 = vrot.lane.b32.xlu0 %v1282_v56, %s2136_s17 }
 0x268   : > { %v806_v43 = vpop.permute.xlu1 %805 }
 0x269   : > { %1752 = vst.msk [vmem:[%s2603_s29 + $0x68] sm:$0x1f] %vm163_vm0, %v806_v43  ;;  %v804_v47 = vpop.permute.xlu0 %803 }
 0x26a   : > { %1751 = vst.msk [vmem:[%s2603_s29 + $0x60] sm:$0xff] %vm161_vm1, %v804_v47  ;;  %1310 = vrot.lane.b32.xlu1 %v1305_v44, %s2135_s25  ;;  %v1491_v44 = vsub.f32 %v1962_v42, %v2750_v48 }
 0x26b   : > { %1308 = vrot.lane.b32.xlu0 %v1304_v13, %s2135_s25  ;;  %v1490_v13 = vsub.f32 %v1953_v10, %v2752_v49 }
 0x26c   : > { %v821_v51 = vpop.permute.xlu1 %820 }
 0x26d   : > { %1756 = vst.msk [vmem:[%s2603_s29 + $0x78] sm:$0x1f] %vm163_vm0, %v821_v51  ;;  %v819_v53 = vpop.permute.xlu0 %818  ;;  %v1969_v51 = vld [vmem:[%s2248_s23 + $0x33] sm:$0xff] }
 0x26e   : > { %1755 = vst.msk [vmem:[%s2603_s29 + $0x70] sm:$0xff] %vm161_vm1, %v819_v53  ;;  %1325 = vrot.lane.b32.xlu1 %v1320_v52, %s2134_s24  ;;  %v1513_v53 = vsub.f32 %v1970_v50, %v2730_v27  ;;  %v1512_v54 = vsub.f32 %v1969_v51, %v2732_v46  ;;  %v1978_v46 = vld [vmem:[%s2248_s23 + $0x3b] sm:$0x1f] }
 0x26f   : > { %1323 = vrot.lane.b32.xlu0 %v1319_v19, %s2134_s24  ;;  %v1543_v59 = vsub.f32 %v1978_v46, %v2750_v48 }
 0x270   : > { %v843_v0 = vpop.permute.xlu1 %842 }
 0x271   : > { %1764 = vst.msk [vmem:[%s2603_s29 + $0x98] sm:$0x1f] %vm163_vm0, %v843_v0  ;;  %v841_v58 = vpop.permute.xlu0 %840  ;;  %v1974_v0 = vld [vmem:[%s2248_s23 + $0x3b] sm:$0x1f] }
 0x272   : > { %1763 = vst.msk [vmem:[%s2603_s29 + $0x90] sm:$0xff] %vm161_vm1, %v841_v58  ;;  %1340 = vrot.lane.b32.xlu1 %v1335_v57, %s2136_s17  ;;  %v1528_v58 = vsub.f32 %v1974_v0, %v2740_v62 }
 0x273   : > { %1338 = vrot.lane.b32.xlu0 %v1334_v55, %s2136_s17  ;;  %v1527_v55 = vsub.f32 %v1969_v51, %v2742_v17  ;;  %v1542_v17 = vsub.f32 %v1969_v51, %v2752_v49 }
 0x274   : > { %v858_v60 = vpop.permute.xlu1 %857 }
 0x275   : > { %1768 = vst.msk [vmem:[%s2603_s29 + $0xa8] sm:$0x1f] %vm163_vm0, %v858_v60  ;;  %v856_v3 = vpop.permute.xlu0 %855 }
 0x276   : > { %1767 = vst.msk [vmem:[%s2603_s29 + $0xa0] sm:$0xff] %vm161_vm1, %v856_v3  ;;  %1362 = vrot.lane.b32.xlu1 %v1357_v61, %s2135_s25 }
 0x277   : > { %1360 = vrot.lane.b32.xlu0 %v1356_v1, %s2135_s25 }
 0x278   : > { %v873_v4 = vpop.permute.xlu1 %872 }
 0x279   : > { %1772 = vst.msk [vmem:[%s2603_s29 + $0xb8] sm:$0x1f] %vm163_vm0, %v873_v4  ;;  %v871_v11 = vpop.permute.xlu0 %870 }
 0x27a   : > { %1771 = vst.msk [vmem:[%s2603_s29 + $0xb0] sm:$0xff] %vm161_vm1, %v871_v11  ;;  %1377 = vrot.lane.b32.xlu1 %v1372_v6, %s2134_s24 }
 0x27b   : > { %1375 = vrot.lane.b32.xlu0 %v1371_v26, %s2134_s24 }
 0x27c   : > { %v895_v24 = vpop.permute.xlu1 %894 }
 0x27d   : > { %1780 = vst.msk [vmem:[%s2603_s29 + $0xd8] sm:$0x1f] %vm163_vm0, %v895_v24  ;;  %v893_v22 = vpop.permute.xlu0 %892 }
 0x27e   : > { %1779 = vst.msk [vmem:[%s2603_s29 + $0xd0] sm:$0xff] %vm161_vm1, %v893_v22  ;;  %1392 = vrot.lane.b32.xlu1 %v1387_v21, %s2136_s17 }
 0x27f   : > { %1390 = vrot.lane.b32.xlu0 %v1386_v23, %s2136_s17 }
 0x280   : > { %v910_v30 = vpop.permute.xlu1 %909 }
 0x281   : > { %1784 = vst.msk [vmem:[%s2603_s29 + $0xe8] sm:$0x1f] %vm163_vm0, %v910_v30  ;;  %v908_v7 = vpop.permute.xlu0 %907 }
 0x282   : > { %1783 = vst.msk [vmem:[%s2603_s29 + $0xe0] sm:$0xff] %vm161_vm1, %v908_v7  ;;  %1414 = vrot.lane.b32.xlu1 %v1409_v31, %s2135_s25 }
 0x283   : > { %1412 = vrot.lane.b32.xlu0 %v1408_v32, %s2135_s25 }
 0x284   : > { %v925_v45 = vpop.permute.xlu1 %924 }
 0x285   : > { %1788 = vst.msk [vmem:[%s2603_s29 + $0xf8] sm:$0x1f] %vm163_vm0, %v925_v45  ;;  %v923_v35 = vpop.permute.xlu0 %922 }
 0x286   : > { %1787 = vst.msk [vmem:[%s2603_s29 + $0xf0] sm:$0xff] %vm161_vm1, %v923_v35  ;;  %1429 = vrot.lane.b32.xlu1 %v1424_v34, %s2134_s24 }
 0x287   : > { %1427 = vrot.lane.b32.xlu0 %v1423_v36, %s2134_s24 }
 0x288   : > { %v947_v39 = vpop.permute.xlu1 %946 }
 0x289   : > { %1796 = vst.msk [vmem:[%s2603_s29 + $0x118] sm:$0x1f] %vm163_vm0, %v947_v39  ;;  %v945_v8 = vpop.permute.xlu0 %944 }
 0x28a   : > { %1795 = vst.msk [vmem:[%s2603_s29 + $0x110] sm:$0xff] %vm161_vm1, %v945_v8  ;;  %1444 = vrot.lane.b32.xlu1 %v1439_v5, %s2136_s17 }
 0x28b   : > { %1442 = vrot.lane.b32.xlu0 %v1438_v38, %s2136_s17 }
 0x28c   : > { %v962_v12 = vpop.permute.xlu1 %961 }
 0x28d   : > { %1800 = vst.msk [vmem:[%s2603_s29 + $0x128] sm:$0x1f] %vm163_vm0, %v962_v12  ;;  %v960_v16 = vpop.permute.xlu0 %959 }
 0x28e   : > { %1799 = vst.msk [vmem:[%s2603_s29 + $0x120] sm:$0xff] %vm161_vm1, %v960_v16  ;;  %1466 = vrot.lane.b32.xlu1 %v1461_v14, %s2135_s25 }
 0x28f   : > { %1464 = vrot.lane.b32.xlu0 %v1460_v18, %s2135_s25 }
 0x290   : > { %v977_v25 = vpop.permute.xlu1 %976 }
 0x291   : > { %1804 = vst.msk [vmem:[%s2603_s29 + $0x138] sm:$0x1f] %vm163_vm0, %v977_v25  ;;  %v975_v56 = vpop.permute.xlu0 %974 }
 0x292   : > { %1803 = vst.msk [vmem:[%s2603_s29 + $0x130] sm:$0xff] %vm161_vm1, %v975_v56  ;;  %1481 = vrot.lane.b32.xlu1 %v1476_v40, %s2134_s24 }
 0x293   : > { %1479 = vrot.lane.b32.xlu0 %v1475_v63, %s2134_s24 }
 0x294   : > { %v999_v43 = vpop.permute.xlu1 %998 }
 0x295   : > { %1812 = vst.msk [vmem:[%s2603_s29 + $0x158] sm:$0x1f] %vm163_vm0, %v999_v43  ;;  %v997_v47 = vpop.permute.xlu0 %996 }
 0x296   : > { %1811 = vst.msk [vmem:[%s2603_s29 + $0x150] sm:$0xff] %vm161_vm1, %v997_v47  ;;  %1496 = vrot.lane.b32.xlu1 %v1491_v44, %s2136_s17 }
 0x297   : > { %1494 = vrot.lane.b32.xlu0 %v1490_v13, %s2136_s17 }
 0x298   : > { %v1014_v52 = vpop.permute.xlu1 %1013 }
 0x299   : > { %1816 = vst.msk [vmem:[%s2603_s29 + $0x168] sm:$0x1f] %vm163_vm0, %v1014_v52  ;;  %v1012_v19 = vpop.permute.xlu0 %1011 }
 0x29a   : > { %1815 = vst.msk [vmem:[%s2603_s29 + $0x160] sm:$0xff] %vm161_vm1, %v1012_v19  ;;  %1518 = vrot.lane.b32.xlu1 %v1513_v53, %s2135_s25 }
 0x29b   : > { %1516 = vrot.lane.b32.xlu0 %v1512_v54, %s2135_s25 }
 0x29c   : > { %v1029_v57 = vpop.permute.xlu1 %1028 }
 0x29d   : > { %1820 = vst.msk [vmem:[%s2603_s29 + $0x178] sm:$0x1f] %vm163_vm0, %v1029_v57  ;;  %v1027_v27 = vpop.permute.xlu0 %1026 }
 0x29e   : > { %1819 = vst.msk [vmem:[%s2603_s29 + $0x170] sm:$0xff] %vm161_vm1, %v1027_v27  ;;  %1533 = vrot.lane.b32.xlu1 %v1528_v58, %s2134_s24 }
 0x29f   : > { %1531 = vrot.lane.b32.xlu0 %v1527_v55, %s2134_s24 }
 0x2a0   : > { %v1051_v9 = vpop.permute.xlu1 %1050 }
 0x2a1   : > { %1828 = vst.msk [vmem:[%s2603_s29 + $0x198] sm:$0x1f] %vm163_vm0, %v1051_v9  ;;  %v1049_v62 = vpop.permute.xlu0 %1048 }
 0x2a2   : > { %1827 = vst.msk [vmem:[%s2603_s29 + $0x190] sm:$0xff] %vm161_vm1, %v1049_v62  ;;  %1548 = vrot.lane.b32.xlu1 %v1543_v59, %s2136_s17 }
 0x2a3   : > { %1546 = vrot.lane.b32.xlu0 %v1542_v17, %s2136_s17 }
 0x2a4   : > { %v1066_v60 = vpop.permute.xlu1 %1065 }
 0x2a5   : > { %1832 = vst.msk [vmem:[%s2603_s29 + $0x1a8] sm:$0x1f] %vm163_vm0, %v1066_v60  ;;  %v1064_v48 = vpop.permute.xlu0 %1063 }
 0x2a6   : > { %1831 = vst.msk [vmem:[%s2603_s29 + $0x1a0] sm:$0xff] %vm161_vm1, %v1064_v48 }
 0x2a8   : > { %v1081_v61 = vpop.permute.xlu1 %1080 }
 0x2a9   : > { %1836 = vst.msk [vmem:[%s2603_s29 + $0x1b8] sm:$0x1f] %vm163_vm0, %v1081_v61  ;;  %v1079_v49 = vpop.permute.xlu0 %1078 }
 0x2aa   : > { %1835 = vst.msk [vmem:[%s2603_s29 + $0x1b0] sm:$0xff] %vm161_vm1, %v1079_v49 }
 0x2ac   : > { %v1103_v3 = vpop.permute.xlu1 %1102 }
 0x2ad   : > { %1844 = vst.msk [vmem:[%s2603_s29 + $0x1d8] sm:$0x1f] %vm163_vm0, %v1103_v3  ;;  %v1101_v1 = vpop.permute.xlu0 %1100 }
 0x2ae   : > { %1843 = vst.msk [vmem:[%s2603_s29 + $0x1d0] sm:$0xff] %vm161_vm1, %v1101_v1 }
 0x2b0   : > { %v1118_v2 = vpop.permute.xlu1 %1117 }
 0x2b1   : > { %1848 = vst.msk [vmem:[%s2603_s29 + $0x1e8] sm:$0x1f] %vm163_vm0, %v1118_v2  ;;  %v1116_v4 = vpop.permute.xlu0 %1115 }
 0x2b2   : > { %1847 = vst.msk [vmem:[%s2603_s29 + $0x1e0] sm:$0xff] %vm161_vm1, %v1116_v4 }
 0x2b4   : > { %v1133_v6 = vpop.permute.xlu1 %1132 }
 0x2b5   : > { %1852 = vst.msk [vmem:[%s2603_s29 + $0x1f8] sm:$0x1f] %vm163_vm0, %v1133_v6  ;;  %v1131_v11 = vpop.permute.xlu0 %1130 }
 0x2b6   : > { %1851 = vst.msk [vmem:[%s2603_s29 + $0x1f0] sm:$0xff] %vm161_vm1, %v1131_v11 }
 0x2b8   : > { %v1155_v26 = vpop.permute.xlu1 %1154 }
 0x2b9   : > { %1860 = vst.msk [vmem:[%s2603_s29 + $0x218] sm:$0x1f] %vm163_vm0, %v1155_v26  ;;  %v1153_v15 = vpop.permute.xlu0 %1152 }
 0x2ba   : > { %1859 = vst.msk [vmem:[%s2603_s29 + $0x210] sm:$0xff] %vm161_vm1, %v1153_v15 }
 0x2bc   : > { %v1170_v24 = vpop.permute.xlu1 %1169 }
 0x2bd   : > { %1864 = vst.msk [vmem:[%s2603_s29 + $0x228] sm:$0x1f] %vm163_vm0, %v1170_v24  ;;  %v1168_v21 = vpop.permute.xlu0 %1167 }
 0x2be   : > { %1863 = vst.msk [vmem:[%s2603_s29 + $0x220] sm:$0xff] %vm161_vm1, %v1168_v21 }
 0x2c0   : > { %v1185_v22 = vpop.permute.xlu1 %1184 }
 0x2c1   : > { %1868 = vst.msk [vmem:[%s2603_s29 + $0x238] sm:$0x1f] %vm163_vm0, %v1185_v22  ;;  %v1183_v23 = vpop.permute.xlu0 %1182 }
 0x2c2   : > { %1867 = vst.msk [vmem:[%s2603_s29 + $0x230] sm:$0xff] %vm161_vm1, %v1183_v23 }
 0x2c4   : > { %v1207_v28 = vpop.permute.xlu1 %1206 }
 0x2c5   : > { %1876 = vst.msk [vmem:[%s2603_s29 + $0x258] sm:$0x1f] %vm163_vm0, %v1207_v28  ;;  %v1205_v29 = vpop.permute.xlu0 %1204 }
 0x2c6   : > { %1875 = vst.msk [vmem:[%s2603_s29 + $0x250] sm:$0xff] %vm161_vm1, %v1205_v29 }
 0x2c8   : > { %v1222_v30 = vpop.permute.xlu1 %1221 }
 0x2c9   : > { %1880 = vst.msk [vmem:[%s2603_s29 + $0x268] sm:$0x1f] %vm163_vm0, %v1222_v30  ;;  %v1220_v31 = vpop.permute.xlu0 %1219 }
 0x2ca   : > { %1879 = vst.msk [vmem:[%s2603_s29 + $0x260] sm:$0xff] %vm161_vm1, %v1220_v31 }
 0x2cc   : > { %v1237_v7 = vpop.permute.xlu1 %1236 }
 0x2cd   : > { %1884 = vst.msk [vmem:[%s2603_s29 + $0x278] sm:$0x1f] %vm163_vm0, %v1237_v7  ;;  %v1235_v32 = vpop.permute.xlu0 %1234 }
 0x2ce   : > { %1883 = vst.msk [vmem:[%s2603_s29 + $0x270] sm:$0xff] %vm161_vm1, %v1235_v32 }
 0x2d0   : > { %v1259_v33 = vpop.permute.xlu1 %1258 }
 0x2d1   : > { %1892 = vst.msk [vmem:[%s2603_s29 + $0x298] sm:$0x1f] %vm163_vm0, %v1259_v33  ;;  %v1257_v45 = vpop.permute.xlu0 %1256 }
 0x2d2   : > { %1891 = vst.msk [vmem:[%s2603_s29 + $0x290] sm:$0xff] %vm161_vm1, %v1257_v45 }
 0x2d4   : > { %v1274_v34 = vpop.permute.xlu1 %1273 }
 0x2d5   : > { %1896 = vst.msk [vmem:[%s2603_s29 + $0x2a8] sm:$0x1f] %vm163_vm0, %v1274_v34  ;;  %v1272_v35 = vpop.permute.xlu0 %1271 }
 0x2d6   : > { %1895 = vst.msk [vmem:[%s2603_s29 + $0x2a0] sm:$0xff] %vm161_vm1, %v1272_v35 }
 0x2d8   : > { %v1289_v36 = vpop.permute.xlu1 %1288 }
 0x2d9   : > { %1900 = vst.msk [vmem:[%s2603_s29 + $0x2b8] sm:$0x1f] %vm163_vm0, %v1289_v36  ;;  %v1287_v37 = vpop.permute.xlu0 %1286 }
 0x2da   : > { %1899 = vst.msk [vmem:[%s2603_s29 + $0x2b0] sm:$0xff] %vm161_vm1, %v1287_v37 }
 0x2dc   : > { %v1311_v39 = vpop.permute.xlu1 %1310 }
 0x2dd   : > { %1908 = vst.msk [vmem:[%s2603_s29 + $0x2d8] sm:$0x1f] %vm163_vm0, %v1311_v39  ;;  %v1309_v5 = vpop.permute.xlu0 %1308 }
 0x2de   : > { %1907 = vst.msk [vmem:[%s2603_s29 + $0x2d0] sm:$0xff] %vm161_vm1, %v1309_v5 }
 0x2e0   : > { %v1326_v8 = vpop.permute.xlu1 %1325 }
 0x2e1   : > { %1912 = vst.msk [vmem:[%s2603_s29 + $0x2e8] sm:$0x1f] %vm163_vm0, %v1326_v8  ;;  %v1324_v38 = vpop.permute.xlu0 %1323 }
 0x2e2   : > { %1911 = vst.msk [vmem:[%s2603_s29 + $0x2e0] sm:$0xff] %vm161_vm1, %v1324_v38 }
 0x2e4   : > { %v1341_v41 = vpop.permute.xlu1 %1340 }
 0x2e5   : > { %1916 = vst.msk [vmem:[%s2603_s29 + $0x2f8] sm:$0x1f] %vm163_vm0, %v1341_v41  ;;  %v1339_v10 = vpop.permute.xlu0 %1338 }
 0x2e6   : > { %1915 = vst.msk [vmem:[%s2603_s29 + $0x2f0] sm:$0xff] %vm161_vm1, %v1339_v10 }
 0x2e8   : > { %v1363_v12 = vpop.permute.xlu1 %1362 }
 0x2e9   : > { %1924 = vst.msk [vmem:[%s2603_s29 + $0x318] sm:$0x1f] %vm163_vm0, %v1363_v12  ;;  %v1361_v14 = vpop.permute.xlu0 %1360 }
 0x2ea   : > { %1923 = vst.msk [vmem:[%s2603_s29 + $0x310] sm:$0xff] %vm161_vm1, %v1361_v14 }
 0x2ec   : > { %v1378_v16 = vpop.permute.xlu1 %1377 }
 0x2ed   : > { %1928 = vst.msk [vmem:[%s2603_s29 + $0x328] sm:$0x1f] %vm163_vm0, %v1378_v16  ;;  %v1376_v18 = vpop.permute.xlu0 %1375 }
 0x2ee   : > { %1927 = vst.msk [vmem:[%s2603_s29 + $0x320] sm:$0xff] %vm161_vm1, %v1376_v18 }
 0x2f0   : > { %v1393_v20 = vpop.permute.xlu1 %1392 }
 0x2f1   : > { %1932 = vst.msk [vmem:[%s2603_s29 + $0x338] sm:$0x1f] %vm163_vm0, %v1393_v20  ;;  %v1391_v25 = vpop.permute.xlu0 %1390 }
 0x2f2   : > { %1931 = vst.msk [vmem:[%s2603_s29 + $0x330] sm:$0xff] %vm161_vm1, %v1391_v25 }
 0x2f4   : > { %v1415_v40 = vpop.permute.xlu1 %1414 }
 0x2f5   : > { %1940 = vst.msk [vmem:[%s2603_s29 + $0x358] sm:$0x1f] %vm163_vm0, %v1415_v40  ;;  %v1413_v56 = vpop.permute.xlu0 %1412 }
 0x2f6   : > { %1939 = vst.msk [vmem:[%s2603_s29 + $0x350] sm:$0xff] %vm161_vm1, %v1413_v56 }
 0x2f8   : > { %v1430_v63 = vpop.permute.xlu1 %1429 }
 0x2f9   : > { %1944 = vst.msk [vmem:[%s2603_s29 + $0x368] sm:$0x1f] %vm163_vm0, %v1430_v63  ;;  %v1428_v42 = vpop.permute.xlu0 %1427 }
 0x2fa   : > { %1943 = vst.msk [vmem:[%s2603_s29 + $0x360] sm:$0xff] %vm161_vm1, %v1428_v42 }
 0x2fc   : > { %v1445_v43 = vpop.permute.xlu1 %1444 }
 0x2fd   : > { %1948 = vst.msk [vmem:[%s2603_s29 + $0x378] sm:$0x1f] %vm163_vm0, %v1445_v43  ;;  %v1443_v44 = vpop.permute.xlu0 %1442 }
 0x2fe   : > { %1947 = vst.msk [vmem:[%s2603_s29 + $0x370] sm:$0xff] %vm161_vm1, %v1443_v44 }
 0x300   : > { %v1467_v47 = vpop.permute.xlu1 %1466 }
 0x301   : > { %1956 = vst.msk [vmem:[%s2603_s29 + $0x398] sm:$0x1f] %vm163_vm0, %v1467_v47  ;;  %v1465_v13 = vpop.permute.xlu0 %1464 }
 0x302   : > { %1955 = vst.msk [vmem:[%s2603_s29 + $0x390] sm:$0xff] %vm161_vm1, %v1465_v13 }
 0x304   : > { %v1482_v50 = vpop.permute.xlu1 %1481 }
 0x305   : > { %1960 = vst.msk [vmem:[%s2603_s29 + $0x3a8] sm:$0x1f] %vm163_vm0, %v1482_v50  ;;  %v1480_v51 = vpop.permute.xlu0 %1479 }
 0x306   : > { %1959 = vst.msk [vmem:[%s2603_s29 + $0x3a0] sm:$0xff] %vm161_vm1, %v1480_v51 }
 0x308   : > { %v1497_v52 = vpop.permute.xlu1 %1496 }
 0x309   : > { %1964 = vst.msk [vmem:[%s2603_s29 + $0x3b8] sm:$0x1f] %vm163_vm0, %v1497_v52  ;;  %v1495_v53 = vpop.permute.xlu0 %1494 }
 0x30a   : > { %1963 = vst.msk [vmem:[%s2603_s29 + $0x3b0] sm:$0xff] %vm161_vm1, %v1495_v53 }
 0x30c   : > { %v1519_v19 = vpop.permute.xlu1 %1518 }
 0x30d   : > { %1972 = vst.msk [vmem:[%s2603_s29 + $0x3d8] sm:$0x1f] %vm163_vm0, %v1519_v19  ;;  %v1517_v54 = vpop.permute.xlu0 %1516 }
 0x30e   : > { %1971 = vst.msk [vmem:[%s2603_s29 + $0x3d0] sm:$0xff] %vm161_vm1, %v1517_v54 }
 0x310   : > { %v1534_v0 = vpop.permute.xlu1 %1533 }
 0x311   : > { %1976 = vst.msk [vmem:[%s2603_s29 + $0x3e8] sm:$0x1f] %vm163_vm0, %v1534_v0  ;;  %v1532_v57 = vpop.permute.xlu0 %1531 }
 0x312   : > { %1975 = vst.msk [vmem:[%s2603_s29 + $0x3e0] sm:$0xff] %vm161_vm1, %v1532_v57 }
 0x314   : > { %v1549_v58 = vpop.permute.xlu1 %1548 }
 0x315   : > { %1980 = vst.msk [vmem:[%s2603_s29 + $0x3f8] sm:$0x1f] %vm163_vm0, %v1549_v58  ;;  %v1547_v27 = vpop.permute.xlu0 %1546 }
 0x316   : > { %1979 = vst.msk [vmem:[%s2603_s29 + $0x3f0] sm:$0xff] %vm161_vm1, %v1547_v27 }
 0x317 PF: > { %s14_s11 = sadd.s32 1, %s2129_s11   ;;  %s3216_s6 = smov %s2113_s7 }
 0x318   : > { %p11_p9 = scmp.ge.s32.totalorder %s14_s11, 4   ;;  %s3217_s7 = smov %s2117_s8 }
 0x319   : > { %s3218_s8 = smov %s2200_s18  ;;  %s3219_s9 = smov %s2125_s10 }
 0x31a   : > { %s3220_s10 = smov %s3222_s13  ;;  %13 = sbr.rel (!%p11_p9) target bundleno = 4 (0x4), region = 143 }
 0x321   :  { %1585 = vsyncpa [#allocation4], 1 }
 0x322   :  { %1587 = vsyncpa [#allocation4 + $0x1], 1 }

</bundles_post_ra>
